<compile_context>
chip_gen: v7x
topology: tpu7x:2x2x1
jax: 0.10.0
libtpu: 0.0.40
codegen_flags: <defaults>
</compile_context>

<pallas_src>
import functools

import jax
import jax.numpy as jnp
from jax.experimental import pallas as pl
from jax.experimental.pallas import tpu as pltpu


# ---------------------------------------------------------------------------
# Generic single-block (M, K) @ (K, N) + bias kernel
# (used for conv1-as-1x1 and for gx = im2col(x) @ Wx + b).
# ---------------------------------------------------------------------------
def _matmul_bias_kernel(x_ref, w_ref, b_ref, o_ref):
    o_ref[...] = (jnp.dot(x_ref[...], w_ref[...],
                          preferred_element_type=jnp.float32) + b_ref[...])


def linear_pallas(x_bf16, w_bf16, b_row):
    """(M, K) bf16 @ (K, N) bf16 + (1, N) f32 -> (M, N) f32, single block."""
    M, K = x_bf16.shape
    N = w_bf16.shape[1]
    return pl.pallas_call(
        _matmul_bias_kernel,
        grid=(1,),
        in_specs=[pl.BlockSpec((M, K), lambda i: (0, 0)),
                  pl.BlockSpec((K, N), lambda i: (0, 0)),
                  pl.BlockSpec((1, N), lambda i: (0, 0))],
        out_specs=pl.BlockSpec((M, N), lambda i: (0, 0)),
        out_shape=jax.ShapeDtypeStruct((M, N), jnp.float32),
        compiler_params=pltpu.CompilerParams(
            dimension_semantics=("arbitrary",),
            vmem_limit_bytes=16 * 1024 * 1024),
    )(x_bf16, w_bf16, b_row)


# ---------------------------------------------------------------------------
# Fused ConvLSTM recurrence (all timesteps) + fc3 head, one pallas_call.
# Layout: rows = (y, b) -> H*B rows; columns = x*Ch + c (lane-dense).
# ---------------------------------------------------------------------------
def _convlstm_head_kernel(gx_ref, whb_ref, peep_ref, w3_ref, b3_ref, out_ref,
                          hpad_s, *, k, H, W, Ch, B, steps, p, G):
    D = W * Ch                                   # lane-dense row width (160)
    HB = H * B

    wci = peep_ref[0]
    wcf = peep_ref[1]
    wco = peep_ref[2]

    def gate_math(gates, c):
        gi = jax.nn.sigmoid(gates[:, 0 * D:1 * D] + c * wci)
        gf = jax.nn.sigmoid(gates[:, 1 * D:2 * D] + c * wcf)
        cc = gf * c + gi * jnp.tanh(gates[:, 2 * D:3 * D])
        go = jax.nn.sigmoid(gates[:, 3 * D:4 * D] + cc * wco)
        return go * jnp.tanh(cc), cc

    gx = gx_ref[...]                             # (HB, 4*D) f32, bias included

    # t == 0: h == 0 and c == 0 -> hidden conv and peephole terms vanish.
    ch, c = gate_math(gx, jnp.zeros((HB, D), jnp.float32))

    # Remaining steps: hidden state (with a zero row-halo for the y-padding of
    # the 'same' conv) stays resident in VMEM scratch across the unrolled loop.
    hpad_s[...] = jnp.zeros_like(hpad_s)         # zero halo, once
    for _ in range(1, steps):                    # static unroll (steps small)
        hpad_s[p * B:(p + H) * B, :] = ch        # lane-dense interior store
        gates = gx
        for dy in range(k):                      # k row-shifted banded matmuls
            gates = gates + jnp.dot(
                hpad_s[dy * B:dy * B + HB, :].astype(jnp.bfloat16),
                whb_ref[dy], preferred_element_type=jnp.float32)
        ch, c = gate_math(gates, c)

    # Fused fc3 head on the final hidden state (rows ordered (y, b)).
    acc = jnp.zeros((B, G), jnp.float32)
    for y in range(H):
        acc = acc + jnp.dot(ch[y * B:(y + 1) * B, :].astype(jnp.bfloat16),
                            w3_ref[y], preferred_element_type=jnp.float32)
    out_ref[...] = acc + b3_ref[...]


def convlstm_head(gx_ld, whb, peep, w3p, b3, *, B, H, W, Ch, k, steps, G):
    p = (k - 1) // 2
    HB, D = H * B, W * Ch
    kernel = functools.partial(_convlstm_head_kernel, k=k, H=H, W=W, Ch=Ch,
                               B=B, steps=steps, p=p, G=G)
    return pl.pallas_call(
        kernel,
        grid=(1,),
        in_specs=[
            pl.BlockSpec((HB, 4 * D), lambda i: (0, 0)),        # gx (f32)
            pl.BlockSpec((k, D, 4 * D), lambda i: (0, 0, 0)),   # banded Wh (bf16)
            pl.BlockSpec((3, HB, D), lambda i: (0, 0, 0)),      # peepholes (f32)
            pl.BlockSpec((H, D, G), lambda i: (0, 0, 0)),       # permuted fc3 W (bf16)
            pl.BlockSpec((1, G), lambda i: (0, 0)),             # fc3 bias (f32)
        ],
        out_specs=pl.BlockSpec((B, G), lambda i: (0, 0)),
        out_shape=jax.ShapeDtypeStruct((B, G), jnp.float32),
        scratch_shapes=[pltpu.VMEM(((H + 2 * p) * B, D), jnp.float32)],
        compiler_params=pltpu.CompilerParams(
            dimension_semantics=("arbitrary",),
            vmem_limit_bytes=16 * 1024 * 1024),
    )(gx_ld, whb, peep, w3p, b3)


# ---------------------------------------------------------------------------
# Wrapper-side layout plumbing (all tiny, done once per forward in XLA)
# ---------------------------------------------------------------------------
def _banded_wh(wh, W, p):
    """wh: (4, Ch, Ch, k, k) -> (k, W*Ch, 4*W*Ch) banded hidden->gate weights.
    Zero 'same' padding along x is folded into the band (out-of-range taps are
    simply absent); zero padding along y is the kernel's row halo."""
    k = wh.shape[-1]
    Ch = wh.shape[1]
    sel = (jnp.arange(W)[:, None, None] ==
           jnp.arange(W)[None, None, :] + jnp.arange(k)[None, :, None] - p
           ).astype(wh.dtype)                                    # (xin, dx, xout)
    wh_t = jnp.transpose(wh, (3, 4, 2, 0, 1))                    # (dy, dx, ci, g, co)
    band = jnp.einsum("ado,ydigc->yaigoc", sel, wh_t)            # (dy,xin,ci,g,xout,co)
    return band.reshape(k, W * Ch, 4 * W * Ch)


def _im2col_nhwc(x, k):
    """(N, H, W, C) 'same' conv im2col -> (N*H*W, k*k*C), tap-major columns."""
    p = (k - 1) // 2
    N, H, W, C = x.shape
    xp = jnp.pad(x, ((0, 0), (p, p), (p, p), (0, 0)))
    cols = [xp[:, dy:dy + H, dx:dx + W, :].reshape(N * H * W, C)
            for dy in range(k) for dx in range(k)]
    return jnp.concatenate(cols, axis=-1)


@jax.jit
def convlstm_net_forward(x, params):
    """x: (B, T, 512, H, W) float32 (5-D after torch.squeeze in the reference)."""
    B, T, C, H0, W0 = x.shape
    PH, PW = 6, 10                               # AdaptiveAvgPool2d target
    Ch = params["wx"].shape[1]
    Cin = params["wx"].shape[2]
    k = params["wx"].shape[-1]
    G = params["w3"].shape[0]
    D = PW * Ch

    # Only frame T-1 of each batch reaches fc3; every other frame is dead
    # compute, so drop them before doing any work.
    x_last = x[:, -1]                                            # (B, 512, H0, W0)

    # conv1 is a 1x1 conv -> commutes exactly with average pooling; pool first
    # (in NCHW) and transpose the 4x-smaller pooled tensor.  Exact only when
    # H0 % 6 == 0 and W0 % 10 == 0.
    # TODO(synk): general (non-divisible) AdaptiveAvgPool2d((6,10)) not implemented.
    assert H0 % PH == 0 and W0 % PW == 0
    pooled = x_last.reshape(B, C, PH, H0 // PH, PW, W0 // PW).mean(axis=(3, 5))
    pooled = jnp.transpose(pooled, (0, 2, 3, 1)).reshape(B * PH * PW, C)
    w1 = params["w1"][:, :, 0, 0].T.astype(jnp.bfloat16)         # (512, 128)
    b1 = params["b1"].reshape(1, -1)
    xc = linear_pallas(pooled.astype(jnp.bfloat16), w1, b1)      # (B*60, 128) f32

    # Step-invariant ConvLSTM input contribution gx = im2col(x) @ Wx + b,
    # computed once and hoisted out of the recurrence.
    x_cols = _im2col_nhwc(xc.reshape(B, PH, PW, Cin), k).astype(jnp.bfloat16)
    wx_s = jnp.transpose(params["wx"], (3, 4, 2, 0, 1)).reshape(
        k * k * Cin, 4 * Ch).astype(jnp.bfloat16)
    bx = params["bx"].reshape(1, 4 * Ch)
    gx_std = linear_pallas(x_cols, wx_s, bx)                     # (B*60, 4*Ch) f32
    # Re-layout to the kernel's lane-dense, gate-major slab:
    # rows = (y, b), columns = gate*(PW*Ch) + x*Ch + c.
    gx_ld = jnp.transpose(gx_std.reshape(B, PH, PW, 4, Ch),
                          (1, 0, 3, 2, 4)).reshape(PH * B, 4 * D)

    # Banded hidden->gates weights, built once (the x-padding is in the band).
    whb = _banded_wh(params["wh"], PW, (k - 1) // 2).astype(jnp.bfloat16)

    def peep_ld(wp):     # (1, Ch, PH, PW) -> (PH*B, PW*Ch), rows (y, b)
        return jnp.repeat(jnp.transpose(wp[0], (1, 2, 0)).reshape(PH, D), B, axis=0)
    peep = jnp.stack([peep_ld(params["wci"]), peep_ld(params["wcf"]),
                      peep_ld(params["wco"])], axis=0)

    # fc3 weight permuted so the PyTorch NCHW .view flatten is free:
    # w3p[y, x*Ch + c, g] = W3[g, c*PH*PW + y*PW + x]
    w3p = jnp.transpose(params["w3"].reshape(G, Ch, PH, PW),
                        (2, 3, 1, 0)).reshape(PH, D, G).astype(jnp.bfloat16)
    b3 = params["b3"].reshape(1, G)

    return convlstm_head(gx_ld, whb, peep, w3p, b3,
                         B=B, H=PH, W=PW, Ch=Ch, k=k, steps=T, G=G)


# ---------------------------------------------------------------------------
# Parameter init (deterministic, synthetic; PyTorch-layout shapes)
# ---------------------------------------------------------------------------
def init_params(key, *, gridheight, gridwidth, pooled_hw=(6, 10),
                conv1_in=512, conv1_out=128, lstm_hidden=16, k=3):
    PH, PW = pooled_hw
    keys = jax.random.split(key, 10)
    w1 = jax.random.normal(keys[0], (conv1_out, conv1_in, 1, 1), jnp.float32) * 0.05
    b1 = jax.random.normal(keys[1], (conv1_out,), jnp.float32) * 0.05
    # ConvLSTM weights, PyTorch conv layout (out, in, kh, kw); gate order i,f,c,o.
    wx = jax.random.normal(keys[2], (4, lstm_hidden, conv1_out, k, k), jnp.float32) * 0.05
    wh = jax.random.normal(keys[3], (4, lstm_hidden, lstm_hidden, k, k), jnp.float32) * 0.05
    bx = jax.random.normal(keys[4], (4, lstm_hidden), jnp.float32) * 0.05
    # PyTorch's init_hidden() creates these as zeros; small nonzero values are
    # used here so the peephole code path is actually exercised by the check.
    wci = jax.random.normal(keys[5], (1, lstm_hidden, PH, PW), jnp.float32) * 0.05
    wcf = jax.random.normal(keys[6], (1, lstm_hidden, PH, PW), jnp.float32) * 0.05
    wco = jax.random.normal(keys[7], (1, lstm_hidden, PH, PW), jnp.float32) * 0.05
    G = gridheight * gridwidth
    w3 = jax.random.normal(keys[8], (G, lstm_hidden * PH * PW), jnp.float32) * 0.05
    b3 = jax.random.normal(keys[9], (G,), jnp.float32) * 0.05
    return dict(w1=w1, b1=b1, wx=wx, wh=wh, bx=bx,
                wci=wci, wcf=wcf, wco=wco, w3=w3, b3=b3)


# ---------------------------------------------------------------------------
# Plain-JAX reference (full B*T-frame computation, mirrors the module and the
# bf16-operand / f32-accumulate policy) -- independent of the fast-path tricks.
# ---------------------------------------------------------------------------
def _reference_forward(x, params):
    B, T, C, H, W = x.shape
    BT = B * T
    PH, PW = 6, 10
    Ch = params["wx"].shape[1]
    k = params["wx"].shape[-1]
    p = (k - 1) // 2

    xf = x.reshape(BT, C, H, W).transpose(0, 2, 3, 1)
    pooled = xf.reshape(BT, PH, H // PH, PW, W // PW, C).mean(axis=(2, 4))
    w1 = params["w1"][:, :, 0, 0].T
    xc = (jnp.dot(pooled.reshape(-1, C).astype(jnp.bfloat16),
                  w1.astype(jnp.bfloat16), preferred_element_type=jnp.float32)
          + params["b1"]).reshape(BT, PH, PW, -1)

    def conv_same(a, w_oihw):   # cross-correlation, zero "same" padding
        ap = jnp.pad(a, ((0, 0), (p, p), (p, p), (0, 0)))
        out = jnp.zeros(a.shape[:-1] + (w_oihw.shape[0],), jnp.float32)
        for dy in range(k):
            for dx in range(k):
                out = out + jnp.einsum(
                    "nhwc,oc->nhwo",
                    ap[:, dy:dy + PH, dx:dx + PW, :].astype(jnp.bfloat16),
                    w_oihw[:, :, dy, dx].astype(jnp.bfloat16),
                    preferred_element_type=jnp.float32)
        return out

    wci = jnp.transpose(params["wci"], (0, 2, 3, 1))
    wcf = jnp.transpose(params["wcf"], (0, 2, 3, 1))
    wco = jnp.transpose(params["wco"], (0, 2, 3, 1))
    wx, wh, bx = params["wx"], params["wh"], params["bx"]
    h = jnp.zeros((BT, PH, PW, Ch), jnp.float32)
    c = jnp.zeros_like(h)
    for _ in range(T):   # step = seqlen, the ConvLSTM input is the same each step
        gi = jax.nn.sigmoid(conv_same(xc, wx[0]) + bx[0] + conv_same(h, wh[0]) + c * wci)
        gf = jax.nn.sigmoid(conv_same(xc, wx[1]) + bx[1] + conv_same(h, wh[1]) + c * wcf)
        cn = gf * c + gi * jnp.tanh(conv_same(xc, wx[2]) + bx[2] + conv_same(h, wh[2]))
        go = jax.nn.sigmoid(conv_same(xc, wx[3]) + bx[3] + conv_same(h, wh[3]) + cn * wco)
        h = go * jnp.tanh(cn)
        c = cn

    feat = jnp.transpose(h, (0, 3, 1, 2)).reshape(B, T, Ch * PH * PW)[:, -1, :]
    w3 = params["w3"].T
    return (jnp.dot(feat.astype(jnp.bfloat16), w3.astype(jnp.bfloat16),
                    preferred_element_type=jnp.float32) + params["b3"])


if __name__ == "__main__":
    B, T = 2, 4                 # batch, seqlen (= ConvLSTM step count)
    C, H, W = 512, 12, 20       # raw frame features (pooled to 6x10)
    gridheight, gridwidth = 8, 16

    key = jax.random.PRNGKey(0)
    kx, kp = jax.random.split(key)
    x = jax.random.normal(kx, (B, T, C, H, W), jnp.float32)
    params = init_params(kp, gridheight=gridheight, gridwidth=gridwidth)

    out = convlstm_net_forward(x, params)
    out = jax.block_until_ready(out)

    assert out.shape == (B, gridheight * gridwidth)
    assert bool(jnp.all(jnp.isfinite(out)))

    # Numerical check against a plain-JAX reference (same bf16/f32 policy),
    # which runs the full B*T-frame recurrence (so it also validates the
    # last-frame-only fast path).
    ref = jax.block_until_ready(jax.jit(_reference_forward)(x, params))
    assert jnp.allclose(out, ref, rtol=2e-2, atol=2e-2), (
        f"max|diff|={float(jnp.max(jnp.abs(out - ref)))}")

    print("KERNEL_OK")
</pallas_src>

<mosaic_0001>
module attributes {stable_mosaic.version = 11 : i64} {
  func.func @_matmul_bias_kernel(%arg0: i32, %arg1: memref<120x512xbf16, #tpu.memory_space<vmem>>, %arg2: memref<512x128xbf16, #tpu.memory_space<vmem>>, %arg3: memref<1x128xf32, #tpu.memory_space<vmem>>, %arg4: memref<120x128xf32, #tpu.memory_space<vmem>>) attributes {dimension_semantics = [#tpu.dimension_semantics<arbitrary>], iteration_bounds = array<i64: 1>, scalar_prefetch = 0 : i64, scratch_operands = 0 : i64, tpu.core_type = #tpu.core_type<tc>, window_params = [{pipeline_mode = #tpu.pipeline_mode<synchronous>, transform_indices = @transform_0, window_bounds = array<i64: 120, 512>}, {pipeline_mode = #tpu.pipeline_mode<synchronous>, transform_indices = @transform_1, window_bounds = array<i64: 512, 128>}, {pipeline_mode = #tpu.pipeline_mode<synchronous>, transform_indices = @transform_2, window_bounds = array<i64: 1, 128>}, {pipeline_mode = #tpu.pipeline_mode<synchronous>, transform_indices = @transform_3, window_bounds = array<i64: 120, 128>}]} {
    %c0 = arith.constant 0 : index
    %c0_0 = arith.constant 0 : index
    %0 = vector.load %arg1[%c0, %c0_0] : memref<120x512xbf16, #tpu.memory_space<vmem>>, vector<120x512xbf16>
    %c0_1 = arith.constant 0 : index
    %c0_2 = arith.constant 0 : index
    %1 = vector.load %arg2[%c0_1, %c0_2] : memref<512x128xbf16, #tpu.memory_space<vmem>>, vector<512x128xbf16>
    %cst = arith.constant dense<0.000000e+00> : vector<120x128xf32>
    %2 = tpu.matmul %0, %1, %cst {dimension_numbers = #tpu.dot_dimension_numbers<[1], [0], [0], [1], [0, 0, 1, 1], [], []>} : vector<120x512xbf16>, vector<512x128xbf16>, vector<120x128xf32> -> vector<120x128xf32>
    %c0_3 = arith.constant 0 : index
    %c0_4 = arith.constant 0 : index
    %3 = vector.load %arg3[%c0_3, %c0_4] : memref<1x128xf32, #tpu.memory_space<vmem>>, vector<1x128xf32>
    %4 = vector.broadcast %3 : vector<1x128xf32> to vector<120x128xf32>
    %5 = arith.addf %2, %4 : vector<120x128xf32>
    %c0_5 = arith.constant 0 : index
    %c0_6 = arith.constant 0 : index
    %6 = vector.load %arg4[%c0_5, %c0_6] : memref<120x128xf32, #tpu.memory_space<vmem>>, vector<120x128xf32>
    tpu.vector_store %arg4[%c0_5, %c0_6], %5 {strides = array<i32>} : memref<120x128xf32, #tpu.memory_space<vmem>>, vector<120x128xf32>,
    return
  }
  func.func @transform_0(%arg0: i32) -> (i32, i32) {
    %c0_i32 = arith.constant 0 : i32
    %c0_i32_0 = arith.constant 0 : i32
    %c0_i32_1 = arith.constant 0 : i32
    return %c0_i32, %c0_i32_0 : i32, i32
  }
  func.func @transform_1(%arg0: i32) -> (i32, i32) {
    %c0_i32 = arith.constant 0 : i32
    %c0_i32_0 = arith.constant 0 : i32
    %c0_i32_1 = arith.constant 0 : i32
    return %c0_i32, %c0_i32_0 : i32, i32
  }
  func.func @transform_2(%arg0: i32) -> (i32, i32) {
    %c0_i32 = arith.constant 0 : i32
    %c0_i32_0 = arith.constant 0 : i32
    %c0_i32_1 = arith.constant 0 : i32
    return %c0_i32, %c0_i32_0 : i32, i32
  }
  func.func @transform_3(%arg0: i32) -> (i32, i32) {
    %c0_i32 = arith.constant 0 : i32
    %c0_i32_0 = arith.constant 0 : i32
    %c0_i32_1 = arith.constant 0 : i32
    return %c0_i32, %c0_i32_0 : i32, i32
  }
}

module attributes {stable_mosaic.version = 11 : i64} {
  func.func @_matmul_bias_kernel(%arg0: i32, %arg1: memref<120x1152xbf16, #tpu.memory_space<vmem>>, %arg2: memref<1152x64xbf16, #tpu.memory_space<vmem>>, %arg3: memref<1x64xf32, #tpu.memory_space<vmem>>, %arg4: memref<120x64xf32, #tpu.memory_space<vmem>>) attributes {dimension_semantics = [#tpu.dimension_semantics<arbitrary>], iteration_bounds = array<i64: 1>, scalar_prefetch = 0 : i64, scratch_operands = 0 : i64, tpu.core_type = #tpu.core_type<tc>, window_params = [{pipeline_mode = #tpu.pipeline_mode<synchronous>, transform_indices = @transform_0, window_bounds = array<i64: 120, 1152>}, {pipeline_mode = #tpu.pipeline_mode<synchronous>, transform_indices = @transform_1, window_bounds = array<i64: 1152, 64>}, {pipeline_mode = #tpu.pipeline_mode<synchronous>, transform_indices = @transform_2, window_bounds = array<i64: 1, 64>}, {pipeline_mode = #tpu.pipeline_mode<synchronous>, transform_indices = @transform_3, window_bounds = array<i64: 120, 64>}]} {
    %c0 = arith.constant 0 : index
    %c0_0 = arith.constant 0 : index
    %0 = vector.load %arg1[%c0, %c0_0] : memref<120x1152xbf16, #tpu.memory_space<vmem>>, vector<120x1152xbf16>
    %c0_1 = arith.constant 0 : index
    %c0_2 = arith.constant 0 : index
    %1 = vector.load %arg2[%c0_1, %c0_2] : memref<1152x64xbf16, #tpu.memory_space<vmem>>, vector<1152x64xbf16>
    %cst = arith.constant dense<0.000000e+00> : vector<120x64xf32>
    %2 = tpu.matmul %0, %1, %cst {dimension_numbers = #tpu.dot_dimension_numbers<[1], [0], [0], [1], [0, 0, 1, 1], [], []>} : vector<120x1152xbf16>, vector<1152x64xbf16>, vector<120x64xf32> -> vector<120x64xf32>
    %c0_3 = arith.constant 0 : index
    %c0_4 = arith.constant 0 : index
    %3 = vector.load %arg3[%c0_3, %c0_4] : memref<1x64xf32, #tpu.memory_space<vmem>>, vector<1x64xf32>
    %4 = vector.broadcast %3 : vector<1x64xf32> to vector<120x64xf32>
    %5 = arith.addf %2, %4 : vector<120x64xf32>
    %c0_5 = arith.constant 0 : index
    %c0_6 = arith.constant 0 : index
    %6 = vector.load %arg4[%c0_5, %c0_6] : memref<120x64xf32, #tpu.memory_space<vmem>>, vector<120x64xf32>
    tpu.vector_store %arg4[%c0_5, %c0_6], %5 {strides = array<i32>} : memref<120x64xf32, #tpu.memory_space<vmem>>, vector<120x64xf32>,
    return
  }
  func.func @transform_0(%arg0: i32) -> (i32, i32) {
    %c0_i32 = arith.constant 0 : i32
    %c0_i32_0 = arith.constant 0 : i32
    %c0_i32_1 = arith.constant 0 : i32
    return %c0_i32, %c0_i32_0 : i32, i32
  }
  func.func @transform_1(%arg0: i32) -> (i32, i32) {
    %c0_i32 = arith.constant 0 : i32
    %c0_i32_0 = arith.constant 0 : i32
    %c0_i32_1 = arith.constant 0 : i32
    return %c0_i32, %c0_i32_0 : i32, i32
  }
  func.func @transform_2(%arg0: i32) -> (i32, i32) {
    %c0_i32 = arith.constant 0 : i32
    %c0_i32_0 = arith.constant 0 : i32
    %c0_i32_1 = arith.constant 0 : i32
    return %c0_i32, %c0_i32_0 : i32, i32
  }
  func.func @transform_3(%arg0: i32) -> (i32, i32) {
    %c0_i32 = arith.constant 0 : i32
    %c0_i32_0 = arith.constant 0 : i32
    %c0_i32_1 = arith.constant 0 : i32
    return %c0_i32, %c0_i32_0 : i32, i32
  }
}

module attributes {stable_mosaic.version = 11 : i64} {
  func.func @_convlstm_head_kernel(%arg0: i32, %arg1: memref<12x640xf32, #tpu.memory_space<vmem>>, %arg2: memref<3x160x640xbf16, #tpu.memory_space<vmem>>, %arg3: memref<3x12x160xf32, #tpu.memory_space<vmem>>, %arg4: memref<6x160x128xbf16, #tpu.memory_space<vmem>>, %arg5: memref<1x128xf32, #tpu.memory_space<vmem>>, %arg6: memref<2x128xf32, #tpu.memory_space<vmem>>, %arg7: memref<16x160xf32, #tpu.memory_space<vmem>>) attributes {dimension_semantics = [#tpu.dimension_semantics<arbitrary>], iteration_bounds = array<i64: 1>, scalar_prefetch = 0 : i64, scratch_operands = 1 : i64, tpu.core_type = #tpu.core_type<tc>, window_params = [{pipeline_mode = #tpu.pipeline_mode<synchronous>, transform_indices = @transform_0, window_bounds = array<i64: 12, 640>}, {pipeline_mode = #tpu.pipeline_mode<synchronous>, transform_indices = @transform_1, window_bounds = array<i64: 3, 160, 640>}, {pipeline_mode = #tpu.pipeline_mode<synchronous>, transform_indices = @transform_2, window_bounds = array<i64: 3, 12, 160>}, {pipeline_mode = #tpu.pipeline_mode<synchronous>, transform_indices = @transform_3, window_bounds = array<i64: 6, 160, 128>}, {pipeline_mode = #tpu.pipeline_mode<synchronous>, transform_indices = @transform_4, window_bounds = array<i64: 1, 128>}, {pipeline_mode = #tpu.pipeline_mode<synchronous>, transform_indices = @transform_5, window_bounds = array<i64: 2, 128>}]} {
    %c0 = arith.constant 0 : index
    %c0_0 = arith.constant 0 : index
    %c0_1 = arith.constant 0 : index
    %0 = vector.load %arg3[%c0, %c0_0, %c0_1] : memref<3x12x160xf32, #tpu.memory_space<vmem>>, vector<1x12x160xf32>
    %1 = vector.shape_cast %0 : vector<1x12x160xf32> to vector<12x160xf32>
    %c1 = arith.constant 1 : index
    %c0_2 = arith.constant 0 : index
    %c0_3 = arith.constant 0 : index
    %2 = vector.load %arg3[%c1, %c0_2, %c0_3] : memref<3x12x160xf32, #tpu.memory_space<vmem>>, vector<1x12x160xf32>
    %3 = vector.shape_cast %2 : vector<1x12x160xf32> to vector<12x160xf32>
    %c2 = arith.constant 2 : index
    %c0_4 = arith.constant 0 : index
    %c0_5 = arith.constant 0 : index
    %4 = vector.load %arg3[%c2, %c0_4, %c0_5] : memref<3x12x160xf32, #tpu.memory_space<vmem>>, vector<1x12x160xf32>
    %5 = vector.shape_cast %4 : vector<1x12x160xf32> to vector<12x160xf32>
    %c0_6 = arith.constant 0 : index
    %c0_7 = arith.constant 0 : index
    %6 = vector.load %arg1[%c0_6, %c0_7] : memref<12x640xf32, #tpu.memory_space<vmem>>, vector<12x640xf32>
    %cst = arith.constant 0.000000e+00 : f32
    %7 = vector.broadcast %cst : f32 to vector<12x160xf32>
    %8 = vector.extract_strided_slice %6 {offsets = [0, 0], sizes = [12, 160], strides = [1, 1]} : vector<12x640xf32> to vector<12x160xf32>
    %9 = arith.mulf %7, %1 : vector<12x160xf32>
    %10 = arith.addf %8, %9 : vector<12x160xf32>
    %11 = arith.negf %10 : vector<12x160xf32>
    %12 = math.exp %11 : vector<12x160xf32>
    %cst_8 = arith.constant 1.000000e+00 : f32
    %13 = vector.broadcast %cst_8 : f32 to vector<12x160xf32>
    %14 = arith.addf %13, %12 : vector<12x160xf32>
    %15 = arith.divf %13, %14 : vector<12x160xf32>
    %16 = vector.extract_strided_slice %6 {offsets = [0, 160], sizes = [12, 160], strides = [1, 1]} : vector<12x640xf32> to vector<12x160xf32>
    %17 = arith.mulf %7, %3 : vector<12x160xf32>
    %18 = arith.addf %16, %17 : vector<12x160xf32>
    %19 = arith.negf %18 : vector<12x160xf32>
    %20 = math.exp %19 : vector<12x160xf32>
    %cst_9 = arith.constant 1.000000e+00 : f32
    %21 = vector.broadcast %cst_9 : f32 to vector<12x160xf32>
    %22 = arith.addf %21, %20 : vector<12x160xf32>
    %23 = arith.divf %21, %22 : vector<12x160xf32>
    %24 = arith.mulf %23, %7 : vector<12x160xf32>
    %25 = vector.extract_strided_slice %6 {offsets = [0, 320], sizes = [12, 160], strides = [1, 1]} : vector<12x640xf32> to vector<12x160xf32>
    %26 = math.tanh %25 : vector<12x160xf32>
    %27 = arith.mulf %15, %26 : vector<12x160xf32>
    %28 = arith.addf %24, %27 : vector<12x160xf32>
    %29 = vector.extract_strided_slice %6 {offsets = [0, 480], sizes = [12, 160], strides = [1, 1]} : vector<12x640xf32> to vector<12x160xf32>
    %30 = arith.mulf %28, %5 : vector<12x160xf32>
    %31 = arith.addf %29, %30 : vector<12x160xf32>
    %32 = arith.negf %31 : vector<12x160xf32>
    %33 = math.exp %32 : vector<12x160xf32>
    %cst_10 = arith.constant 1.000000e+00 : f32
    %34 = vector.broadcast %cst_10 : f32 to vector<12x160xf32>
    %35 = arith.addf %34, %33 : vector<12x160xf32>
    %36 = arith.divf %34, %35 : vector<12x160xf32>
    %37 = math.tanh %28 : vector<12x160xf32>
    %38 = arith.mulf %36, %37 : vector<12x160xf32>
    %cst_11 = arith.constant 0.000000e+00 : f32
    %39 = vector.broadcast %cst_11 : f32 to vector<16x160xf32>
    %c0_12 = arith.constant 0 : index
    %c0_13 = arith.constant 0 : index
    %40 = vector.load %arg7[%c0_12, %c0_13] : memref<16x160xf32, #tpu.memory_space<vmem>>, vector<16x160xf32>
    tpu.vector_store %arg7[%c0_12, %c0_13], %39 {strides = array<i32>} : memref<16x160xf32, #tpu.memory_space<vmem>>, vector<16x160xf32>,
    %c2_14 = arith.constant 2 : index
    %c0_15 = arith.constant 0 : index
    %41 = vector.load %arg7[%c2_14, %c0_15] : memref<16x160xf32, #tpu.memory_space<vmem>>, vector<12x160xf32>
    tpu.vector_store %arg7[%c2_14, %c0_15], %38 {strides = array<i32>} : memref<16x160xf32, #tpu.memory_space<vmem>>, vector<12x160xf32>,
    %c0_16 = arith.constant 0 : index
    %c0_17 = arith.constant 0 : index
    %42 = vector.load %arg7[%c0_16, %c0_17] : memref<16x160xf32, #tpu.memory_space<vmem>>, vector<12x160xf32>
    %43 = arith.truncf %42 : vector<12x160xf32> to vector<12x160xbf16>
    %c0_18 = arith.constant 0 : index
    %c0_19 = arith.constant 0 : index
    %c0_20 = arith.constant 0 : index
    %44 = vector.load %arg2[%c0_18, %c0_19, %c0_20] : memref<3x160x640xbf16, #tpu.memory_space<vmem>>, vector<1x160x640xbf16>
    %45 = vector.shape_cast %44 : vector<1x160x640xbf16> to vector<160x640xbf16>
    %cst_21 = arith.constant dense<0.000000e+00> : vector<12x640xf32>
    %46 = tpu.matmul %43, %45, %cst_21 {dimension_numbers = #tpu.dot_dimension_numbers<[1], [0], [0], [1], [0, 0, 1, 1], [], []>} : vector<12x160xbf16>, vector<160x640xbf16>, vector<12x640xf32> -> vector<12x640xf32>
    %47 = arith.addf %6, %46 : vector<12x640xf32>
    %c2_22 = arith.constant 2 : index
    %c0_23 = arith.constant 0 : index
    %48 = vector.load %arg7[%c2_22, %c0_23] : memref<16x160xf32, #tpu.memory_space<vmem>>, vector<12x160xf32>
    %49 = arith.truncf %48 : vector<12x160xf32> to vector<12x160xbf16>
    %c1_24 = arith.constant 1 : index
    %c0_25 = arith.constant 0 : index
    %c0_26 = arith.constant 0 : index
    %50 = vector.load %arg2[%c1_24, %c0_25, %c0_26] : memref<3x160x640xbf16, #tpu.memory_space<vmem>>, vector<1x160x640xbf16>
    %51 = vector.shape_cast %50 : vector<1x160x640xbf16> to vector<160x640xbf16>
    %cst_27 = arith.constant dense<0.000000e+00> : vector<12x640xf32>
    %52 = tpu.matmul %49, %51, %cst_27 {dimension_numbers = #tpu.dot_dimension_numbers<[1], [0], [0], [1], [0, 0, 1, 1], [], []>} : vector<12x160xbf16>, vector<160x640xbf16>, vector<12x640xf32> -> vector<12x640xf32>
    %53 = arith.addf %47, %52 : vector<12x640xf32>
    %c4 = arith.constant 4 : index
    %c0_28 = arith.constant 0 : index
    %54 = vector.load %arg7[%c4, %c0_28] : memref<16x160xf32, #tpu.memory_space<vmem>>, vector<12x160xf32>
    %55 = arith.truncf %54 : vector<12x160xf32> to vector<12x160xbf16>
    %c2_29 = arith.constant 2 : index
    %c0_30 = arith.constant 0 : index
    %c0_31 = arith.constant 0 : index
    %56 = vector.load %arg2[%c2_29, %c0_30, %c0_31] : memref<3x160x640xbf16, #tpu.memory_space<vmem>>, vector<1x160x640xbf16>
    %57 = vector.shape_cast %56 : vector<1x160x640xbf16> to vector<160x640xbf16>
    %cst_32 = arith.constant dense<0.000000e+00> : vector<12x640xf32>
    %58 = tpu.matmul %55, %57, %cst_32 {dimension_numbers = #tpu.dot_dimension_numbers<[1], [0], [0], [1], [0, 0, 1, 1], [], []>} : vector<12x160xbf16>, vector<160x640xbf16>, vector<12x640xf32> -> vector<12x640xf32>
    %59 = arith.addf %53, %58 : vector<12x640xf32>
    %60 = vector.extract_strided_slice %59 {offsets = [0, 0], sizes = [12, 160], strides = [1, 1]} : vector<12x640xf32> to vector<12x160xf32>
    %61 = arith.mulf %28, %1 : vector<12x160xf32>
    %62 = arith.addf %60, %61 : vector<12x160xf32>
    %63 = arith.negf %62 : vector<12x160xf32>
    %64 = math.exp %63 : vector<12x160xf32>
    %cst_33 = arith.constant 1.000000e+00 : f32
    %65 = vector.broadcast %cst_33 : f32 to vector<12x160xf32>
    %66 = arith.addf %65, %64 : vector<12x160xf32>
    %67 = arith.divf %65, %66 : vector<12x160xf32>
    %68 = vector.extract_strided_slice %59 {offsets = [0, 160], sizes = [12, 160], strides = [1, 1]} : vector<12x640xf32> to vector<12x160xf32>
    %69 = arith.mulf %28, %3 : vector<12x160xf32>
    %70 = arith.addf %68, %69 : vector<12x160xf32>
    %71 = arith.negf %70 : vector<12x160xf32>
    %72 = math.exp %71 : vector<12x160xf32>
    %cst_34 = arith.constant 1.000000e+00 : f32
    %73 = vector.broadcast %cst_34 : f32 to vector<12x160xf32>
    %74 = arith.addf %73, %72 : vector<12x160xf32>
    %75 = arith.divf %73, %74 : vector<12x160xf32>
    %76 = arith.mulf %75, %28 : vector<12x160xf32>
    %77 = vector.extract_strided_slice %59 {offsets = [0, 320], sizes = [12, 160], strides = [1, 1]} : vector<12x640xf32> to vector<12x160xf32>
    %78 = math.tanh %77 : vector<12x160xf32>
    %79 = arith.mulf %67, %78 : vector<12x160xf32>
    %80 = arith.addf %76, %79 : vector<12x160xf32>
    %81 = vector.extract_strided_slice %59 {offsets = [0, 480], sizes = [12, 160], strides = [1, 1]} : vector<12x640xf32> to vector<12x160xf32>
    %82 = arith.mulf %80, %5 : vector<12x160xf32>
    %83 = arith.addf %81, %82 : vector<12x160xf32>
    %84 = arith.negf %83 : vector<12x160xf32>
    %85 = math.exp %84 : vector<12x160xf32>
    %cst_35 = arith.constant 1.000000e+00 : f32
    %86 = vector.broadcast %cst_35 : f32 to vector<12x160xf32>
    %87 = arith.addf %86, %85 : vector<12x160xf32>
    %88 = arith.divf %86, %87 : vector<12x160xf32>
    %89 = math.tanh %80 : vector<12x160xf32>
    %90 = arith.mulf %88, %89 : vector<12x160xf32>
    %c2_36 = arith.constant 2 : index
    %c0_37 = arith.constant 0 : index
    %91 = vector.load %arg7[%c2_36, %c0_37] : memref<16x160xf32, #tpu.memory_space<vmem>>, vector<12x160xf32>
    tpu.vector_store %arg7[%c2_36, %c0_37], %90 {strides = array<i32>} : memref<16x160xf32, #tpu.memory_space<vmem>>, vector<12x160xf32>,
    %c0_38 = arith.constant 0 : index
    %c0_39 = arith.constant 0 : index
    %92 = vector.load %arg7[%c0_38, %c0_39] : memref<16x160xf32, #tpu.memory_space<vmem>>, vector<12x160xf32>
    %93 = arith.truncf %92 : vector<12x160xf32> to vector<12x160xbf16>
    %c0_40 = arith.constant 0 : index
    %c0_41 = arith.constant 0 : index
    %c0_42 = arith.constant 0 : index
    %94 = vector.load %arg2[%c0_40, %c0_41, %c0_42] : memref<3x160x640xbf16, #tpu.memory_space<vmem>>, vector<1x160x640xbf16>
    %95 = vector.shape_cast %94 : vector<1x160x640xbf16> to vector<160x640xbf16>
    %cst_43 = arith.constant dense<0.000000e+00> : vector<12x640xf32>
    %96 = tpu.matmul %93, %95, %cst_43 {dimension_numbers = #tpu.dot_dimension_numbers<[1], [0], [0], [1], [0, 0, 1, 1], [], []>} : vector<12x160xbf16>, vector<160x640xbf16>, vector<12x640xf32> -> vector<12x640xf32>
    %97 = arith.addf %6, %96 : vector<12x640xf32>
    %c2_44 = arith.constant 2 : index
    %c0_45 = arith.constant 0 : index
    %98 = vector.load %arg7[%c2_44, %c0_45] : memref<16x160xf32, #tpu.memory_space<vmem>>, vector<12x160xf32>
    %99 = arith.truncf %98 : vector<12x160xf32> to vector<12x160xbf16>
    %c1_46 = arith.constant 1 : index
    %c0_47 = arith.constant 0 : index
    %c0_48 = arith.constant 0 : index
    %100 = vector.load %arg2[%c1_46, %c0_47, %c0_48] : memref<3x160x640xbf16, #tpu.memory_space<vmem>>, vector<1x160x640xbf16>
    %101 = vector.shape_cast %100 : vector<1x160x640xbf16> to vector<160x640xbf16>
    %cst_49 = arith.constant dense<0.000000e+00> : vector<12x640xf32>
    %102 = tpu.matmul %99, %101, %cst_49 {dimension_numbers = #tpu.dot_dimension_numbers<[1], [0], [0], [1], [0, 0, 1, 1], [], []>} : vector<12x160xbf16>, vector<160x640xbf16>, vector<12x640xf32> -> vector<12x640xf32>
    %103 = arith.addf %97, %102 : vector<12x640xf32>
    %c4_50 = arith.constant 4 : index
    %c0_51 = arith.constant 0 : index
    %104 = vector.load %arg7[%c4_50, %c0_51] : memref<16x160xf32, #tpu.memory_space<vmem>>, vector<12x160xf32>
    %105 = arith.truncf %104 : vector<12x160xf32> to vector<12x160xbf16>
    %c2_52 = arith.constant 2 : index
    %c0_53 = arith.constant 0 : index
    %c0_54 = arith.constant 0 : index
    %106 = vector.load %arg2[%c2_52, %c0_53, %c0_54] : memref<3x160x640xbf16, #tpu.memory_space<vmem>>, vector<1x160x640xbf16>
    %107 = vector.shape_cast %106 : vector<1x160x640xbf16> to vector<160x640xbf16>
    %cst_55 = arith.constant dense<0.000000e+00> : vector<12x640xf32>
    %108 = tpu.matmul %105, %107, %cst_55 {dimension_numbers = #tpu.dot_dimension_numbers<[1], [0], [0], [1], [0, 0, 1, 1], [], []>} : vector<12x160xbf16>, vector<160x640xbf16>, vector<12x640xf32> -> vector<12x640xf32>
    %109 = arith.addf %103, %108 : vector<12x640xf32>
    %110 = vector.extract_strided_slice %109 {offsets = [0, 0], sizes = [12, 160], strides = [1, 1]} : vector<12x640xf32> to vector<12x160xf32>
    %111 = arith.mulf %80, %1 : vector<12x160xf32>
    %112 = arith.addf %110, %111 : vector<12x160xf32>
    %113 = arith.negf %112 : vector<12x160xf32>
    %114 = math.exp %113 : vector<12x160xf32>
    %cst_56 = arith.constant 1.000000e+00 : f32
    %115 = vector.broadcast %cst_56 : f32 to vector<12x160xf32>
    %116 = arith.addf %115, %114 : vector<12x160xf32>
    %117 = arith.divf %115, %116 : vector<12x160xf32>
    %118 = vector.extract_strided_slice %109 {offsets = [0, 160], sizes = [12, 160], strides = [1, 1]} : vector<12x640xf32> to vector<12x160xf32>
    %119 = arith.mulf %80, %3 : vector<12x160xf32>
    %120 = arith.addf %118, %119 : vector<12x160xf32>
    %121 = arith.negf %120 : vector<12x160xf32>
    %122 = math.exp %121 : vector<12x160xf32>
    %cst_57 = arith.constant 1.000000e+00 : f32
    %123 = vector.broadcast %cst_57 : f32 to vector<12x160xf32>
    %124 = arith.addf %123, %122 : vector<12x160xf32>
    %125 = arith.divf %123, %124 : vector<12x160xf32>
    %126 = arith.mulf %125, %80 : vector<12x160xf32>
    %127 = vector.extract_strided_slice %109 {offsets = [0, 320], sizes = [12, 160], strides = [1, 1]} : vector<12x640xf32> to vector<12x160xf32>
    %128 = math.tanh %127 : vector<12x160xf32>
    %129 = arith.mulf %117, %128 : vector<12x160xf32>
    %130 = arith.addf %126, %129 : vector<12x160xf32>
    %131 = vector.extract_strided_slice %109 {offsets = [0, 480], sizes = [12, 160], strides = [1, 1]} : vector<12x640xf32> to vector<12x160xf32>
    %132 = arith.mulf %130, %5 : vector<12x160xf32>
    %133 = arith.addf %131, %132 : vector<12x160xf32>
    %134 = arith.negf %133 : vector<12x160xf32>
    %135 = math.exp %134 : vector<12x160xf32>
    %cst_58 = arith.constant 1.000000e+00 : f32
    %136 = vector.broadcast %cst_58 : f32 to vector<12x160xf32>
    %137 = arith.addf %136, %135 : vector<12x160xf32>
    %138 = arith.divf %136, %137 : vector<12x160xf32>
    %139 = math.tanh %130 : vector<12x160xf32>
    %140 = arith.mulf %138, %139 : vector<12x160xf32>
    %c2_59 = arith.constant 2 : index
    %c0_60 = arith.constant 0 : index
    %141 = vector.load %arg7[%c2_59, %c0_60] : memref<16x160xf32, #tpu.memory_space<vmem>>, vector<12x160xf32>
    tpu.vector_store %arg7[%c2_59, %c0_60], %140 {strides = array<i32>} : memref<16x160xf32, #tpu.memory_space<vmem>>, vector<12x160xf32>,
    %c0_61 = arith.constant 0 : index
    %c0_62 = arith.constant 0 : index
    %142 = vector.load %arg7[%c0_61, %c0_62] : memref<16x160xf32, #tpu.memory_space<vmem>>, vector<12x160xf32>
    %143 = arith.truncf %142 : vector<12x160xf32> to vector<12x160xbf16>
    %c0_63 = arith.constant 0 : index
    %c0_64 = arith.constant 0 : index
    %c0_65 = arith.constant 0 : index
    %144 = vector.load %arg2[%c0_63, %c0_64, %c0_65] : memref<3x160x640xbf16, #tpu.memory_space<vmem>>, vector<1x160x640xbf16>
    %145 = vector.shape_cast %144 : vector<1x160x640xbf16> to vector<160x640xbf16>
    %cst_66 = arith.constant dense<0.000000e+00> : vector<12x640xf32>
    %146 = tpu.matmul %143, %145, %cst_66 {dimension_numbers = #tpu.dot_dimension_numbers<[1], [0], [0], [1], [0, 0, 1, 1], [], []>} : vector<12x160xbf16>, vector<160x640xbf16>, vector<12x640xf32> -> vector<12x640xf32>
    %147 = arith.addf %6, %146 : vector<12x640xf32>
    %c2_67 = arith.constant 2 : index
    %c0_68 = arith.constant 0 : index
    %148 = vector.load %arg7[%c2_67, %c0_68] : memref<16x160xf32, #tpu.memory_space<vmem>>, vector<12x160xf32>
    %149 = arith.truncf %148 : vector<12x160xf32> to vector<12x160xbf16>
    %c1_69 = arith.constant 1 : index
    %c0_70 = arith.constant 0 : index
    %c0_71 = arith.constant 0 : index
    %150 = vector.load %arg2[%c1_69, %c0_70, %c0_71] : memref<3x160x640xbf16, #tpu.memory_space<vmem>>, vector<1x160x640xbf16>
    %151 = vector.shape_cast %150 : vector<1x160x640xbf16> to vector<160x640xbf16>
    %cst_72 = arith.constant dense<0.000000e+00> : vector<12x640xf32>
    %152 = tpu.matmul %149, %151, %cst_72 {dimension_numbers = #tpu.dot_dimension_numbers<[1], [0], [0], [1], [0, 0, 1, 1], [], []>} : vector<12x160xbf16>, vector<160x640xbf16>, vector<12x640xf32> -> vector<12x640xf32>
    %153 = arith.addf %147, %152 : vector<12x640xf32>
    %c4_73 = arith.constant 4 : index
    %c0_74 = arith.constant 0 : index
    %154 = vector.load %arg7[%c4_73, %c0_74] : memref<16x160xf32, #tpu.memory_space<vmem>>, vector<12x160xf32>
    %155 = arith.truncf %154 : vector<12x160xf32> to vector<12x160xbf16>
    %c2_75 = arith.constant 2 : index
    %c0_76 = arith.constant 0 : index
    %c0_77 = arith.constant 0 : index
    %156 = vector.load %arg2[%c2_75, %c0_76, %c0_77] : memref<3x160x640xbf16, #tpu.memory_space<vmem>>, vector<1x160x640xbf16>
    %157 = vector.shape_cast %156 : vector<1x160x640xbf16> to vector<160x640xbf16>
    %cst_78 = arith.constant dense<0.000000e+00> : vector<12x640xf32>
    %158 = tpu.matmul %155, %157, %cst_78 {dimension_numbers = #tpu.dot_dimension_numbers<[1], [0], [0], [1], [0, 0, 1, 1], [], []>} : vector<12x160xbf16>, vector<160x640xbf16>, vector<12x640xf32> -> vector<12x640xf32>
    %159 = arith.addf %153, %158 : vector<12x640xf32>
    %160 = vector.extract_strided_slice %159 {offsets = [0, 0], sizes = [12, 160], strides = [1, 1]} : vector<12x640xf32> to vector<12x160xf32>
    %161 = arith.mulf %130, %1 : vector<12x160xf32>
    %162 = arith.addf %160, %161 : vector<12x160xf32>
    %163 = arith.negf %162 : vector<12x160xf32>
    %164 = math.exp %163 : vector<12x160xf32>
    %cst_79 = arith.constant 1.000000e+00 : f32
    %165 = vector.broadcast %cst_79 : f32 to vector<12x160xf32>
    %166 = arith.addf %165, %164 : vector<12x160xf32>
    %167 = arith.divf %165, %166 : vector<12x160xf32>
    %168 = vector.extract_strided_slice %159 {offsets = [0, 160], sizes = [12, 160], strides = [1, 1]} : vector<12x640xf32> to vector<12x160xf32>
    %169 = arith.mulf %130, %3 : vector<12x160xf32>
    %170 = arith.addf %168, %169 : vector<12x160xf32>
    %171 = arith.negf %170 : vector<12x160xf32>
    %172 = math.exp %171 : vector<12x160xf32>
    %cst_80 = arith.constant 1.000000e+00 : f32
    %173 = vector.broadcast %cst_80 : f32 to vector<12x160xf32>
    %174 = arith.addf %173, %172 : vector<12x160xf32>
    %175 = arith.divf %173, %174 : vector<12x160xf32>
    %176 = arith.mulf %175, %130 : vector<12x160xf32>
    %177 = vector.extract_strided_slice %159 {offsets = [0, 320], sizes = [12, 160], strides = [1, 1]} : vector<12x640xf32> to vector<12x160xf32>
    %178 = math.tanh %177 : vector<12x160xf32>
    %179 = arith.mulf %167, %178 : vector<12x160xf32>
    %180 = arith.addf %176, %179 : vector<12x160xf32>
    %181 = vector.extract_strided_slice %159 {offsets = [0, 480], sizes = [12, 160], strides = [1, 1]} : vector<12x640xf32> to vector<12x160xf32>
    %182 = arith.mulf %180, %5 : vector<12x160xf32>
    %183 = arith.addf %181, %182 : vector<12x160xf32>
    %184 = arith.negf %183 : vector<12x160xf32>
    %185 = math.exp %184 : vector<12x160xf32>
    %cst_81 = arith.constant 1.000000e+00 : f32
    %186 = vector.broadcast %cst_81 : f32 to vector<12x160xf32>
    %187 = arith.addf %186, %185 : vector<12x160xf32>
    %188 = arith.divf %186, %187 : vector<12x160xf32>
    %189 = math.tanh %180 : vector<12x160xf32>
    %190 = arith.mulf %188, %189 : vector<12x160xf32>
    %cst_82 = arith.constant 0.000000e+00 : f32
    %191 = vector.broadcast %cst_82 : f32 to vector<2x128xf32>
    %192 = vector.extract_strided_slice %190 {offsets = [0, 0], sizes = [2, 160], strides = [1, 1]} : vector<12x160xf32> to vector<2x160xf32>
    %193 = arith.truncf %192 : vector<2x160xf32> to vector<2x160xbf16>
    %c0_83 = arith.constant 0 : index
    %c0_84 = arith.constant 0 : index
    %c0_85 = arith.constant 0 : index
    %194 = vector.load %arg4[%c0_83, %c0_84, %c0_85] : memref<6x160x128xbf16, #tpu.memory_space<vmem>>, vector<1x160x128xbf16>
    %195 = vector.shape_cast %194 : vector<1x160x128xbf16> to vector<160x128xbf16>
    %cst_86 = arith.constant dense<0.000000e+00> : vector<2x128xf32>
    %196 = tpu.matmul %193, %195, %cst_86 {dimension_numbers = #tpu.dot_dimension_numbers<[1], [0], [0], [1], [0, 0, 1, 1], [], []>} : vector<2x160xbf16>, vector<160x128xbf16>, vector<2x128xf32> -> vector<2x128xf32>
    %197 = arith.addf %191, %196 : vector<2x128xf32>
    %198 = vector.extract_strided_slice %190 {offsets = [2, 0], sizes = [2, 160], strides = [1, 1]} : vector<12x160xf32> to vector<2x160xf32>
    %199 = arith.truncf %198 : vector<2x160xf32> to vector<2x160xbf16>
    %c1_87 = arith.constant 1 : index
    %c0_88 = arith.constant 0 : index
    %c0_89 = arith.constant 0 : index
    %200 = vector.load %arg4[%c1_87, %c0_88, %c0_89] : memref<6x160x128xbf16, #tpu.memory_space<vmem>>, vector<1x160x128xbf16>
    %201 = vector.shape_cast %200 : vector<1x160x128xbf16> to vector<160x128xbf16>
    %cst_90 = arith.constant dense<0.000000e+00> : vector<2x128xf32>
    %202 = tpu.matmul %199, %201, %cst_90 {dimension_numbers = #tpu.dot_dimension_numbers<[1], [0], [0], [1], [0, 0, 1, 1], [], []>} : vector<2x160xbf16>, vector<160x128xbf16>, vector<2x128xf32> -> vector<2x128xf32>
    %203 = arith.addf %197, %202 : vector<2x128xf32>
    %204 = vector.extract_strided_slice %190 {offsets = [4, 0], sizes = [2, 160], strides = [1, 1]} : vector<12x160xf32> to vector<2x160xf32>
    %205 = arith.truncf %204 : vector<2x160xf32> to vector<2x160xbf16>
    %c2_91 = arith.constant 2 : index
    %c0_92 = arith.constant 0 : index
    %c0_93 = arith.constant 0 : index
    %206 = vector.load %arg4[%c2_91, %c0_92, %c0_93] : memref<6x160x128xbf16, #tpu.memory_space<vmem>>, vector<1x160x128xbf16>
    %207 = vector.shape_cast %206 : vector<1x160x128xbf16> to vector<160x128xbf16>
    %cst_94 = arith.constant dense<0.000000e+00> : vector<2x128xf32>
    %208 = tpu.matmul %205, %207, %cst_94 {dimension_numbers = #tpu.dot_dimension_numbers<[1], [0], [0], [1], [0, 0, 1, 1], [], []>} : vector<2x160xbf16>, vector<160x128xbf16>, vector<2x128xf32> -> vector<2x128xf32>
    %209 = arith.addf %203, %208 : vector<2x128xf32>
    %210 = vector.extract_strided_slice %190 {offsets = [6, 0], sizes = [2, 160], strides = [1, 1]} : vector<12x160xf32> to vector<2x160xf32>
    %211 = arith.truncf %210 : vector<2x160xf32> to vector<2x160xbf16>
    %c3 = arith.constant 3 : index
    %c0_95 = arith.constant 0 : index
    %c0_96 = arith.constant 0 : index
    %212 = vector.load %arg4[%c3, %c0_95, %c0_96] : memref<6x160x128xbf16, #tpu.memory_space<vmem>>, vector<1x160x128xbf16>
    %213 = vector.shape_cast %212 : vector<1x160x128xbf16> to vector<160x128xbf16>
    %cst_97 = arith.constant dense<0.000000e+00> : vector<2x128xf32>
    %214 = tpu.matmul %211, %213, %cst_97 {dimension_numbers = #tpu.dot_dimension_numbers<[1], [0], [0], [1], [0, 0, 1, 1], [], []>} : vector<2x160xbf16>, vector<160x128xbf16>, vector<2x128xf32> -> vector<2x128xf32>
    %215 = arith.addf %209, %214 : vector<2x128xf32>
    %216 = vector.extract_strided_slice %190 {offsets = [8, 0], sizes = [2, 160], strides = [1, 1]} : vector<12x160xf32> to vector<2x160xf32>
    %217 = arith.truncf %216 : vector<2x160xf32> to vector<2x160xbf16>
    %c4_98 = arith.constant 4 : index
    %c0_99 = arith.constant 0 : index
    %c0_100 = arith.constant 0 : index
    %218 = vector.load %arg4[%c4_98, %c0_99, %c0_100] : memref<6x160x128xbf16, #tpu.memory_space<vmem>>, vector<1x160x128xbf16>
    %219 = vector.shape_cast %218 : vector<1x160x128xbf16> to vector<160x128xbf16>
    %cst_101 = arith.constant dense<0.000000e+00> : vector<2x128xf32>
    %220 = tpu.matmul %217, %219, %cst_101 {dimension_numbers = #tpu.dot_dimension_numbers<[1], [0], [0], [1], [0, 0, 1, 1], [], []>} : vector<2x160xbf16>, vector<160x128xbf16>, vector<2x128xf32> -> vector<2x128xf32>
    %221 = arith.addf %215, %220 : vector<2x128xf32>
    %222 = vector.extract_strided_slice %190 {offsets = [10, 0], sizes = [2, 160], strides = [1, 1]} : vector<12x160xf32> to vector<2x160xf32>
    %223 = arith.truncf %222 : vector<2x160xf32> to vector<2x160xbf16>
    %c5 = arith.constant 5 : index
    %c0_102 = arith.constant 0 : index
    %c0_103 = arith.constant 0 : index
    %224 = vector.load %arg4[%c5, %c0_102, %c0_103] : memref<6x160x128xbf16, #tpu.memory_space<vmem>>, vector<1x160x128xbf16>
    %225 = vector.shape_cast %224 : vector<1x160x128xbf16> to vector<160x128xbf16>
    %cst_104 = arith.constant dense<0.000000e+00> : vector<2x128xf32>
    %226 = tpu.matmul %223, %225, %cst_104 {dimension_numbers = #tpu.dot_dimension_numbers<[1], [0], [0], [1], [0, 0, 1, 1], [], []>} : vector<2x160xbf16>, vector<160x128xbf16>, vector<2x128xf32> -> vector<2x128xf32>
    %227 = arith.addf %221, %226 : vector<2x128xf32>
    %c0_105 = arith.constant 0 : index
    %c0_106 = arith.constant 0 : index
    %228 = vector.load %arg5[%c0_105, %c0_106] : memref<1x128xf32, #tpu.memory_space<vmem>>, vector<1x128xf32>
    %229 = vector.broadcast %228 : vector<1x128xf32> to vector<2x128xf32>
    %230 = arith.addf %227, %229 : vector<2x128xf32>
    %c0_107 = arith.constant 0 : index
    %c0_108 = arith.constant 0 : index
    %231 = vector.load %arg6[%c0_107, %c0_108] : memref<2x128xf32, #tpu.memory_space<vmem>>, vector<2x128xf32>
    tpu.vector_store %arg6[%c0_107, %c0_108], %230 {strides = array<i32>} : memref<2x128xf32, #tpu.memory_space<vmem>>, vector<2x128xf32>,
    return
  }
  func.func @transform_0(%arg0: i32) -> (i32, i32) {
    %c0_i32 = arith.constant 0 : i32
    %c0_i32_0 = arith.constant 0 : i32
    %c0_i32_1 = arith.constant 0 : i32
    return %c0_i32, %c0_i32_0 : i32, i32
  }
  func.func @transform_1(%arg0: i32) -> (i32, i32, i32) {
    %c0_i32 = arith.constant 0 : i32
    %c0_i32_0 = arith.constant 0 : i32
    %c0_i32_1 = arith.constant 0 : i32
    %c0_i32_2 = arith.constant 0 : i32
    return %c0_i32, %c0_i32_0, %c0_i32_1 : i32, i32, i32
  }
  func.func @transform_2(%arg0: i32) -> (i32, i32, i32) {
    %c0_i32 = arith.constant 0 : i32
    %c0_i32_0 = arith.constant 0 : i32
    %c0_i32_1 = arith.constant 0 : i32
    %c0_i32_2 = arith.constant 0 : i32
    return %c0_i32, %c0_i32_0, %c0_i32_1 : i32, i32, i32
  }
  func.func @transform_3(%arg0: i32) -> (i32, i32, i32) {
    %c0_i32 = arith.constant 0 : i32
    %c0_i32_0 = arith.constant 0 : i32
    %c0_i32_1 = arith.constant 0 : i32
    %c0_i32_2 = arith.constant 0 : i32
    return %c0_i32, %c0_i32_0, %c0_i32_1 : i32, i32, i32
  }
  func.func @transform_4(%arg0: i32) -> (i32, i32) {
    %c0_i32 = arith.constant 0 : i32
    %c0_i32_0 = arith.constant 0 : i32
    %c0_i32_1 = arith.constant 0 : i32
    return %c0_i32, %c0_i32_0 : i32, i32
  }
  func.func @transform_5(%arg0: i32) -> (i32, i32) {
    %c0_i32 = arith.constant 0 : i32
    %c0_i32_0 = arith.constant 0 : i32
    %c0_i32_1 = arith.constant 0 : i32
    return %c0_i32, %c0_i32_0 : i32, i32
  }
}

</mosaic_0001>

<bundles_post_ra>
// kernel: convlstm_net_forward.3
= control target key start
LH: loop header
LB: loop body
LE: loop exit
PB: predicated region body
PF: predicated region fallthrough
CT: control target
= control target key end

     0   :  { %8 = vsyncpa [#allocation3], 0  ;;  %s982_s12 = smov [#allocation2]   ;;  %s1263_s0 = inlined_call_operand.vmem [shape: bf16[120,512], index: 0, kind: input, shape index: {}]   ;;  %s1264_s1 = inlined_call_operand.vmem [shape: bf16[512,128], index: 1, kind: input, shape index: {}]   ;;  %s1265_s2 = inlined_call_operand.hbm [shape: f32[1,128], index: 2, kind: input, shape index: {}]   ;;  %s1266_s3 = inlined_call_operand.vmem [shape: f32[120,128], index: 3, kind: output, shape index: {}]  }
   0x1   :  { %s19_s13 = sshll.u32 %s982_s12, 4  ;;  %s958_s16 = scalar_lea.hbm %s1265_s2, 16  ;;  %s20_s13 = int_to_ptr.vmem [resolvable:$true] %s19_s13 }
   0x2   :  { %p959_p0 = scmp.ne.s32.totalorder %s1265_s2, %s958_s16  ;;  %p962_p1 = scmp.lt.u32.totalorder %s958_s16, %s1265_s2 }
   0x4   :  { %p964_p2 = pnand %p962_p1, %p959_p0 }
   0x6   :  { %967 = shalt.err (!%p964_p2)
}
   0x7   :  { %s968_s21 = scalar_lea.vmem %s20_s13, 16  ;;  %s972_s22 = scalar_lea.vmem %s20_s13, 32 }
   0x8   :  { %p969_p3 = scmp.ne.s32.totalorder %s20_s13, %s968_s21  ;;  %p973_p4 = scmp.lt.s32.totalorder %s20_s13, %s20_s13 }
   0x9   :  { %p974_p5 = scmp.lt.s32.totalorder %s972_s22, %s968_s21 }
   0xb   :  { %p975_p6 = por %p974_p5, %p973_p4 }
   0xd   :  { %p976_p7 = pnand %p975_p6, %p969_p3 }
   0xf   :  { %979 = shalt.err (!%p976_p7)
}
  0x10   :  { %22 = dma.hbm_to_vmem [thread:$0]  %s1265_s2, 16, %s20_s13, [#allocation3]  }
  0x11   :  { %980 = dma.done.wait [#allocation3], 16  }
  0x12   :  { %981 = vsyncadd [#allocation3], 4294967280  ;;  %v880_v0 = vld [vmem:[%s1264_s1 + $0x40] sm:$0xff]   ;;  %v884_v4 = vld [vmem:[%s1264_s1 + $0x48] sm:$0xff]  }
  0x13   :  { %v881_v1 = vld [vmem:[%s1264_s1 + $0xc0] sm:$0xff]   ;;  %751 = vmatprep.subr.bf16.mxu0 %v880_v0  ;;  %v885_v5 = vld [vmem:[%s1264_s1 + $0xc8] sm:$0xff]   ;;  %v888_v8 = vld [vmem:[%s1264_s1 + $0x50] sm:$0xff]  }
  0x14   :  { %v882_v2 = vld [vmem:[%s1264_s1] sm:$0xff]   ;;  %815 = vmatprep.subr.bf16.mxu1 %v881_v1  ;;  %v886_v6 = vld [vmem:[%s1264_s1 + $0x8] sm:$0xff]   ;;  %v889_v9 = vld [vmem:[%s1264_s1 + $0xd0] sm:$0xff]  }
  0x15   :  { %v883_v3 = vld [vmem:[%s1264_s1 + $0x80] sm:$0xff]   ;;  %752 = vmatpush3.bf16.msra.mxu0 %v882_v2  ;;  %v887_v7 = vld [vmem:[%s1264_s1 + $0x88] sm:$0xff]   ;;  %v890_v10 = vld [vmem:[%s1264_s1 + $0x10] sm:$0xff]  }
  0x16   :  { %816 = vmatpush3.bf16.msra.mxu1 %v883_v3  ;;  %753 = vmatprep.subr.bf16.mxu0 %v884_v4  ;;  %v891_v11 = vld [vmem:[%s1264_s1 + $0x90] sm:$0xff]   ;;  %v892_v12 = vld [vmem:[%s1264_s1 + $0x58] sm:$0xff]   ;;  %v896_v16 = vld [vmem:[%s1264_s1 + $0x60] sm:$0xff]  }
  0x17   :  { %817 = vmatprep.subr.bf16.mxu1 %v885_v5  ;;  %v893_v13 = vld [vmem:[%s1264_s1 + $0xd8] sm:$0xff]   ;;  %v897_v17 = vld [vmem:[%s1264_s1 + $0xe0] sm:$0xff]   ;;  %v900_v20 = vld [vmem:[%s1264_s1 + $0x68] sm:$0xff]  }
  0x18   :  { %v894_v14 = vld [vmem:[%s1264_s1 + $0x18] sm:$0xff]   ;;  %v898_v18 = vld [vmem:[%s1264_s1 + $0x20] sm:$0xff]   ;;  %v901_v21 = vld [vmem:[%s1264_s1 + $0xe8] sm:$0xff]  }
  0x19   :  { %754 = vmatpush3.bf16.msra.mxu0 %v886_v6  ;;  %v895_v15 = vld [vmem:[%s1264_s1 + $0x98] sm:$0xff]   ;;  %v899_v19 = vld [vmem:[%s1264_s1 + $0xa0] sm:$0xff]   ;;  %v902_v22 = vld [vmem:[%s1264_s1 + $0x28] sm:$0xff]  }
  0x1a   :  { %818 = vmatpush3.bf16.msra.mxu1 %v887_v7  ;;  %755 = vmatprep.subr.bf16.mxu0 %v888_v8  ;;  %v903_v23 = vld [vmem:[%s1264_s1 + $0xa8] sm:$0xff]   ;;  %v904_v24 = vld [vmem:[%s1264_s1 + $0x70] sm:$0xff]   ;;  %v908_v28 = vld [vmem:[%s1264_s1 + $0x78] sm:$0xff]  }
  0x1b   :  { %819 = vmatprep.subr.bf16.mxu1 %v889_v9  ;;  %v905_v25 = vld [vmem:[%s1264_s1 + $0xf0] sm:$0xff]   ;;  %v909_v29 = vld [vmem:[%s1264_s1 + $0xf8] sm:$0xff]   ;;  %v55_v58 = vld [vmem:[%s1263_s0 + $0xe0] sm:$0xff] }
  0x1c   :  { %v906_v26 = vld [vmem:[%s1264_s1 + $0x30] sm:$0xff]   ;;  %v910_v30 = vld [vmem:[%s1264_s1 + $0x38] sm:$0xff]   ;;  %v56_v59 = vld [vmem:[%s1263_s0 + $0xe8] sm:$0xff]  ;;  %v716_v62 = vcombine.high %v55_v58, %v55_v58  ;;  %v715_v0 = vcombine.low %v55_v58, %v55_v58 }
  0x1d   :  { %756 = vmatpush3.bf16.msra.mxu0 %v890_v10  ;;  %v907_v27 = vld [vmem:[%s1264_s1 + $0xb0] sm:$0xff]   ;;  %v911_v31 = vld [vmem:[%s1264_s1 + $0xb8] sm:$0xff]   ;;  %v718_v63 = vcombine.high %v56_v59, %v56_v59  ;;  %v717_v1 = vcombine.low %v56_v59, %v56_v59  ;;  %v1201_v4 = vld [vmem:[#allocation2] ss:$0 sm:$0xff] }
  0x1e   :  { %820 = vmatpush3.bf16.msra.mxu1 %v891_v11  ;;  %757 = vmatprep.subr.bf16.mxu0 %v892_v12  ;;  %v912_v32 = vld [vmem:[%s1263_s0] ss:$16 sps:$4 sm:$0xff]   ;;  %v914_v33 = vld [vmem:[%s1263_s0 + $0x4] ss:$16 sps:$4 sm:$0xff]   ;;  %v915_v34 = vld [vmem:[%s1263_s0 + $0x8] ss:$16 sps:$4 sm:$0xff]  }
  0x1f   :  { %821 = vmatprep.subr.bf16.mxu1 %v893_v13  ;;  %v917_v35 = vld [vmem:[%s1263_s0 + $0xc] ss:$16 sps:$4 sm:$0xff]   ;;  %506 = vmatprep.mubr.bf16.mxu0 %v914_v33  ;;  %v918_v36 = vld [vmem:[%s1263_s0 + $0x24] ss:$16 sps:$4 sm:$0xff]   ;;  %v922_v38 = vld [vmem:[%s1263_s0 + $0x20] ss:$16 sps:$4 sm:$0xff]  }
  0x20   :  { %602 = vmatprep.mubr.bf16.mxu1 %v917_v35  ;;  %v920_v37 = vld [vmem:[%s1263_s0 + $0x2c] ss:$16 sps:$4 sm:$0xff]   ;;  %v923_v39 = vld [vmem:[%s1263_s0 + $0x28] ss:$16 sps:$4 sm:$0xff]   ;;  %v924_v40 = vld [vmem:[%s1263_s0 + $0x44] ss:$16 sps:$4 sm:$0xff]  }
  0x21   :  { %758 = vmatpush3.bf16.msra.mxu0 %v894_v14  ;;  %v926_v41 = vld [vmem:[%s1263_s0 + $0x4c] ss:$16 sps:$4 sm:$0xff]   ;;  %v928_v42 = vld [vmem:[%s1263_s0 + $0x40] ss:$16 sps:$4 sm:$0xff]   ;;  %v929_v43 = vld [vmem:[%s1263_s0 + $0x48] ss:$16 sps:$4 sm:$0xff]  }
  0x22   :  { %822 = vmatpush3.bf16.msra.mxu1 %v895_v15  ;;  %759 = vmatprep.subr.bf16.mxu0 %v896_v16  ;;  %v930_v44 = vld [vmem:[%s1263_s0 + $0x64] ss:$16 sps:$4 sm:$0xff]   ;;  %v932_v45 = vld [vmem:[%s1263_s0 + $0x6c] ss:$16 sps:$4 sm:$0xff]   ;;  %v934_v46 = vld [vmem:[%s1263_s0 + $0x60] ss:$16 sps:$4 sm:$0xff]  }
  0x23   :  { %823 = vmatprep.subr.bf16.mxu1 %v897_v17  ;;  %v935_v47 = vld [vmem:[%s1263_s0 + $0x68] ss:$16 sps:$4 sm:$0xff]   ;;  %v936_v48 = vld [vmem:[%s1263_s0 + $0x84] ss:$16 sps:$4 sm:$0xff]   ;;  %v938_v49 = vld [vmem:[%s1263_s0 + $0x8c] ss:$16 sps:$4 sm:$0xff]  }
  0x24   :  { %v940_v50 = vld [vmem:[%s1263_s0 + $0x80] ss:$16 sps:$4 sm:$0xff]   ;;  %v941_v51 = vld [vmem:[%s1263_s0 + $0x88] ss:$16 sps:$4 sm:$0xff]   ;;  %v942_v52 = vld [vmem:[%s1263_s0 + $0xa4] ss:$16 sps:$4 sm:$0xff]  }
  0x25   :  { %760 = vmatpush3.bf16.msra.mxu0 %v898_v18  ;;  %v944_v53 = vld [vmem:[%s1263_s0 + $0xac] ss:$16 sps:$4 sm:$0xff]   ;;  %v946_v54 = vld [vmem:[%s1263_s0 + $0xa0] ss:$16 sps:$4 sm:$0xff]   ;;  %v947_v55 = vld [vmem:[%s1263_s0 + $0xa8] ss:$16 sps:$4 sm:$0xff]  }
  0x26   :  { %824 = vmatpush3.bf16.msra.mxu1 %v899_v19  ;;  %761 = vmatprep.subr.bf16.mxu0 %v900_v20  ;;  %v948_v56 = vld [vmem:[%s1263_s0 + $0xc4] ss:$16 sps:$4 sm:$0xff]   ;;  %v950_v57 = vld [vmem:[%s1263_s0 + $0xcc] ss:$16 sps:$4 sm:$0xff]   ;;  %v952_v60 = vld [vmem:[%s1263_s0 + $0xc0] ss:$16 sps:$4 sm:$0xff]  }
  0x27   :  { %825 = vmatprep.subr.bf16.mxu1 %v901_v21  ;;  %v953_v61 = vld [vmem:[%s1263_s0 + $0xc8] ss:$16 sps:$4 sm:$0xff]  }
  0x29   :  { %762 = vmatpush3.bf16.msra.mxu0 %v902_v22 }
  0x2a   :  { %826 = vmatpush3.bf16.msra.mxu1 %v903_v23  ;;  %763 = vmatprep.subr.bf16.mxu0 %v904_v24 }
  0x2b   :  { %827 = vmatprep.subr.bf16.mxu1 %v905_v25 }
  0x2d   :  { %764 = vmatpush3.bf16.msra.mxu0 %v906_v26 }
  0x2e   :  { %828 = vmatpush3.bf16.msra.mxu1 %v907_v27  ;;  %765 = vmatprep.subr.bf16.mxu0 %v908_v28 }
  0x2f   :  { %829 = vmatprep.subr.bf16.mxu1 %v909_v29 }
  0x31   :  { %766 = vmatpush3.bf16.msra.mxu0 %v910_v30 }
  0x32   :  { %830 = vmatpush3.bf16.msra.mxu1 %v911_v31 }
  0x34   :  { %507 = vmatmul.mubr.bf16.vlgmr.msra.gmra.mrb[0].mxu0 %v912_v32 }
  0x35   :  { %603 = vmatmul.mubr.bf16.vlgmr.msra.gmra.mrb[0].mxu1 %v915_v34  ;;  %514 = vmatprep.mubr.bf16.mxu0 %v918_v36 }
  0x36   :  { %610 = vmatprep.mubr.bf16.mxu1 %v920_v37 }
  0x3c   :  { %515 = vmatmul.mubr.bf16.gmra.mrb[4].mxu0 %v922_v38 }
  0x3d   :  { %611 = vmatmul.mubr.bf16.gmra.mrb[4].mxu1 %v923_v39  ;;  %522 = vmatprep.mubr.bf16.mxu0 %v924_v40 }
  0x3e   :  { %618 = vmatprep.mubr.bf16.mxu1 %v926_v41 }
  0x44   :  { %523 = vmatmul.mubr.bf16.gmra.mrb[8].mxu0 %v928_v42 }
  0x45   :  { %619 = vmatmul.mubr.bf16.gmra.mrb[8].mxu1 %v929_v43  ;;  %530 = vmatprep.mubr.bf16.mxu0 %v930_v44 }
  0x46   :  { %626 = vmatprep.mubr.bf16.mxu1 %v932_v45 }
  0x4c   :  { %531 = vmatmul.mubr.bf16.gmra.mrb[12].mxu0 %v934_v46 }
  0x4d   :  { %627 = vmatmul.mubr.bf16.gmra.mrb[12].mxu1 %v935_v47  ;;  %538 = vmatprep.mubr.bf16.mxu0 %v936_v48 }
  0x4e   :  { %634 = vmatprep.mubr.bf16.mxu1 %v938_v49 }
  0x54   :  { %539 = vmatmul.mubr.bf16.gmra.mrb[16].mxu0 %v940_v50 }
  0x55   :  { %635 = vmatmul.mubr.bf16.gmra.mrb[16].mxu1 %v941_v51  ;;  %546 = vmatprep.mubr.bf16.mxu0 %v942_v52 }
  0x56   :  { %642 = vmatprep.mubr.bf16.mxu1 %v944_v53 }
  0x5c   :  { %547 = vmatmul.mubr.bf16.gmra.mrb[20].mxu0 %v946_v54 }
  0x5d   :  { %643 = vmatmul.mubr.bf16.gmra.mrb[20].mxu1 %v947_v55  ;;  %554 = vmatprep.mubr.bf16.mxu0 %v948_v56 }
  0x5e   :  { %650 = vmatprep.mubr.bf16.mxu1 %v950_v57 }
  0x64   :  { %555 = vmatmul.mubr.bf16.gmra.mrb[24].mxu0 %v952_v60 }
  0x65   :  { %651 = vmatmul.mubr.bf16.gmra.mrb[24].mxu1 %v953_v61  ;;  %562 = vmatprep.mubr.bf16.mxu0 %v716_v62 }
  0x66   :  { %658 = vmatprep.mubr.bf16.mxu1 %v718_v63 }
  0x6c   :  { %563 = vmatmul.mubr.bf16.gmra.mrb[28].mxu0 %v715_v0 }
  0x6d   :  { %659 = vmatmul.mubr.bf16.gmra.mrb[28].mxu1 %v717_v1 }
 0x107   :  { %v767_v2 = vpop.f32.mrb[0].mxu0 }
 0x108   :  { %v831_v3 = vpop.f32.mrb[0].mxu1  ;;  %v768_v5 = vpop.f32.mrb[1].mxu0 }
 0x109   :  { %v769_v6 = vadd.f32 %v768_v5, %v767_v2  ;;  %v832_v7 = vpop.f32.mrb[1].mxu1  ;;  %v770_v8 = vpop.f32.mrb[2].mxu0 }
 0x10a   :  { %v833_v9 = vadd.f32 %v832_v7, %v831_v3  ;;  %v834_v10 = vpop.f32.mrb[2].mxu1  ;;  %v771_v11 = vpop.f32.mrb[3].mxu0 }
 0x10b   :  { %v509_v12 = vadd.f32 %v769_v6, %v1201_v4  ;;  %v772_v13 = vadd.f32 %v771_v11, %v770_v8  ;;  %v835_v14 = vpop.f32.mrb[3].mxu1 }
 0x10c   :  { %v836_v15 = vadd.f32 %v835_v14, %v834_v10 }
 0x10d   :  { %v605_v16 = vadd.f32 %v833_v9, %v509_v12  ;;  %v512_v17 = vadd.f32 %v772_v13, %v1201_v4 }
 0x10f   :  { %666 = vst [vmem:[%s1266_s3] sm:$0xff] %v605_v16  ;;  %v608_v18 = vadd.f32 %v836_v15, %v512_v17  ;;  %v773_v19 = vpop.f32.mrb[4].mxu0 }
 0x110   :  { %v837_v20 = vpop.f32.mrb[4].mxu1  ;;  %v774_v21 = vpop.f32.mrb[5].mxu0 }
 0x111   :  { %667 = vst [vmem:[%s1266_s3 + $0x8] sm:$0xff] %v608_v18  ;;  %v775_v22 = vadd.f32 %v774_v21, %v773_v19  ;;  %v838_v23 = vpop.f32.mrb[5].mxu1  ;;  %v776_v24 = vpop.f32.mrb[6].mxu0 }
 0x112   :  { %v839_v25 = vadd.f32 %v838_v23, %v837_v20  ;;  %v840_v26 = vpop.f32.mrb[6].mxu1  ;;  %v777_v27 = vpop.f32.mrb[7].mxu0 }
 0x113   :  { %v517_v28 = vadd.f32 %v775_v22, %v1201_v4  ;;  %v778_v29 = vadd.f32 %v777_v27, %v776_v24  ;;  %v841_v30 = vpop.f32.mrb[7].mxu1 }
 0x114   :  { %v842_v31 = vadd.f32 %v841_v30, %v840_v26 }
 0x115   :  { %v613_v32 = vadd.f32 %v839_v25, %v517_v28  ;;  %v520_v33 = vadd.f32 %v778_v29, %v1201_v4 }
 0x117   :  { %668 = vst [vmem:[%s1266_s3 + $0x10] sm:$0xff] %v613_v32  ;;  %v616_v34 = vadd.f32 %v842_v31, %v520_v33  ;;  %v779_v35 = vpop.f32.mrb[8].mxu0 }
 0x118   :  { %v843_v36 = vpop.f32.mrb[8].mxu1  ;;  %v780_v37 = vpop.f32.mrb[9].mxu0 }
 0x119   :  { %669 = vst [vmem:[%s1266_s3 + $0x18] sm:$0xff] %v616_v34  ;;  %v781_v38 = vadd.f32 %v780_v37, %v779_v35  ;;  %v844_v39 = vpop.f32.mrb[9].mxu1  ;;  %v782_v40 = vpop.f32.mrb[10].mxu0 }
 0x11a   :  { %v845_v41 = vadd.f32 %v844_v39, %v843_v36  ;;  %v846_v42 = vpop.f32.mrb[10].mxu1  ;;  %v783_v43 = vpop.f32.mrb[11].mxu0 }
 0x11b   :  { %v525_v44 = vadd.f32 %v781_v38, %v1201_v4  ;;  %v784_v45 = vadd.f32 %v783_v43, %v782_v40  ;;  %v847_v46 = vpop.f32.mrb[11].mxu1 }
 0x11c   :  { %v848_v47 = vadd.f32 %v847_v46, %v846_v42 }
 0x11d   :  { %v621_v48 = vadd.f32 %v845_v41, %v525_v44  ;;  %v528_v49 = vadd.f32 %v784_v45, %v1201_v4 }
 0x11f   :  { %670 = vst [vmem:[%s1266_s3 + $0x20] sm:$0xff] %v621_v48  ;;  %v624_v50 = vadd.f32 %v848_v47, %v528_v49  ;;  %v785_v51 = vpop.f32.mrb[12].mxu0 }
 0x120   :  { %v849_v52 = vpop.f32.mrb[12].mxu1  ;;  %v786_v53 = vpop.f32.mrb[13].mxu0 }
 0x121   :  { %671 = vst [vmem:[%s1266_s3 + $0x28] sm:$0xff] %v624_v50  ;;  %v787_v54 = vadd.f32 %v786_v53, %v785_v51  ;;  %v850_v55 = vpop.f32.mrb[13].mxu1  ;;  %v788_v56 = vpop.f32.mrb[14].mxu0 }
 0x122   :  { %v851_v57 = vadd.f32 %v850_v55, %v849_v52  ;;  %v852_v58 = vpop.f32.mrb[14].mxu1  ;;  %v789_v59 = vpop.f32.mrb[15].mxu0 }
 0x123   :  { %v533_v60 = vadd.f32 %v787_v54, %v1201_v4  ;;  %v790_v61 = vadd.f32 %v789_v59, %v788_v56  ;;  %v853_v62 = vpop.f32.mrb[15].mxu1 }
 0x124   :  { %v854_v63 = vadd.f32 %v853_v62, %v852_v58 }
 0x125   :  { %v629_v0 = vadd.f32 %v851_v57, %v533_v60  ;;  %v536_v1 = vadd.f32 %v790_v61, %v1201_v4 }
 0x127   :  { %672 = vst [vmem:[%s1266_s3 + $0x30] sm:$0xff] %v629_v0  ;;  %v632_v2 = vadd.f32 %v854_v63, %v536_v1  ;;  %v791_v3 = vpop.f32.mrb[16].mxu0 }
 0x128   :  { %v855_v5 = vpop.f32.mrb[16].mxu1  ;;  %v792_v6 = vpop.f32.mrb[17].mxu0 }
 0x129   :  { %673 = vst [vmem:[%s1266_s3 + $0x38] sm:$0xff] %v632_v2  ;;  %v793_v7 = vadd.f32 %v792_v6, %v791_v3  ;;  %v856_v8 = vpop.f32.mrb[17].mxu1  ;;  %v794_v9 = vpop.f32.mrb[18].mxu0 }
 0x12a   :  { %v857_v10 = vadd.f32 %v856_v8, %v855_v5  ;;  %v858_v11 = vpop.f32.mrb[18].mxu1  ;;  %v795_v12 = vpop.f32.mrb[19].mxu0 }
 0x12b   :  { %v541_v13 = vadd.f32 %v793_v7, %v1201_v4  ;;  %v796_v14 = vadd.f32 %v795_v12, %v794_v9  ;;  %v859_v15 = vpop.f32.mrb[19].mxu1 }
 0x12c   :  { %v860_v16 = vadd.f32 %v859_v15, %v858_v11 }
 0x12d   :  { %v637_v17 = vadd.f32 %v857_v10, %v541_v13  ;;  %v544_v18 = vadd.f32 %v796_v14, %v1201_v4 }
 0x12f   :  { %674 = vst [vmem:[%s1266_s3 + $0x40] sm:$0xff] %v637_v17  ;;  %v640_v19 = vadd.f32 %v860_v16, %v544_v18  ;;  %v797_v20 = vpop.f32.mrb[20].mxu0 }
 0x130   :  { %v861_v21 = vpop.f32.mrb[20].mxu1  ;;  %v798_v22 = vpop.f32.mrb[21].mxu0 }
 0x131   :  { %675 = vst [vmem:[%s1266_s3 + $0x48] sm:$0xff] %v640_v19  ;;  %v799_v23 = vadd.f32 %v798_v22, %v797_v20  ;;  %v862_v24 = vpop.f32.mrb[21].mxu1  ;;  %v800_v25 = vpop.f32.mrb[22].mxu0 }
 0x132   :  { %v863_v26 = vadd.f32 %v862_v24, %v861_v21  ;;  %v864_v27 = vpop.f32.mrb[22].mxu1  ;;  %v801_v28 = vpop.f32.mrb[23].mxu0 }
 0x133   :  { %v549_v29 = vadd.f32 %v799_v23, %v1201_v4  ;;  %v802_v30 = vadd.f32 %v801_v28, %v800_v25  ;;  %v865_v31 = vpop.f32.mrb[23].mxu1 }
 0x134   :  { %v866_v32 = vadd.f32 %v865_v31, %v864_v27 }
 0x135   :  { %v645_v33 = vadd.f32 %v863_v26, %v549_v29  ;;  %v552_v34 = vadd.f32 %v802_v30, %v1201_v4 }
 0x137   :  { %676 = vst [vmem:[%s1266_s3 + $0x50] sm:$0xff] %v645_v33  ;;  %v648_v35 = vadd.f32 %v866_v32, %v552_v34  ;;  %v803_v36 = vpop.f32.mrb[24].mxu0 }
 0x138   :  { %v867_v37 = vpop.f32.mrb[24].mxu1  ;;  %v804_v38 = vpop.f32.mrb[25].mxu0 }
 0x139   :  { %677 = vst [vmem:[%s1266_s3 + $0x58] sm:$0xff] %v648_v35  ;;  %v805_v39 = vadd.f32 %v804_v38, %v803_v36  ;;  %v868_v40 = vpop.f32.mrb[25].mxu1  ;;  %v806_v41 = vpop.f32.mrb[26].mxu0 }
 0x13a   :  { %v869_v42 = vadd.f32 %v868_v40, %v867_v37  ;;  %v870_v43 = vpop.f32.mrb[26].mxu1  ;;  %v807_v44 = vpop.f32.mrb[27].mxu0 }
 0x13b   :  { %v557_v45 = vadd.f32 %v805_v39, %v1201_v4  ;;  %v808_v46 = vadd.f32 %v807_v44, %v806_v41  ;;  %v871_v47 = vpop.f32.mrb[27].mxu1 }
 0x13c   :  { %v872_v48 = vadd.f32 %v871_v47, %v870_v43 }
 0x13d   :  { %v653_v49 = vadd.f32 %v869_v42, %v557_v45  ;;  %v560_v50 = vadd.f32 %v808_v46, %v1201_v4 }
 0x13f   :  { %678 = vst [vmem:[%s1266_s3 + $0x60] sm:$0xff] %v653_v49  ;;  %v656_v51 = vadd.f32 %v872_v48, %v560_v50  ;;  %v809_v52 = vpop.f32.mrb[28].mxu0 }
 0x140   :  { %v873_v53 = vpop.f32.mrb[28].mxu1  ;;  %v810_v54 = vpop.f32.mrb[29].mxu0 }
 0x141   :  { %679 = vst [vmem:[%s1266_s3 + $0x68] sm:$0xff] %v656_v51  ;;  %v811_v55 = vadd.f32 %v810_v54, %v809_v52  ;;  %v874_v56 = vpop.f32.mrb[29].mxu1  ;;  %v812_v57 = vpop.f32.mrb[30].mxu0 }
 0x142   :  { %v875_v58 = vadd.f32 %v874_v56, %v873_v53  ;;  %v876_v59 = vpop.f32.mrb[30].mxu1  ;;  %v813_v60 = vpop.f32.mrb[31].mxu0 }
 0x143   :  { %v565_v61 = vadd.f32 %v811_v55, %v1201_v4  ;;  %v877_v62 = vpop.f32.mrb[31].mxu1 }
 0x145   :  { %v661_v63 = vadd.f32 %v875_v58, %v565_v61 }
 0x147   :  { %680 = vst [vmem:[%s1266_s3 + $0x70] sm:$0xff] %v661_v63 }
 0x148   :  { %685 = vsyncpa [#allocation3], 1 }

// kernel: convlstm_net_forward.4
= control target key start
LH: loop header
LB: loop body
LE: loop exit
PB: predicated region body
PF: predicated region fallthrough
CT: control target
= control target key end

     0   :  { %vm1507_vm0 = vcmask 523264   ;;  %s2756_s1 = inlined_call_operand.vmem [shape: bf16[1152,64], index: 1, kind: input, shape index: {}]   ;;  %s2757_s0 = inlined_call_operand.vmem [shape: bf16[120,1152], index: 0, kind: input, shape index: {}]   ;;  %s2758_s2 = inlined_call_operand.vmem [shape: f32[1,64], index: 2, kind: input, shape index: {}]   ;;  %s2759_s3 = inlined_call_operand.vmem [shape: f32[120,64], index: 3, kind: output, shape index: {}]  }
   0x1   :  { %v1992_v0 = vld [vmem:[%s2756_s1 + $0x40] sm:$0xff]   ;;  %v1996_v4 = vld [vmem:[%s2756_s1 + $0x48] sm:$0xff]   ;;  %v2000_v8 = vld [vmem:[%s2756_s1 + $0x50] sm:$0xff]  }
   0x2   :  { %v1993_v1 = vld [vmem:[%s2756_s1 + $0xc0] sm:$0xff]   ;;  %1672 = vmatprep.subr.bf16.mxu0 %v1992_v0  ;;  %v1997_v5 = vld [vmem:[%s2756_s1 + $0xc8] sm:$0xff]   ;;  %v2001_v9 = vld [vmem:[%s2756_s1 + $0xd0] sm:$0xff]  }
   0x3   :  { %v1994_v2 = vld [vmem:[%s2756_s1] sm:$0xff]   ;;  %1736 = vmatprep.subr.bf16.mxu1 %v1993_v1  ;;  %v1998_v6 = vld [vmem:[%s2756_s1 + $0x8] sm:$0xff]   ;;  %v2002_v10 = vld [vmem:[%s2756_s1 + $0x10] sm:$0xff]  }
   0x4   :  { %v1995_v3 = vld [vmem:[%s2756_s1 + $0x80] sm:$0xff]   ;;  %1673 = vmatpush3.bf16.msra.mxu0 %v1994_v2  ;;  %v1999_v7 = vld [vmem:[%s2756_s1 + $0x88] sm:$0xff]   ;;  %v2003_v11 = vld [vmem:[%s2756_s1 + $0x90] sm:$0xff]  }
   0x5   :  { %1737 = vmatpush3.bf16.msra.mxu1 %v1995_v3  ;;  %1674 = vmatprep.subr.bf16.mxu0 %v1996_v4  ;;  %v2004_v12 = vld [vmem:[%s2756_s1 + $0x58] sm:$0xff]   ;;  %v2008_v16 = vld [vmem:[%s2756_s1 + $0x60] sm:$0xff]   ;;  %v2012_v20 = vld [vmem:[%s2756_s1 + $0x68] sm:$0xff]  }
   0x6   :  { %1738 = vmatprep.subr.bf16.mxu1 %v1997_v5  ;;  %v2005_v13 = vld [vmem:[%s2756_s1 + $0xd8] sm:$0xff]   ;;  %v2009_v17 = vld [vmem:[%s2756_s1 + $0xe0] sm:$0xff]   ;;  %v2013_v21 = vld [vmem:[%s2756_s1 + $0xe8] sm:$0xff]  }
   0x7   :  { %v2006_v14 = vld [vmem:[%s2756_s1 + $0x18] sm:$0xff]   ;;  %v2010_v18 = vld [vmem:[%s2756_s1 + $0x20] sm:$0xff]   ;;  %v2014_v22 = vld [vmem:[%s2756_s1 + $0x28] sm:$0xff]  }
   0x8   :  { %1675 = vmatpush3.bf16.msra.mxu0 %v1998_v6  ;;  %v2007_v15 = vld [vmem:[%s2756_s1 + $0x98] sm:$0xff]   ;;  %v2011_v19 = vld [vmem:[%s2756_s1 + $0xa0] sm:$0xff]   ;;  %v2015_v23 = vld [vmem:[%s2756_s1 + $0xa8] sm:$0xff]  }
   0x9   :  { %1739 = vmatpush3.bf16.msra.mxu1 %v1999_v7  ;;  %1676 = vmatprep.subr.bf16.mxu0 %v2000_v8  ;;  %v2016_v24 = vld [vmem:[%s2756_s1 + $0x70] sm:$0xff]   ;;  %v2020_v28 = vld [vmem:[%s2756_s1 + $0x78] sm:$0xff]   ;;  %v2024_v32 = vld [vmem:[%s2757_s0] ss:$36 sps:$4 sm:$0xff]  }
   0xa   :  { %1740 = vmatprep.subr.bf16.mxu1 %v2001_v9  ;;  %v2017_v25 = vld [vmem:[%s2756_s1 + $0xf0] sm:$0xff]   ;;  %v2021_v29 = vld [vmem:[%s2756_s1 + $0xf8] sm:$0xff]   ;;  %v2026_v33 = vld [vmem:[%s2757_s0 + $0x4] ss:$36 sps:$4 sm:$0xff]  }
   0xb   :  { %v2018_v26 = vld [vmem:[%s2756_s1 + $0x30] sm:$0xff]   ;;  %v2022_v30 = vld [vmem:[%s2756_s1 + $0x38] sm:$0xff]   ;;  %v2027_v34 = vld [vmem:[%s2757_s0 + $0x8] ss:$36 sps:$4 sm:$0xff]   ;;  %1059 = vmatprep.mubr.bf16.mxu0 %v2026_v33 }
   0xc   :  { %1677 = vmatpush3.bf16.msra.mxu0 %v2002_v10  ;;  %v2019_v27 = vld [vmem:[%s2756_s1 + $0xb0] sm:$0xff]   ;;  %v2023_v31 = vld [vmem:[%s2756_s1 + $0xb8] sm:$0xff]   ;;  %v2030_v36 = vld [vmem:[%s2756_s1 + $0x140] sm:$0xff]  }
   0xd   :  { %1741 = vmatpush3.bf16.msra.mxu1 %v2003_v11  ;;  %1678 = vmatprep.subr.bf16.mxu0 %v2004_v12  ;;  %v2029_v35 = vld [vmem:[%s2757_s0 + $0xc] ss:$36 sps:$4 sm:$0xff]   ;;  %v2031_v37 = vld [vmem:[%s2756_s1 + $0x1c0] sm:$0xff]   ;;  %v2036_v41 = vld [vmem:[%s2757_s0 + $0x54] ss:$36 sps:$4 sm:$0xff]  }
   0xe   :  { %1742 = vmatprep.subr.bf16.mxu1 %v2005_v13  ;;  %1155 = vmatprep.mubr.bf16.mxu1 %v2029_v35  ;;  %v2032_v38 = vld [vmem:[%s2756_s1 + $0x100] sm:$0xff]   ;;  %v2034_v40 = vld [vmem:[%s2757_s0 + $0x4c] ss:$36 sps:$4 sm:$0xff]   ;;  %v2044_v48 = vld [vmem:[%s2757_s0 + $0x94] ss:$36 sps:$4 sm:$0xff]  }
   0xf   :  { %v2033_v39 = vld [vmem:[%s2756_s1 + $0x180] sm:$0xff]   ;;  %v2038_v42 = vld [vmem:[%s2757_s0 + $0x48] ss:$36 sps:$4 sm:$0xff]   ;;  %v2039_v43 = vld [vmem:[%s2757_s0 + $0x50] ss:$36 sps:$4 sm:$0xff]  }
  0x10   :  { %1679 = vmatpush3.bf16.msra.mxu0 %v2006_v14  ;;  %v2040_v44 = vld [vmem:[%s2756_s1 + $0x148] sm:$0xff]   ;;  %v2046_v49 = vld [vmem:[%s2757_s0 + $0x9c] ss:$36 sps:$4 sm:$0xff]   ;;  %v2048_v50 = vld [vmem:[%s2757_s0 + $0x90] ss:$36 sps:$4 sm:$0xff]  }
  0x11   :  { %1743 = vmatpush3.bf16.msra.mxu1 %v2007_v15  ;;  %1680 = vmatprep.subr.bf16.mxu0 %v2008_v16  ;;  %v2041_v45 = vld [vmem:[%s2756_s1 + $0x1c8] sm:$0xff]   ;;  %v2049_v51 = vld [vmem:[%s2757_s0 + $0x98] ss:$36 sps:$4 sm:$0xff]   ;;  %v2050_v52 = vld [vmem:[%s2756_s1 + $0x150] sm:$0xff]  }
  0x12   :  { %1744 = vmatprep.subr.bf16.mxu1 %v2009_v17  ;;  %v2042_v46 = vld [vmem:[%s2756_s1 + $0x108] sm:$0xff]   ;;  %v2051_v53 = vld [vmem:[%s2756_s1 + $0x1d0] sm:$0xff]   ;;  %v2054_v56 = vld [vmem:[%s2757_s0 + $0xdc] ss:$36 sps:$4 sm:$0xff]  }
  0x13   :  { %v2043_v47 = vld [vmem:[%s2756_s1 + $0x188] sm:$0xff]   ;;  %v2052_v54 = vld [vmem:[%s2756_s1 + $0x110] sm:$0xff]   ;;  %v2058_v58 = vld [vmem:[%s2757_s0 + $0xd8] ss:$36 sps:$4 sm:$0xff]  }
  0x14   :  { %1681 = vmatpush3.bf16.msra.mxu0 %v2010_v18  ;;  %v2053_v55 = vld [vmem:[%s2756_s1 + $0x190] sm:$0xff]   ;;  %v2056_v57 = vld [vmem:[%s2757_s0 + $0xe4] ss:$36 sps:$4 sm:$0xff]   ;;  %v2060_v60 = vld [vmem:[%s2756_s1 + $0x158] sm:$0xff]  }
  0x15   :  { %1745 = vmatpush3.bf16.msra.mxu1 %v2011_v19  ;;  %1682 = vmatprep.subr.bf16.mxu0 %v2012_v20  ;;  %v2059_v59 = vld [vmem:[%s2757_s0 + $0xe0] ss:$36 sps:$4 sm:$0xff]   ;;  %v2061_v61 = vld [vmem:[%s2756_s1 + $0x1d8] sm:$0xff]   ;;  %v2066_v1 = vld [vmem:[%s2757_s0 + $0x12c] ss:$36 sps:$4 sm:$0xff]  }
  0x16   :  { %1746 = vmatprep.subr.bf16.mxu1 %v2013_v21  ;;  %v2062_v62 = vld [vmem:[%s2756_s1 + $0x118] sm:$0xff]   ;;  %v2064_v0 = vld [vmem:[%s2757_s0 + $0x124] ss:$36 sps:$4 sm:$0xff]   ;;  %v2074_v8 = vld [vmem:[%s2757_s0 + $0x16c] ss:$36 sps:$4 sm:$0xff]  }
  0x17   :  { %v2063_v63 = vld [vmem:[%s2756_s1 + $0x198] sm:$0xff]   ;;  %v2068_v2 = vld [vmem:[%s2757_s0 + $0x120] ss:$36 sps:$4 sm:$0xff]   ;;  %v2069_v4 = vld [vmem:[%s2757_s0 + $0x128] ss:$36 sps:$4 sm:$0xff]  }
  0x18   :  { %1683 = vmatpush3.bf16.msra.mxu0 %v2014_v22  ;;  %v2070_v3 = vld [vmem:[%s2756_s1 + $0x160] sm:$0xff]   ;;  %v2076_v9 = vld [vmem:[%s2757_s0 + $0x174] ss:$36 sps:$4 sm:$0xff]   ;;  %v2080_v10 = vld [vmem:[%s2756_s1 + $0x168] sm:$0xff]  }
  0x19   :  { %1747 = vmatpush3.bf16.msra.mxu1 %v2015_v23  ;;  %1684 = vmatprep.subr.bf16.mxu0 %v2016_v24  ;;  %v2071_v5 = vld [vmem:[%s2756_s1 + $0x1e0] sm:$0xff]   ;;  %v2081_v11 = vld [vmem:[%s2756_s1 + $0x1e8] sm:$0xff]   ;;  %v2079_v15 = vld [vmem:[%s2757_s0 + $0x170] ss:$36 sps:$4 sm:$0xff]  }
  0x1a   :  { %1748 = vmatprep.subr.bf16.mxu1 %v2017_v25  ;;  %v2072_v6 = vld [vmem:[%s2756_s1 + $0x120] sm:$0xff]   ;;  %v2078_v12 = vld [vmem:[%s2757_s0 + $0x168] ss:$36 sps:$4 sm:$0xff]   ;;  %v2084_v16 = vld [vmem:[%s2757_s0 + $0x1b4] ss:$36 sps:$4 sm:$0xff]  }
  0x1b   :  { %v2073_v7 = vld [vmem:[%s2756_s1 + $0x1a0] sm:$0xff]   ;;  %v2082_v13 = vld [vmem:[%s2756_s1 + $0x128] sm:$0xff]   ;;  %v2090_v18 = vld [vmem:[%s2756_s1 + $0x170] sm:$0xff]  }
  0x1c   :  { %1685 = vmatpush3.bf16.msra.mxu0 %v2018_v26  ;;  %v2083_v14 = vld [vmem:[%s2756_s1 + $0x1a8] sm:$0xff]   ;;  %v2086_v17 = vld [vmem:[%s2757_s0 + $0x1bc] ss:$36 sps:$4 sm:$0xff]   ;;  %v2091_v19 = vld [vmem:[%s2756_s1 + $0x1f0] sm:$0xff]  }
  0x1d   :  { %1749 = vmatpush3.bf16.msra.mxu1 %v2019_v27  ;;  %1686 = vmatprep.subr.bf16.mxu0 %v2020_v28  ;;  %v2092_v20 = vld [vmem:[%s2756_s1 + $0x130] sm:$0xff]   ;;  %v85_v23 = vld [vmem:[%s2757_s0 + $0x1f8] sm:$0xff]  ;;  %v86_v25 = vld [vmem:[%s2757_s0 + $0x200] sm:$0xff] }
  0x1e   :  { %1750 = vmatprep.subr.bf16.mxu1 %v2021_v29  ;;  %v2088_v21 = vld [vmem:[%s2757_s0 + $0x1b0] ss:$36 sps:$4 sm:$0xff]   ;;  %v2089_v24 = vld [vmem:[%s2757_s0 + $0x1b8] ss:$36 sps:$4 sm:$0xff]   ;;  %v1592_v27 = vcombine.high %v85_v23, %v85_v23  ;;  %v1594_v29 = vcombine.high %v86_v25, %v86_v25  ;;  %v1591_v33 = vcombine.low %v85_v23, %v85_v23 }
  0x1f   :  { %v2093_v22 = vld [vmem:[%s2756_s1 + $0x1b0] sm:$0xff]   ;;  %v2098_v26 = vld [vmem:[%s2756_s1 + $0x178] sm:$0xff]  }
  0x20   :  { %1687 = vmatpush3.bf16.msra.mxu0 %v2022_v30  ;;  %v2099_v28 = vld [vmem:[%s2756_s1 + $0x1f8] sm:$0xff]  }
  0x21   :  { %1751 = vmatpush3.bf16.msra.mxu1 %v2023_v31  ;;  %1800 = vmatprep.subr.bf16.mxu0 %v2030_v36  ;;  %v2100_v30 = vld [vmem:[%s2756_s1 + $0x138] sm:$0xff]  }
  0x22   :  { %1864 = vmatprep.subr.bf16.mxu1 %v2031_v37  ;;  %v2101_v31 = vld [vmem:[%s2756_s1 + $0x1b8] sm:$0xff]   ;;  %v2102_v37 = vld [vmem:[%s2757_s0 + $0x10] ss:$36 sps:$4 sm:$0xff]  }
  0x23   :  { %1060 = vmatmul.mubr.bf16.vlgmr.msra.gmra.mrb[0].mxu0 %v2024_v32  ;;  %v2108_v32 = vld [vmem:[%s2756_s1 + $0x200] sm:$0xff]   ;;  %v2104_v35 = vld [vmem:[%s2757_s0 + $0x14] ss:$36 sps:$4 sm:$0xff]  }
  0x24   :  { %1156 = vmatmul.mubr.bf16.vlgmr.msra.gmra.mrb[0].mxu1 %v2027_v34  ;;  %1801 = vmatpush3.bf16.msra.mxu0 %v2032_v38  ;;  %v1593_v34 = vcombine.low %v86_v25, %v86_v25  ;;  %v2107_v36 = vld [vmem:[%s2757_s0 + $0x1c] ss:$36 sps:$4 sm:$0xff]  }
  0x25   :  { %1865 = vmatpush3.bf16.msra.mxu1 %v2033_v39  ;;  %1067 = vmatprep.mubr.bf16.mxu0 %v2034_v40  ;;  %v2105_v38 = vld [vmem:[%s2757_s0 + $0x18] ss:$36 sps:$4 sm:$0xff]   ;;  %v2111_v40 = vld [vmem:[%s2757_s0 + $0x64] ss:$36 sps:$4 sm:$0xff]  }
  0x26   :  { %1163 = vmatprep.mubr.bf16.mxu1 %v2036_v41  ;;  %1802 = vmatprep.subr.bf16.mxu0 %v2040_v44  ;;  %v2109_v39 = vld [vmem:[%s2757_s0 + $0x5c] ss:$36 sps:$4 sm:$0xff]   ;;  %v2115_v41 = vld [vmem:[%s2756_s1 + $0x208] sm:$0xff]  }
  0x27   :  { %1866 = vmatprep.subr.bf16.mxu1 %v2041_v45  ;;  %v2114_v44 = vld [vmem:[%s2757_s0 + $0x60] ss:$36 sps:$4 sm:$0xff]  }
  0x28   :  { %1803 = vmatpush3.bf16.msra.mxu0 %v2042_v46  ;;  %v2116_v45 = vld [vmem:[%s2757_s0 + $0xa4] ss:$36 sps:$4 sm:$0xff]   ;;  %v2118_v46 = vld [vmem:[%s2757_s0 + $0xac] ss:$36 sps:$4 sm:$0xff]  }
  0x29   :  { %1867 = vmatpush3.bf16.msra.mxu1 %v2043_v47  ;;  %1804 = vmatprep.subr.bf16.mxu0 %v2050_v52  ;;  %v2129_v47 = vld [vmem:[%s2756_s1 + $0x218] sm:$0xff]  }
  0x2a   :  { %1868 = vmatprep.subr.bf16.mxu1 %v2051_v53  ;;  %v2125_v52 = vld [vmem:[%s2757_s0 + $0xf4] ss:$36 sps:$4 sm:$0xff]   ;;  %v2143_v53 = vld [vmem:[%s2756_s1 + $0x228] sm:$0xff]  }
  0x2b   :  { %1068 = vmatmul.mubr.bf16.gmra.mrb[4].mxu0 %v2038_v42  ;;  %v2122_v42 = vld [vmem:[%s2756_s1 + $0x210] sm:$0xff]  }
  0x2c   :  { %1164 = vmatmul.mubr.bf16.gmra.mrb[4].mxu1 %v2039_v43  ;;  %1075 = vmatprep.mubr.bf16.mxu0 %v2044_v48  ;;  %v2113_v43 = vld [vmem:[%s2757_s0 + $0x58] ss:$36 sps:$4 sm:$0xff]   ;;  %v2120_v48 = vld [vmem:[%s2757_s0 + $0xa0] ss:$36 sps:$4 sm:$0xff]  }
  0x2d   :  { %1171 = vmatprep.mubr.bf16.mxu1 %v2046_v49  ;;  %1805 = vmatpush3.bf16.msra.mxu0 %v2052_v54  ;;  %v2136_v49 = vld [vmem:[%s2756_s1 + $0x220] sm:$0xff]   ;;  %v2150_v54 = vld [vmem:[%s2756_s1 + $0x230] sm:$0xff]  }
  0x2e   :  { %1869 = vmatpush3.bf16.msra.mxu1 %v2053_v55  ;;  %1806 = vmatprep.subr.bf16.mxu0 %v2060_v60  ;;  %v2127_v55 = vld [vmem:[%s2757_s0 + $0xe8] ss:$36 sps:$4 sm:$0xff]   ;;  %v2134_v60 = vld [vmem:[%s2757_s0 + $0x130] ss:$36 sps:$4 sm:$0xff]  }
  0x2f   :  { %1870 = vmatprep.subr.bf16.mxu1 %v2061_v61  ;;  %v2135_v61 = vld [vmem:[%s2757_s0 + $0x138] ss:$36 sps:$4 sm:$0xff]  }
  0x31   :  { %1807 = vmatpush3.bf16.msra.mxu0 %v2062_v62  ;;  %v2137_v62 = vld [vmem:[%s2757_s0 + $0x17c] ss:$36 sps:$4 sm:$0xff]  }
  0x32   :  { %1871 = vmatpush3.bf16.msra.mxu1 %v2063_v63  ;;  %1808 = vmatprep.subr.bf16.mxu0 %v2070_v3  ;;  %v2139_v63 = vld [vmem:[%s2757_s0 + $0x184] ss:$36 sps:$4 sm:$0xff]   ;;  %v2146_v3 = vld [vmem:[%s2757_s0 + $0x1cc] ss:$36 sps:$4 sm:$0xff]  }
  0x33   :  { %1076 = vmatmul.mubr.bf16.gmra.mrb[8].mxu0 %v2048_v50  ;;  %1872 = vmatprep.subr.bf16.mxu1 %v2071_v5  ;;  %v2121_v50 = vld [vmem:[%s2757_s0 + $0xa8] ss:$36 sps:$4 sm:$0xff]   ;;  %v88_v5 = vld [vmem:[%s2757_s0 + $0x210] sm:$0xff] }
  0x34   :  { %1172 = vmatmul.mubr.bf16.gmra.mrb[8].mxu1 %v2049_v51  ;;  %1083 = vmatprep.mubr.bf16.mxu0 %v2054_v56  ;;  %v2123_v51 = vld [vmem:[%s2757_s0 + $0xec] ss:$36 sps:$4 sm:$0xff]  }
  0x35   :  { %1179 = vmatprep.mubr.bf16.mxu1 %v2056_v57  ;;  %1809 = vmatpush3.bf16.msra.mxu0 %v2072_v6  ;;  %v2128_v56 = vld [vmem:[%s2757_s0 + $0xf0] ss:$36 sps:$4 sm:$0xff]   ;;  %v2148_v6 = vld [vmem:[%s2757_s0 + $0x1c0] ss:$36 sps:$4 sm:$0xff]  }
  0x36   :  { %1873 = vmatpush3.bf16.msra.mxu1 %v2073_v7  ;;  %1810 = vmatprep.subr.bf16.mxu0 %v2080_v10  ;;  %v2130_v57 = vld [vmem:[%s2757_s0 + $0x134] ss:$36 sps:$4 sm:$0xff]   ;;  %v2149_v7 = vld [vmem:[%s2757_s0 + $0x1c8] ss:$36 sps:$4 sm:$0xff]  }
  0x37   :  { %1874 = vmatprep.subr.bf16.mxu1 %v2081_v11  ;;  %v1597_v11 = vcombine.low %v88_v5, %v88_v5 }
  0x39   :  { %1811 = vmatpush3.bf16.msra.mxu0 %v2082_v13  ;;  %v2157_v13 = vld [vmem:[%s2757_s0 + $0x140] ss:$36 sps:$4 sm:$0xff]  }
  0x3a   :  { %1875 = vmatpush3.bf16.msra.mxu1 %v2083_v14  ;;  %1812 = vmatprep.subr.bf16.mxu0 %v2090_v18  ;;  %v2158_v14 = vld [vmem:[%s2757_s0 + $0x68] ss:$36 sps:$4 sm:$0xff]   ;;  %v2162_v18 = vld [vmem:[%s2757_s0 + $0xf8] ss:$36 sps:$4 sm:$0xff]  }
  0x3b   :  { %1084 = vmatmul.mubr.bf16.gmra.mrb[12].mxu0 %v2058_v58  ;;  %1876 = vmatprep.subr.bf16.mxu1 %v2091_v19  ;;  %v2132_v58 = vld [vmem:[%s2757_s0 + $0x13c] ss:$36 sps:$4 sm:$0xff]   ;;  %v2163_v19 = vld [vmem:[%s2757_s0 + $0x218] ss:$0 sps:$4 sm:$0xff]  }
  0x3c   :  { %1180 = vmatmul.mubr.bf16.gmra.mrb[12].mxu1 %v2059_v59  ;;  %1091 = vmatprep.mubr.bf16.mxu0 %v2064_v0  ;;  %v2155_v59 = vld [vmem:[%s2756_s1 + $0x238] sm:$0xff]  }
  0x3d   :  { %1187 = vmatprep.mubr.bf16.mxu1 %v2066_v1  ;;  %1813 = vmatpush3.bf16.msra.mxu0 %v2092_v20  ;;  %v2141_v0 = vld [vmem:[%s2757_s0 + $0x178] ss:$36 sps:$4 sm:$0xff]   ;;  %v2142_v1 = vld [vmem:[%s2757_s0 + $0x180] ss:$36 sps:$4 sm:$0xff]  }
  0x3e   :  { %1877 = vmatpush3.bf16.msra.mxu1 %v2093_v22  ;;  %1814 = vmatprep.subr.bf16.mxu0 %v2098_v26  ;;  %v2607_v22 = vld [vmem:[%s2758_s2] ss:$0 sm:$0xff] }
  0x3f   :  { %1878 = vmatprep.subr.bf16.mxu1 %v2099_v28 }
  0x41   :  { %1815 = vmatpush3.bf16.msra.mxu0 %v2100_v30 }
  0x42   :  { %1879 = vmatpush3.bf16.msra.mxu1 %v2101_v31  ;;  %1944 = vmatprep.subr.bf16.mxu0 %v2108_v32 }
  0x43   :  { %1092 = vmatmul.mubr.bf16.gmra.mrb[16].mxu0 %v2068_v2  ;;  %1976 = vmatprep.subr.bf16.mxu1 %v2108_v32  ;;  %v2144_v2 = vld [vmem:[%s2757_s0 + $0x1c4] ss:$36 sps:$4 sm:$0xff]  }
  0x44   :  { %1188 = vmatmul.mubr.bf16.gmra.mrb[16].mxu1 %v2069_v4  ;;  %1099 = vmatprep.mubr.bf16.mxu0 %v2074_v8  ;;  %v87_v4 = vld [vmem:[%s2757_s0 + $0x208] sm:$0xff] }
  0x45   :  { %1195 = vmatprep.mubr.bf16.mxu1 %v2076_v9  ;;  %v1596_v8 = vcombine.high %v87_v4, %v87_v4  ;;  %v1598_v9 = vcombine.high %v88_v5, %v88_v5  ;;  %v1595_v10 = vcombine.low %v87_v4, %v87_v4 }
  0x4b   :  { %1100 = vmatmul.mubr.bf16.gmra.mrb[20].mxu0 %v2078_v12  ;;  %v2156_v12 = vld [vmem:[%s2757_s0 + $0x20] ss:$36 sps:$4 sm:$0xff]  }
  0x4c   :  { %1196 = vmatmul.mubr.bf16.gmra.mrb[20].mxu1 %v2079_v15  ;;  %1107 = vmatprep.mubr.bf16.mxu0 %v2084_v16  ;;  %v2159_v15 = vld [vmem:[%s2757_s0 + $0x188] ss:$36 sps:$4 sm:$0xff]   ;;  %v2160_v16 = vld [vmem:[%s2757_s0 + $0xb0] ss:$36 sps:$4 sm:$0xff]  }
  0x4d   :  { %1203 = vmatprep.mubr.bf16.mxu1 %v2086_v17  ;;  %v2161_v17 = vld [vmem:[%s2757_s0 + $0x1d0] ss:$36 sps:$4 sm:$0xff]  }
  0x53   :  { %1108 = vmatmul.mubr.bf16.gmra.mrb[24].mxu0 %v2088_v21 }
  0x54   :  { %1204 = vmatmul.mubr.bf16.gmra.mrb[24].mxu1 %v2089_v24  ;;  %1115 = vmatprep.mubr.bf16.mxu0 %v1592_v27 }
  0x55   :  { %1211 = vmatprep.mubr.bf16.mxu1 %v1594_v29 }
  0x5b   :  { %1116 = vmatmul.mubr.bf16.gmra.mrb[28].mxu0 %v1591_v33 }
  0x5c   :  { %1212 = vmatmul.mubr.bf16.gmra.mrb[28].mxu1 %v1593_v34  ;;  %1251 = vmatprep.mubr.bf16.mxu0 %v2104_v35 }
  0x5d   :  { %1347 = vmatprep.mubr.bf16.mxu1 %v2107_v36 }
  0x63   :  { %1252 = vmatmul.mubr.bf16.vlgmr.msra.gmra.mrb[32].mxu0 %v2102_v37 }
  0x64   :  { %1348 = vmatmul.mubr.bf16.vlgmr.msra.gmra.mrb[32].mxu1 %v2105_v38  ;;  %1945 = vmatpush3.bf16.msra.mxu0 %v2108_v32 }
  0x65   :  { %1984 = vmatpush3.bf16.msra.mxu1 %v2108_v32  ;;  %1259 = vmatprep.mubr.bf16.mxu0 %v2109_v39 }
  0x66   :  { %1355 = vmatprep.mubr.bf16.mxu1 %v2111_v40  ;;  %1946 = vmatprep.subr.bf16.mxu0 %v2115_v41 }
  0x67   :  { %1977 = vmatprep.subr.bf16.mxu1 %v2115_v41 }
  0x68   :  { %1947 = vmatpush3.bf16.msra.mxu0 %v2115_v41 }
  0x69   :  { %1985 = vmatpush3.bf16.msra.mxu1 %v2115_v41  ;;  %1948 = vmatprep.subr.bf16.mxu0 %v2122_v42 }
  0x6a   :  { %1978 = vmatprep.subr.bf16.mxu1 %v2122_v42 }
  0x6b   :  { %1260 = vmatmul.mubr.bf16.gmra.mrb[36].mxu0 %v2113_v43 }
  0x6c   :  { %1356 = vmatmul.mubr.bf16.gmra.mrb[36].mxu1 %v2114_v44  ;;  %1267 = vmatprep.mubr.bf16.mxu0 %v2116_v45 }
  0x6d   :  { %1363 = vmatprep.mubr.bf16.mxu1 %v2118_v46  ;;  %1949 = vmatpush3.bf16.msra.mxu0 %v2122_v42 }
  0x6e   :  { %1986 = vmatpush3.bf16.msra.mxu1 %v2122_v42  ;;  %1950 = vmatprep.subr.bf16.mxu0 %v2129_v47 }
  0x6f   :  { %1979 = vmatprep.subr.bf16.mxu1 %v2129_v47 }
  0x71   :  { %1951 = vmatpush3.bf16.msra.mxu0 %v2129_v47 }
  0x72   :  { %1987 = vmatpush3.bf16.msra.mxu1 %v2129_v47  ;;  %1952 = vmatprep.subr.bf16.mxu0 %v2136_v49 }
  0x73   :  { %1268 = vmatmul.mubr.bf16.gmra.mrb[40].mxu0 %v2120_v48  ;;  %1980 = vmatprep.subr.bf16.mxu1 %v2136_v49 }
  0x74   :  { %1364 = vmatmul.mubr.bf16.gmra.mrb[40].mxu1 %v2121_v50  ;;  %1275 = vmatprep.mubr.bf16.mxu0 %v2123_v51 }
  0x75   :  { %1371 = vmatprep.mubr.bf16.mxu1 %v2125_v52  ;;  %1953 = vmatpush3.bf16.msra.mxu0 %v2136_v49 }
  0x76   :  { %1988 = vmatpush3.bf16.msra.mxu1 %v2136_v49  ;;  %1954 = vmatprep.subr.bf16.mxu0 %v2143_v53 }
  0x77   :  { %1981 = vmatprep.subr.bf16.mxu1 %v2143_v53 }
  0x79   :  { %1955 = vmatpush3.bf16.msra.mxu0 %v2143_v53 }
  0x7a   :  { %1989 = vmatpush3.bf16.msra.mxu1 %v2143_v53  ;;  %1956 = vmatprep.subr.bf16.mxu0 %v2150_v54 }
  0x7b   :  { %1276 = vmatmul.mubr.bf16.gmra.mrb[44].mxu0 %v2127_v55  ;;  %1982 = vmatprep.subr.bf16.mxu1 %v2150_v54 }
  0x7c   :  { %1372 = vmatmul.mubr.bf16.gmra.mrb[44].mxu1 %v2128_v56  ;;  %1283 = vmatprep.mubr.bf16.mxu0 %v2130_v57 }
  0x7d   :  { %1379 = vmatprep.mubr.bf16.mxu1 %v2132_v58  ;;  %1957 = vmatpush3.bf16.msra.mxu0 %v2150_v54 }
  0x7e   :  { %1990 = vmatpush3.bf16.msra.mxu1 %v2150_v54  ;;  %1958 = vmatprep.subr.bf16.mxu0 %v2155_v59 }
  0x7f   :  { %1983 = vmatprep.subr.bf16.mxu1 %v2155_v59 }
  0x81   :  { %1959 = vmatpush3.bf16.msra.mxu0 %v2155_v59 }
  0x82   :  { %1991 = vmatpush3.bf16.msra.mxu1 %v2155_v59 }
  0x83   :  { %1284 = vmatmul.mubr.bf16.gmra.mrb[48].mxu0 %v2134_v60 }
  0x84   :  { %1380 = vmatmul.mubr.bf16.gmra.mrb[48].mxu1 %v2135_v61  ;;  %1291 = vmatprep.mubr.bf16.mxu0 %v2137_v62 }
  0x85   :  { %1387 = vmatprep.mubr.bf16.mxu1 %v2139_v63 }
  0x8b   :  { %1292 = vmatmul.mubr.bf16.gmra.mrb[52].mxu0 %v2141_v0 }
  0x8c   :  { %1388 = vmatmul.mubr.bf16.gmra.mrb[52].mxu1 %v2142_v1  ;;  %1299 = vmatprep.mubr.bf16.mxu0 %v2144_v2 }
  0x8d   :  { %1395 = vmatprep.mubr.bf16.mxu1 %v2146_v3 }
  0x93   :  { %1300 = vmatmul.mubr.bf16.gmra.mrb[56].mxu0 %v2148_v6 }
  0x94   :  { %1396 = vmatmul.mubr.bf16.gmra.mrb[56].mxu1 %v2149_v7  ;;  %1307 = vmatprep.mubr.bf16.mxu0 %v1596_v8 }
  0x95   :  { %1403 = vmatprep.mubr.bf16.mxu1 %v1598_v9 }
  0x9b   :  { %1308 = vmatmul.mubr.bf16.gmra.mrb[60].mxu0 %v1595_v10 }
  0x9c   :  { %1404 = vmatmul.mubr.bf16.gmra.mrb[60].mxu1 %v1597_v11  ;;  %1960 = vmatprep.mubr.bf16.mxu0 %v2156_v12 }
  0x9d   :  { %1968 = vmatprep.mubr.bf16.mxu1 %v2157_v13 }
  0xa3   :  { %1961 = vmatmul.mubr.bf16.vlgmr.msra.gmra.mrb[64].mxu0 %v2158_v14 }
  0xa4   :  { %1969 = vmatmul.mubr.bf16.vlgmr.msra.gmra.mrb[64].mxu1 %v2159_v15  ;;  %1964 = vmatprep.mubr.bf16.mxu0 %v2160_v16 }
  0xa5   :  { %1972 = vmatprep.mubr.bf16.mxu1 %v2161_v17 }
  0xab   :  { %1965 = vmatmul.mubr.bf16.gmra.mrb[68].mxu0 %v2162_v18 }
  0xac   :  { %1973 = vmatmul.mubr.bf16.gmra.mrb[68].mxu1 %v2163_v19 }
  0xf6   :  { %v1688_v20 = vpop.f32.mrb[0].mxu0 }
  0xf7   :  { %v1752_v21 = vpop.f32.mrb[0].mxu1  ;;  %v1689_v23 = vpop.f32.mrb[1].mxu0 }
  0xf8   :  { %v1690_v24 = vadd.f32 %v1689_v23, %v1688_v20  ;;  %v1753_v25 = vpop.f32.mrb[1].mxu1  ;;  %v1691_v26 = vpop.f32.mrb[2].mxu0 }
  0xf9   :  { %v1754_v27 = vadd.f32 %v1753_v25, %v1752_v21  ;;  %v1755_v28 = vpop.f32.mrb[2].mxu1  ;;  %v1692_v29 = vpop.f32.mrb[3].mxu0 }
  0xfa   :  { %v1062_v30 = vadd.f32 %v1690_v24, %v2607_v22  ;;  %v1693_v31 = vadd.f32 %v1692_v29, %v1691_v26  ;;  %v1756_v32 = vpop.f32.mrb[3].mxu1 }
  0xfb   :  { %v1757_v33 = vadd.f32 %v1756_v32, %v1755_v28 }
  0xfc   :  { %v2610_v34 = vadd.f32 %v1754_v27, %v1062_v30  ;;  %v1065_v35 = vadd.f32 %v1693_v31, %v2607_v22 }
  0xfe   :  { %v2613_v36 = vadd.f32 %v1757_v33, %v1065_v35  ;;  %v1694_v37 = vpop.f32.mrb[4].mxu0 }
  0xff   :  { %v1758_v38 = vpop.f32.mrb[4].mxu1  ;;  %v1695_v39 = vpop.f32.mrb[5].mxu0 }
 0x100   :  { %v1696_v40 = vadd.f32 %v1695_v39, %v1694_v37  ;;  %v1759_v41 = vpop.f32.mrb[5].mxu1  ;;  %v1697_v42 = vpop.f32.mrb[6].mxu0 }
 0x101   :  { %v1760_v43 = vadd.f32 %v1759_v41, %v1758_v38  ;;  %v1761_v44 = vpop.f32.mrb[6].mxu1  ;;  %v1698_v45 = vpop.f32.mrb[7].mxu0 }
 0x102   :  { %v1070_v46 = vadd.f32 %v1696_v40, %v2607_v22  ;;  %v1699_v47 = vadd.f32 %v1698_v45, %v1697_v42  ;;  %v1762_v48 = vpop.f32.mrb[7].mxu1 }
 0x103   :  { %v1763_v49 = vadd.f32 %v1762_v48, %v1761_v44 }
 0x104   :  { %v2616_v50 = vadd.f32 %v1760_v43, %v1070_v46  ;;  %v1073_v51 = vadd.f32 %v1699_v47, %v2607_v22 }
 0x106   :  { %v2619_v52 = vadd.f32 %v1763_v49, %v1073_v51  ;;  %v1700_v53 = vpop.f32.mrb[8].mxu0 }
 0x107   :  { %v1764_v54 = vpop.f32.mrb[8].mxu1  ;;  %v1701_v55 = vpop.f32.mrb[9].mxu0 }
 0x108   :  { %v1702_v56 = vadd.f32 %v1701_v55, %v1700_v53  ;;  %v1765_v57 = vpop.f32.mrb[9].mxu1  ;;  %v1703_v58 = vpop.f32.mrb[10].mxu0 }
 0x109   :  { %v1766_v59 = vadd.f32 %v1765_v57, %v1764_v54  ;;  %v1767_v60 = vpop.f32.mrb[10].mxu1  ;;  %v1704_v61 = vpop.f32.mrb[11].mxu0 }
 0x10a   :  { %v1078_v62 = vadd.f32 %v1702_v56, %v2607_v22  ;;  %v1705_v63 = vadd.f32 %v1704_v61, %v1703_v58  ;;  %v1768_v0 = vpop.f32.mrb[11].mxu1 }
 0x10b   :  { %v1769_v1 = vadd.f32 %v1768_v0, %v1767_v60 }
 0x10c   :  { %v2622_v2 = vadd.f32 %v1766_v59, %v1078_v62  ;;  %v1081_v3 = vadd.f32 %v1705_v63, %v2607_v22 }
 0x10e   :  { %v2625_v4 = vadd.f32 %v1769_v1, %v1081_v3  ;;  %v1706_v5 = vpop.f32.mrb[12].mxu0 }
 0x10f   :  { %v1770_v6 = vpop.f32.mrb[12].mxu1  ;;  %v1707_v7 = vpop.f32.mrb[13].mxu0 }
 0x110   :  { %v1708_v8 = vadd.f32 %v1707_v7, %v1706_v5  ;;  %v1771_v9 = vpop.f32.mrb[13].mxu1  ;;  %v1709_v10 = vpop.f32.mrb[14].mxu0 }
 0x111   :  { %v1772_v11 = vadd.f32 %v1771_v9, %v1770_v6  ;;  %v1773_v12 = vpop.f32.mrb[14].mxu1  ;;  %v1710_v13 = vpop.f32.mrb[15].mxu0 }
 0x112   :  { %v1086_v14 = vadd.f32 %v1708_v8, %v2607_v22  ;;  %v1711_v15 = vadd.f32 %v1710_v13, %v1709_v10  ;;  %v1774_v16 = vpop.f32.mrb[15].mxu1 }
 0x113   :  { %v1775_v17 = vadd.f32 %v1774_v16, %v1773_v12 }
 0x114   :  { %v2628_v18 = vadd.f32 %v1772_v11, %v1086_v14  ;;  %v1089_v19 = vadd.f32 %v1711_v15, %v2607_v22 }
 0x116   :  { %v2631_v20 = vadd.f32 %v1775_v17, %v1089_v19  ;;  %v1712_v21 = vpop.f32.mrb[16].mxu0 }
 0x117   :  { %v1776_v23 = vpop.f32.mrb[16].mxu1  ;;  %v1713_v24 = vpop.f32.mrb[17].mxu0 }
 0x118   :  { %v1714_v25 = vadd.f32 %v1713_v24, %v1712_v21  ;;  %v1777_v26 = vpop.f32.mrb[17].mxu1  ;;  %v1715_v27 = vpop.f32.mrb[18].mxu0 }
 0x119   :  { %v1778_v28 = vadd.f32 %v1777_v26, %v1776_v23  ;;  %v1779_v29 = vpop.f32.mrb[18].mxu1  ;;  %v1716_v30 = vpop.f32.mrb[19].mxu0 }
 0x11a   :  { %v1094_v31 = vadd.f32 %v1714_v25, %v2607_v22  ;;  %v1717_v32 = vadd.f32 %v1716_v30, %v1715_v27  ;;  %v1780_v33 = vpop.f32.mrb[19].mxu1 }
 0x11b   :  { %v1781_v35 = vadd.f32 %v1780_v33, %v1779_v29 }
 0x11c   :  { %v2634_v37 = vadd.f32 %v1778_v28, %v1094_v31  ;;  %v1097_v38 = vadd.f32 %v1717_v32, %v2607_v22 }
 0x11e   :  { %v2637_v39 = vadd.f32 %v1781_v35, %v1097_v38  ;;  %v1718_v40 = vpop.f32.mrb[20].mxu0 }
 0x11f   :  { %v1782_v41 = vpop.f32.mrb[20].mxu1  ;;  %v1719_v42 = vpop.f32.mrb[21].mxu0 }
 0x120   :  { %v1720_v43 = vadd.f32 %v1719_v42, %v1718_v40  ;;  %v1783_v44 = vpop.f32.mrb[21].mxu1  ;;  %v1721_v45 = vpop.f32.mrb[22].mxu0 }
 0x121   :  { %v1784_v46 = vadd.f32 %v1783_v44, %v1782_v41  ;;  %v1785_v47 = vpop.f32.mrb[22].mxu1  ;;  %v1722_v48 = vpop.f32.mrb[23].mxu0 }
 0x122   :  { %v1102_v49 = vadd.f32 %v1720_v43, %v2607_v22  ;;  %v1723_v51 = vadd.f32 %v1722_v48, %v1721_v45  ;;  %v1786_v53 = vpop.f32.mrb[23].mxu1 }
 0x123   :  { %v1787_v54 = vadd.f32 %v1786_v53, %v1785_v47 }
 0x124   :  { %v2640_v55 = vadd.f32 %v1784_v46, %v1102_v49  ;;  %v1105_v56 = vadd.f32 %v1723_v51, %v2607_v22 }
 0x126   :  { %v2643_v57 = vadd.f32 %v1787_v54, %v1105_v56  ;;  %v1724_v58 = vpop.f32.mrb[24].mxu0 }
 0x127   :  { %v1788_v59 = vpop.f32.mrb[24].mxu1  ;;  %v1725_v60 = vpop.f32.mrb[25].mxu0 }
 0x128   :  { %v1726_v61 = vadd.f32 %v1725_v60, %v1724_v58  ;;  %v1789_v62 = vpop.f32.mrb[25].mxu1  ;;  %v1727_v63 = vpop.f32.mrb[26].mxu0 }
 0x129   :  { %v1790_v0 = vadd.f32 %v1789_v62, %v1788_v59  ;;  %v1791_v1 = vpop.f32.mrb[26].mxu1  ;;  %v1728_v3 = vpop.f32.mrb[27].mxu0 }
 0x12a   :  { %v1110_v5 = vadd.f32 %v1726_v61, %v2607_v22  ;;  %v1729_v6 = vadd.f32 %v1728_v3, %v1727_v63  ;;  %v1792_v7 = vpop.f32.mrb[27].mxu1 }
 0x12b   :  { %v1793_v8 = vadd.f32 %v1792_v7, %v1791_v1 }
 0x12c   :  { %v2646_v9 = vadd.f32 %v1790_v0, %v1110_v5  ;;  %v1113_v10 = vadd.f32 %v1729_v6, %v2607_v22 }
 0x12e   :  { %v2649_v11 = vadd.f32 %v1793_v8, %v1113_v10  ;;  %v1730_v12 = vpop.f32.mrb[28].mxu0 }
 0x12f   :  { %v1794_v13 = vpop.f32.mrb[28].mxu1  ;;  %v1731_v14 = vpop.f32.mrb[29].mxu0 }
 0x130   :  { %v1732_v15 = vadd.f32 %v1731_v14, %v1730_v12  ;;  %v1795_v16 = vpop.f32.mrb[29].mxu1  ;;  %v1733_v17 = vpop.f32.mrb[30].mxu0 }
 0x131   :  { %v1796_v19 = vadd.f32 %v1795_v16, %v1794_v13  ;;  %v1797_v21 = vpop.f32.mrb[30].mxu1  ;;  %v1734_v23 = vpop.f32.mrb[31].mxu0 }
 0x132   :  { %v1118_v24 = vadd.f32 %v1732_v15, %v2607_v22  ;;  %v1798_v25 = vpop.f32.mrb[31].mxu1 }
 0x134   :  { %v2652_v26 = vadd.f32 %v1796_v19, %v1118_v24 }
 0x136   :  { %v1816_v27 = vpop.f32.mrb[32].mxu0 }
 0x137   :  { %v1880_v28 = vpop.f32.mrb[32].mxu1  ;;  %v1817_v29 = vpop.f32.mrb[33].mxu0 }
 0x138   :  { %v1818_v30 = vadd.f32 %v1817_v29, %v1816_v27  ;;  %v1881_v31 = vpop.f32.mrb[33].mxu1  ;;  %v1819_v32 = vpop.f32.mrb[34].mxu0 }
 0x139   :  { %v1882_v33 = vadd.f32 %v1881_v31, %v1880_v28  ;;  %v1883_v35 = vpop.f32.mrb[34].mxu1  ;;  %v1820_v38 = vpop.f32.mrb[35].mxu0 }
 0x13a   :  { %v1254_v40 = vadd.f32 %v1818_v30, %v2610_v34  ;;  %v1821_v41 = vadd.f32 %v1820_v38, %v1819_v32  ;;  %v1884_v42 = vpop.f32.mrb[35].mxu1 }
 0x13b   :  { %v1885_v43 = vadd.f32 %v1884_v42, %v1883_v35 }
 0x13c   :  { %v1257_v44 = vadd.f32 %v1821_v41, %v2613_v36  ;;  %v2656_v22 = vadd.f32 %v1882_v33, %v1254_v40 }
 0x13e   :  { %v1822_v45 = vpop.f32.mrb[36].mxu0  ;;  %v2658_v46 = vadd.f32 %v1885_v43, %v1257_v44 }
 0x13f   :  { %v1886_v47 = vpop.f32.mrb[36].mxu1  ;;  %v1823_v48 = vpop.f32.mrb[37].mxu0 }
 0x140   :  { %v1824_v49 = vadd.f32 %v1823_v48, %v1822_v45  ;;  %v1887_v51 = vpop.f32.mrb[37].mxu1  ;;  %v1825_v53 = vpop.f32.mrb[38].mxu0 }
 0x141   :  { %v1888_v54 = vadd.f32 %v1887_v51, %v1886_v47  ;;  %v1889_v56 = vpop.f32.mrb[38].mxu1  ;;  %v1826_v58 = vpop.f32.mrb[39].mxu0 }
 0x142   :  { %v1262_v34 = vadd.f32 %v1824_v49, %v2616_v50  ;;  %v1827_v59 = vadd.f32 %v1826_v58, %v1825_v53  ;;  %v1890_v60 = vpop.f32.mrb[39].mxu1 }
 0x143   :  { %v1891_v61 = vadd.f32 %v1890_v60, %v1889_v56 }
 0x144   :  { %v1265_v36 = vadd.f32 %v1827_v59, %v2619_v52  ;;  %v2662_v62 = vadd.f32 %v1888_v54, %v1262_v34 }
 0x146   :  { %v1828_v63 = vpop.f32.mrb[40].mxu0  ;;  %v2664_v0 = vadd.f32 %v1891_v61, %v1265_v36 }
 0x147   :  { %v1892_v1 = vpop.f32.mrb[40].mxu1  ;;  %v1829_v3 = vpop.f32.mrb[41].mxu0 }
 0x148   :  { %v1830_v5 = vadd.f32 %v1829_v3, %v1828_v63  ;;  %v1893_v6 = vpop.f32.mrb[41].mxu1  ;;  %v1831_v7 = vpop.f32.mrb[42].mxu0 }
 0x149   :  { %v1894_v8 = vadd.f32 %v1893_v6, %v1892_v1  ;;  %v1895_v10 = vpop.f32.mrb[42].mxu1  ;;  %v1832_v12 = vpop.f32.mrb[43].mxu0 }
 0x14a   :  { %v1270_v50 = vadd.f32 %v1830_v5, %v2622_v2  ;;  %v1833_v13 = vadd.f32 %v1832_v12, %v1831_v7  ;;  %v1896_v14 = vpop.f32.mrb[43].mxu1 }
 0x14b   :  { %v1897_v15 = vadd.f32 %v1896_v14, %v1895_v10 }
 0x14c   :  { %v1273_v52 = vadd.f32 %v1833_v13, %v2625_v4  ;;  %v2668_v16 = vadd.f32 %v1894_v8, %v1270_v50 }
 0x14e   :  { %v1834_v17 = vpop.f32.mrb[44].mxu0  ;;  %v2670_v19 = vadd.f32 %v1897_v15, %v1273_v52 }
 0x14f   :  { %v1898_v21 = vpop.f32.mrb[44].mxu1  ;;  %v1835_v23 = vpop.f32.mrb[45].mxu0 }
 0x150   :  { %v1836_v24 = vadd.f32 %v1835_v23, %v1834_v17  ;;  %v1899_v25 = vpop.f32.mrb[45].mxu1  ;;  %v1837_v27 = vpop.f32.mrb[46].mxu0 }
 0x151   :  { %v1900_v28 = vadd.f32 %v1899_v25, %v1898_v21  ;;  %v1901_v29 = vpop.f32.mrb[46].mxu1  ;;  %v1838_v30 = vpop.f32.mrb[47].mxu0 }
 0x152   :  { %v1278_v2 = vadd.f32 %v1836_v24, %v2628_v18  ;;  %v1839_v31 = vadd.f32 %v1838_v30, %v1837_v27  ;;  %v1902_v32 = vpop.f32.mrb[47].mxu1 }
 0x153   :  { %v1903_v33 = vadd.f32 %v1902_v32, %v1901_v29 }
 0x154   :  { %v1281_v4 = vadd.f32 %v1839_v31, %v2631_v20  ;;  %v2674_v35 = vadd.f32 %v1900_v28, %v1278_v2 }
 0x156   :  { %v1840_v38 = vpop.f32.mrb[48].mxu0  ;;  %v2676_v40 = vadd.f32 %v1903_v33, %v1281_v4 }
 0x157   :  { %v1904_v41 = vpop.f32.mrb[48].mxu1  ;;  %v1841_v42 = vpop.f32.mrb[49].mxu0 }
 0x158   :  { %v1842_v43 = vadd.f32 %v1841_v42, %v1840_v38  ;;  %v1905_v44 = vpop.f32.mrb[49].mxu1  ;;  %v1843_v45 = vpop.f32.mrb[50].mxu0 }
 0x159   :  { %v1906_v47 = vadd.f32 %v1905_v44, %v1904_v41  ;;  %v1907_v48 = vpop.f32.mrb[50].mxu1  ;;  %v1844_v49 = vpop.f32.mrb[51].mxu0 }
 0x15a   :  { %v1286_v18 = vadd.f32 %v1842_v43, %v2634_v37  ;;  %v1845_v51 = vadd.f32 %v1844_v49, %v1843_v45  ;;  %v1908_v53 = vpop.f32.mrb[51].mxu1 }
 0x15b   :  { %v1909_v54 = vadd.f32 %v1908_v53, %v1907_v48 }
 0x15c   :  { %v1289_v20 = vadd.f32 %v1845_v51, %v2637_v39  ;;  %v1382_v56 = vadd.f32 %v1906_v47, %v1286_v18 }
 0x15e   :  { %v1846_v58 = vpop.f32.mrb[52].mxu0  ;;  %v2680_v34 = vadd.f32 %v1909_v54, %v1289_v20 }
 0x15f   :  { %v1910_v59 = vpop.f32.mrb[52].mxu1  ;;  %v1847_v60 = vpop.f32.mrb[53].mxu0 }
 0x160   :  { %v1848_v61 = vadd.f32 %v1847_v60, %v1846_v58  ;;  %v1911_v36 = vpop.f32.mrb[53].mxu1  ;;  %v1849_v63 = vpop.f32.mrb[54].mxu0 }
 0x161   :  { %v1912_v1 = vadd.f32 %v1911_v36, %v1910_v59  ;;  %v1913_v3 = vpop.f32.mrb[54].mxu1  ;;  %v1850_v5 = vpop.f32.mrb[55].mxu0 }
 0x162   :  { %v1294_v6 = vadd.f32 %v1848_v61, %v2640_v55  ;;  %v1851_v37 = vadd.f32 %v1850_v5, %v1849_v63  ;;  %v1914_v7 = vpop.f32.mrb[55].mxu1 }
 0x163   :  { %v1915_v8 = vadd.f32 %v1914_v7, %v1913_v3 }
 0x164   :  { %v1297_v10 = vadd.f32 %v1851_v37, %v2643_v57  ;;  %v1390_v39 = vadd.f32 %v1912_v1, %v1294_v6 }
 0x166   :  { %v1852_v12 = vpop.f32.mrb[56].mxu0  ;;  %v1393_v50 = vadd.f32 %v1915_v8, %v1297_v10 }
 0x167   :  { %v1916_v13 = vpop.f32.mrb[56].mxu1  ;;  %v1853_v14 = vpop.f32.mrb[57].mxu0 }
 0x168   :  { %v1854_v15 = vadd.f32 %v1853_v14, %v1852_v12  ;;  %v1917_v52 = vpop.f32.mrb[57].mxu1  ;;  %v1855_v17 = vpop.f32.mrb[58].mxu0 }
 0x169   :  { %v1918_v21 = vadd.f32 %v1917_v52, %v1916_v13  ;;  %v1919_v23 = vpop.f32.mrb[58].mxu1  ;;  %v1856_v24 = vpop.f32.mrb[59].mxu0 }
 0x16a   :  { %v1302_v25 = vadd.f32 %v1854_v15, %v2646_v9  ;;  %v1857_v27 = vadd.f32 %v1856_v24, %v1855_v17  ;;  %v1920_v55 = vpop.f32.mrb[59].mxu1 }
 0x16b   :  { %v1921_v28 = vadd.f32 %v1920_v55, %v1919_v23 }
 0x16c   :  { %v1305_v29 = vadd.f32 %v1857_v27, %v2649_v11  ;;  %v1398_v30 = vadd.f32 %v1918_v21, %v1302_v25 }
 0x16e   :  { %v1858_v57 = vpop.f32.mrb[60].mxu0  ;;  %v1401_v2 = vadd.f32 %v1921_v28, %v1305_v29 }
 0x16f   :  { %v1922_v31 = vpop.f32.mrb[60].mxu1  ;;  %v1859_v32 = vpop.f32.mrb[61].mxu0 }
 0x170   :  { %v1860_v33 = vadd.f32 %v1859_v32, %v1858_v57  ;;  %v1923_v4 = vpop.f32.mrb[61].mxu1  ;;  %v1861_v38 = vpop.f32.mrb[62].mxu0 }
 0x171   :  { %v1924_v41 = vadd.f32 %v1923_v4, %v1922_v31  ;;  %v1925_v42 = vpop.f32.mrb[62].mxu1  ;;  %v1862_v43 = vpop.f32.mrb[63].mxu0 }
 0x172   :  { %v1310_v44 = vadd.f32 %v1860_v33, %v2652_v26  ;;  %v1926_v45 = vpop.f32.mrb[63].mxu1 }
 0x174   :  { %v1406_v9 = vadd.f32 %v1924_v41, %v1310_v44 }
 0x176   :  { %v1962_v47 = vpop.f32.mrb[64].mxu0 }
 0x177   :  { %v1454_v48 = vadd.f32 %v1962_v47, %v2662_v62  ;;  %v1970_v11 = vpop.f32.mrb[64].mxu1  ;;  %v1445_v49 = vpop.f32.mrb[65].mxu0 }
 0x178   :  { %v1486_v18 = vadd.f32 %v1970_v11, %v1390_v39  ;;  %v1446_v51 = vadd.f32 %v1445_v49, %v2656_v22  ;;  %v1477_v53 = vpop.f32.mrb[65].mxu1  ;;  %v1963_v54 = vpop.f32.mrb[66].mxu0 }
 0x179   :  { %1510 = vst.msk [vmem:[%s2759_s3 + $0x10] sm:$0xff] %vm1507_vm0, %v1454_v48  ;;  %v1478_v20 = vadd.f32 %v1477_v53, %v1382_v56  ;;  %v1457_v26 = vadd.f32 %v1963_v54, %v2664_v0  ;;  %v1971_v58 = vpop.f32.mrb[66].mxu1  ;;  %v1448_v59 = vpop.f32.mrb[67].mxu0 }
 0x17a   :  { %1518 = vst.msk [vmem:[%s2759_s3 + $0x50] sm:$0xff] %vm1507_vm0, %v1486_v18  ;;  %1508 = vst.msk [vmem:[%s2759_s3] sm:$0xff] %vm1507_vm0, %v1446_v51  ;;  %v1489_v22 = vadd.f32 %v1971_v58, %v1393_v50  ;;  %v1449_v62 = vadd.f32 %v1448_v59, %v2658_v46  ;;  %v1480_v60 = vpop.f32.mrb[67].mxu1 }
 0x17b   :  { %1516 = vst.msk [vmem:[%s2759_s3 + $0x40] sm:$0xff] %vm1507_vm0, %v1478_v20  ;;  %1511 = vst.msk [vmem:[%s2759_s3 + $0x18] sm:$0xff] %vm1507_vm0, %v1457_v26  ;;  %v1481_v0 = vadd.f32 %v1480_v60, %v2680_v34 }
 0x17c   :  { %1519 = vst.msk [vmem:[%s2759_s3 + $0x58] sm:$0xff] %vm1507_vm0, %v1489_v22  ;;  %1509 = vst.msk [vmem:[%s2759_s3 + $0x8] sm:$0xff] %vm1507_vm0, %v1449_v62 }
 0x17d   :  { %1517 = vst.msk [vmem:[%s2759_s3 + $0x48] sm:$0xff] %vm1507_vm0, %v1481_v0 }
 0x17e   :  { %v1966_v46 = vpop.f32.mrb[68].mxu0 }
 0x17f   :  { %v1470_v56 = vadd.f32 %v1966_v46, %v2674_v35  ;;  %v1974_v61 = vpop.f32.mrb[68].mxu1  ;;  %v1461_v34 = vpop.f32.mrb[69].mxu0 }
 0x180   :  { %v1502_v36 = vadd.f32 %v1974_v61, %v1406_v9  ;;  %v1462_v63 = vadd.f32 %v1461_v34, %v2668_v16  ;;  %v1493_v1 = vpop.f32.mrb[69].mxu1  ;;  %v1967_v3 = vpop.f32.mrb[70].mxu0 }
 0x181   :  { %1514 = vst.msk [vmem:[%s2759_s3 + $0x30] sm:$0xff] %vm1507_vm0, %v1470_v56  ;;  %v1494_v5 = vadd.f32 %v1493_v1, %v1398_v30  ;;  %v1473_v6 = vadd.f32 %v1967_v3, %v2676_v40  ;;  %v1975_v37 = vpop.f32.mrb[70].mxu1  ;;  %v1464_v7 = vpop.f32.mrb[71].mxu0 }
 0x182   :  { %1522 = vst.msk [vmem:[%s2759_s3 + $0x70] sm:$0xff] %vm1507_vm0, %v1502_v36  ;;  %1512 = vst.msk [vmem:[%s2759_s3 + $0x20] sm:$0xff] %vm1507_vm0, %v1462_v63  ;;  %v1465_v16 = vadd.f32 %v1464_v7, %v2670_v19  ;;  %v1496_v35 = vpop.f32.mrb[71].mxu1 }
 0x183   :  { %1520 = vst.msk [vmem:[%s2759_s3 + $0x60] sm:$0xff] %vm1507_vm0, %v1494_v5  ;;  %1515 = vst.msk [vmem:[%s2759_s3 + $0x38] sm:$0xff] %vm1507_vm0, %v1473_v6  ;;  %v1497_v40 = vadd.f32 %v1496_v35, %v1401_v2 }
 0x184   :  { %1513 = vst.msk [vmem:[%s2759_s3 + $0x28] sm:$0xff] %vm1507_vm0, %v1465_v16 }
 0x185   :  { %1521 = vst.msk [vmem:[%s2759_s3 + $0x68] sm:$0xff] %vm1507_vm0, %v1497_v40 }

// kernel: convlstm_net_forward.5
= control target key start
LH: loop header
LB: loop body
LE: loop exit
PB: predicated region body
PF: predicated region fallthrough
CT: control target
= control target key end

     0   :  { %s8229_s28 = smov 64   ;;  %s8230_s10 = smov 32   ;;  %vm149_vm0 = vcmask 523264   ;;  %vm94_vm1 = vcmask 261120   ;;  %s10679_s0 = inlined_call_operand.vmem [shape: f32[12,640], index: 0, kind: input, shape index: {}]   ;;  %s10680_s1 = inlined_call_operand.vmem [shape: bf16[3,160,640], index: 1, kind: input, shape index: {}]   ;;  %s10681_s2 = inlined_call_operand.vmem [shape: f32[3,12,160], index: 2, kind: input, shape index: {}]   ;;  %s10682_s3 = inlined_call_operand.vmem [shape: bf16[6,160,128], index: 3, kind: input, shape index: {}]   ;;  %s10683_s4 = inlined_call_operand.vmem [shape: f32[1,128], index: 4, kind: input, shape index: {}]   ;;  %s10684_s5 = inlined_call_operand.hbm [shape: f32[2,128], index: 5, kind: output, shape index: {}]  }
   0x1   :  { %v43_v0 = vld [vmem:[%s10679_s0 + $0x38] sm:$0xf]  ;;  %v38_v1 = vld [vmem:[%s10679_s0 + $0x10] sm:$0xff]  ;;  %v44_v2 = vld [vmem:[%s10679_s0 + $0x40] sm:$0xf] }
   0x2   :  { %7911 = vtanh.f32 %v43_v0  ;;  %v39_v3 = vld [vmem:[%s10679_s0 + $0x18] sm:$0xff]  ;;  %v6084_v5 = vld [vmem:[%s10681_s2 + $0x28] sm:$0xff]  ;;  %v6083_v9 = vld [vmem:[%s10681_s2 + $0x20] sm:$0xff] }
   0x3   :  { %7913 = vtanh.f32 %v38_v1  ;;  %v6086_v10 = vld [vmem:[%s10681_s2 + $0x38] sm:$0xf]  ;;  %v79_v11 = vmul.f32 0.0, %v6084_v5  ;;  %v6085_v12 = vld [vmem:[%s10681_s2 + $0x30] sm:$0xf]  ;;  %v78_v13 = vmul.f32 0.0, %v6083_v9 }
   0x4   :  { %7915 = vtanh.f32 %v44_v2  ;;  %v81_v14 = vmul.f32 0.0, %v6086_v10  ;;  %v80_v15 = vmul.f32 0.0, %v6085_v12  ;;  %v6088_v16 = vld [vmem:[%s10681_s2 + $0x48] sm:$0xff]  ;;  %v6087_v17 = vld [vmem:[%s10681_s2 + $0x40] sm:$0xff]  ;;  %v25_v18 = vld [vmem:[%s10681_s2 + $0x18] sm:$0xf] }
   0x5   :  { %7917 = vtanh.f32 %v39_v3  ;;  %v23_v19 = vld [vmem:[%s10681_s2 + $0x8] sm:$0xff]  ;;  %v8314_v20 = vld [vmem:[%s10679_s0 + $0x30] sm:$0xf]  ;;  %v22_v21 = vld [vmem:[%s10681_s2] sm:$0xff]  ;;  %v49_v22 = vmul.f32 0.0, %v25_v18 }
   0x6   :  { %v37_v23 = vld [vmem:[%s10679_s0 + $0x8] sm:$0xff]  ;;  %v24_v24 = vld [vmem:[%s10681_s2 + $0x10] sm:$0xf]  ;;  %v47_v25 = vmul.f32 0.0, %v23_v19  ;;  %v36_v26 = vld [vmem:[%s10679_s0] sm:$0xff]  ;;  %v46_v28 = vmul.f32 0.0, %v22_v21 }
   0x7   :  { %v53_v27 = vadd.f32 %v49_v22, %v8314_v20  ;;  %v41_v30 = vld [vmem:[%s10679_s0 + $0x28] sm:$0xf]  ;;  %v48_v31 = vmul.f32 0.0, %v24_v24  ;;  %v6090_v60 = vld [vmem:[%s10681_s2 + $0x58] sm:$0xf]  ;;  %v8167_v5 = vld [vmem:[%s10679_s0 + $0x10] sm:$0xff] }
   0x8   :  { %v51_v29 = vadd.f32 %v47_v25, %v37_v23  ;;  %v50_v33 = vadd.f32 %v46_v28, %v36_v26  ;;  %v6089_v61 = vld [vmem:[%s10681_s2 + $0x50] sm:$0xf] }
   0x9   :  { %v6094_v32 = vmul.f32 -1.442695, %v53_v27  ;;  %v52_v36 = vadd.f32 %v48_v31, %v41_v30 }
   0xa   :  { %v6092_v34 = vmul.f32 -1.442695, %v51_v29  ;;  %v6091_v35 = vmul.f32 -1.442695, %v50_v33 }
   0xb   :  { %v6093_v37 = vmul.f32 -1.442695, %v52_v36 }
   0xc   :  { %v7912_v4 = vpop.eup %7911  ;;  %7919 = vpow2.f32 %v6092_v34 }
   0xd   :  { %v7914_v6 = vpop.eup %7913  ;;  %145 = vrot.lane.b32.xlu1 %v7912_v4, %s8229_s28  ;;  %7921 = vpow2.f32 %v6091_v35 }
   0xe   :  { %v7916_v7 = vpop.eup %7915  ;;  %141 = vrot.lane.b32.xlu0 %v7914_v6, %s8229_s28  ;;  %7923 = vpow2.f32 %v6094_v32 }
   0xf   :  { %v7918_v8 = vpop.eup %7917  ;;  %7925 = vpow2.f32 %v6093_v37 }
  0x11   :  { %147 = vrot.lane.b32.xlu1 %v7916_v7, %s8229_s28 }
  0x12   :  { %143 = vrot.lane.b32.xlu0 %v7918_v8, %s8229_s28  ;;  %v8168_v8 = vld [vmem:[%s10679_s0 + $0x38] sm:$0xf] }
  0x15   :  { %88 = vrot.lane.b32.xlu1 %v79_v11, %s8230_s10 }
  0x16   :  { %86 = vrot.lane.b32.xlu0 %v78_v13, %s8230_s10  ;;  %v7920_v38 = vpop.eup %7919 }
  0x17   :  { %v7922_v39 = vpop.eup %7921  ;;  %v67_v41 = vadd.f32 1.0, %v7920_v38 }
  0x18   :  { %v7924_v40 = vpop.eup %7923  ;;  %v66_v42 = vadd.f32 1.0, %v7922_v39 }
  0x19   :  { %92 = vrot.lane.b32.xlu1 %v81_v14, %s8230_s10  ;;  %v7926_v43 = vpop.eup %7925  ;;  %v69_v44 = vadd.f32 1.0, %v7924_v40  ;;  %7927 = vrcp.f32 %v67_v41 }
  0x1a   :  { %90 = vrot.lane.b32.xlu0 %v80_v15, %s8230_s10  ;;  %7929 = vrcp.f32 %v66_v42  ;;  %v68_v45 = vadd.f32 1.0, %v7926_v43 }
  0x1b   :  { %7931 = vrcp.f32 %v69_v44 }
  0x1c   :  { %7933 = vrcp.f32 %v68_v45 }
  0x1d   :  { %188 = vrot.lane.b32.xlu1 %v6088_v16, %s8230_s10 }
  0x1e   :  { %186 = vrot.lane.b32.xlu0 %v6087_v17, %s8230_s10 }
  0x23   :  { %v7928_v48 = vpop.eup %7927 }
  0x24   :  { %v7930_v49 = vpop.eup %7929 }
  0x25   :  { %v7932_v50 = vpop.eup %7931 }
  0x26   :  { %v7934_v56 = vpop.eup %7933 }
  0x7f   :  { %v146_v46 = vpop.permute.xlu1 %145 }
  0x80   :  { %v142_v47 = vpop.permute.xlu0 %141 }
  0x83   :  { %v148_v51 = vpop.permute.xlu1 %147 }
  0x84   :  { %v144_v52 = vpop.permute.xlu0 %143  ;;  %v151_v57 = vsel %vm149_vm0, %v146_v46, %v148_v51  ;;  %v159_v58 = vmul.f32 %v7932_v50, %v148_v51 }
  0x85   :  { %v150_v53 = vsel %vm149_vm0, %v142_v47, %v144_v52  ;;  %v157_v54 = vmul.f32 %v7928_v48, %v144_v52  ;;  %v158_v59 = vmul.f32 %v7934_v56, %v151_v57 }
  0x86   :  { %v156_v55 = vmul.f32 %v7930_v49, %v150_v53 }
  0x87   :  { %166 = vrot.lane.b32.xlu1 %v157_v54, %s8230_s10  ;;  %v89_v62 = vpop.permute.xlu1 %88 }
  0x88   :  { %164 = vrot.lane.b32.xlu0 %v156_v55, %s8230_s10  ;;  %v87_v63 = vpop.permute.xlu0 %86 }
  0x89   :  { %v95_v2 = vsel %vm94_vm1, %v87_v63, %v89_v62  ;;  %v101_v3 = vadd.f32 %v87_v63, %v37_v23 }
  0x8a   :  { %v102_v6 = vadd.f32 %v8167_v5, %v95_v2 }
  0x8b   :  { %170 = vrot.lane.b32.xlu1 %v159_v58, %s8230_s10  ;;  %v93_v0 = vpop.permute.xlu1 %92  ;;  %v6095_v10 = vmul.f32 -1.442695, %v101_v3 }
  0x8c   :  { %168 = vrot.lane.b32.xlu0 %v158_v59, %s8230_s10  ;;  %v91_v1 = vpop.permute.xlu0 %90  ;;  %v6096_v11 = vmul.f32 -1.442695, %v102_v6 }
  0x8d   :  { %v96_v4 = vsel %vm94_vm1, %v91_v1, %v93_v0  ;;  %v103_v7 = vadd.f32 %v91_v1, %v8314_v20  ;;  %7935 = vpow2.f32 %v6095_v10 }
  0x8e   :  { %v104_v9 = vadd.f32 %v8168_v8, %v96_v4  ;;  %7937 = vpow2.f32 %v6096_v11 }
  0x8f   :  { %192 = vrot.lane.b32.xlu1 %v6090_v60, %s8230_s10  ;;  %v6097_v12 = vmul.f32 -1.442695, %v103_v7 }
  0x90   :  { %190 = vrot.lane.b32.xlu0 %v6089_v61, %s8230_s10  ;;  %v6098_v13 = vmul.f32 -1.442695, %v104_v9 }
  0x91   :  { %7939 = vpow2.f32 %v6097_v12 }
  0x92   :  { %7941 = vpow2.f32 %v6098_v13 }
  0x97   :  { %v7936_v14 = vpop.eup %7935 }
  0x98   :  { %v7938_v15 = vpop.eup %7937 }
  0x99   :  { %10 = vsyncpa [#allocation4], 0  ;;  %v117_v16 = vadd.f32 1.0, %v7936_v14  ;;  %v118_v18 = vadd.f32 1.0, %v7938_v15  ;;  %v189_v22 = vpop.permute.xlu1 %188  ;;  %v8355_v24 = vpop.permute.xlu0 %186  ;;  %v7221_v54 = vld [vmem:[%s10680_s1 + $0x4] ss:$20 sps:$4 sm:$0xff]  }
  0x9a   :  { %v8367_v39 = vsel %vm94_vm1, %v8355_v24, %v189_v22  ;;  %v7223_v55 = vld [vmem:[%s10680_s1 + $0xc] ss:$20 sps:$4 sm:$0xff]   ;;  %v7226_v57 = vld [vmem:[%s10680_s1 + $0x8] ss:$20 sps:$4 sm:$0xff]   ;;  %640 = vmatprep.subr.bf16.mxu0 %v7221_v54  ;;  %v7232_v61 = vld [vmem:[%s10680_s1 + $0x30] ss:$20 sps:$4 sm:$0xff]  }
  0x9b   :  { %v7940_v17 = vpop.eup %7939  ;;  %7943 = vrcp.f32 %v117_v16  ;;  %v7225_v56 = vld [vmem:[%s10680_s1] ss:$20 sps:$4 sm:$0xff]   ;;  %683 = vmatprep.subr.bf16.mxu1 %v7223_v55  ;;  %v7231_v60 = vld [vmem:[%s10680_s1 + $0x28] ss:$20 sps:$4 sm:$0xff]   ;;  %v7237_v0 = vld [vmem:[%s10680_s1 + $0x50] ss:$20 sps:$4 sm:$0xff]  }
  0x9c   :  { %v7942_v19 = vpop.eup %7941  ;;  %v119_v20 = vadd.f32 1.0, %v7940_v17  ;;  %7945 = vrcp.f32 %v118_v18  ;;  %v7227_v58 = vld [vmem:[%s10680_s1 + $0x2c] ss:$20 sps:$4 sm:$0xff]   ;;  %v7229_v59 = vld [vmem:[%s10680_s1 + $0x34] ss:$20 sps:$4 sm:$0xff]   ;;  %641 = vmatpush1.bf16.msra.mxu0 %v7225_v56  ;;  %684 = vmatpush1.bf16.msra.mxu1 %v7226_v57  ;;  %v8471_v14 = vld [vmem:[%s10679_s0 + $0x18] sm:$0xff] }
  0x9d   :  { %v120_v21 = vadd.f32 1.0, %v7942_v19  ;;  %642 = vmatprep.subr.bf16.mxu0 %v7227_v58  ;;  %685 = vmatprep.subr.bf16.mxu1 %v7229_v59  ;;  %v7233_v62 = vld [vmem:[%s10680_s1 + $0x54] ss:$20 sps:$4 sm:$0xff]   ;;  %v7235_v63 = vld [vmem:[%s10680_s1 + $0x5c] ss:$20 sps:$4 sm:$0xff]   ;;  %v8466_v13 = vld [vmem:[%s10679_s0 + $0x20] sm:$0xff] }
  0x9e   :  { %7947 = vrcp.f32 %v119_v20  ;;  %v7238_v1 = vld [vmem:[%s10680_s1 + $0x58] ss:$20 sps:$4 sm:$0xff]   ;;  %v7239_v2 = vld [vmem:[%s10680_s1 + $0x7c] ss:$20 sps:$4 sm:$0xff]   ;;  %v7244_v5 = vld [vmem:[%s10680_s1 + $0x80] ss:$20 sps:$4 sm:$0xff]  }
  0x9f   :  { %7949 = vrcp.f32 %v120_v21  ;;  %v7241_v3 = vld [vmem:[%s10680_s1 + $0x84] ss:$20 sps:$4 sm:$0xff]   ;;  %v7247_v7 = vld [vmem:[%s10680_s1 + $0xac] ss:$20 sps:$4 sm:$0xff]   ;;  %v7250_v9 = vld [vmem:[%s10680_s1 + $0xa8] ss:$20 sps:$4 sm:$0xff]  }
  0xa0   :  { %643 = vmatpush1.bf16.msra.mxu0 %v7231_v60  ;;  %686 = vmatpush1.bf16.msra.mxu1 %v7232_v61  ;;  %v7243_v4 = vld [vmem:[%s10680_s1 + $0x78] ss:$20 sps:$4 sm:$0xff]   ;;  %v7249_v8 = vld [vmem:[%s10680_s1 + $0xa0] ss:$20 sps:$4 sm:$0xff]   ;;  %v8479_v22 = vld [vmem:[%s10679_s0 + $0x48] sm:$0xf] }
  0xa1   :  { %644 = vmatprep.subr.bf16.mxu0 %v7233_v62  ;;  %687 = vmatprep.subr.bf16.mxu1 %v7235_v63  ;;  %v7245_v6 = vld [vmem:[%s10680_s1 + $0xa4] ss:$20 sps:$4 sm:$0xff]   ;;  %v7251_v10 = vld [vmem:[%s10680_s1 + $0xcc] ss:$20 sps:$4 sm:$0xff]   ;;  %v7253_v11 = vld [vmem:[%s10680_s1 + $0xd4] ss:$20 sps:$4 sm:$0xff]  }
  0xa2   :  { %v7265_v54 = vld [vmem:[%s10680_s1 + $0x124] ss:$20 sps:$4 sm:$0xff]   ;;  %v7268_v56 = vld [vmem:[%s10680_s1 + $0x120] ss:$20 sps:$4 sm:$0xff]   ;;  %vm284_vm2 = vcmask 1041408   ;;  %vm306_vm3 = vcmask 261122  }
  0xa3   :  { %v7267_v55 = vld [vmem:[%s10680_s1 + $0x118] ss:$20 sps:$4 sm:$0xff]   ;;  %vm309_vm4 = vcmask 259072   ;;  %s8233_s22 = smov 96   ;;  %vm1755_vm5 = vcmask 785408   ;;  %s8234_s20 = smov [#allocation3]  }
  0xa4   :  { %645 = vmatpush1.bf16.msra.mxu0 %v7237_v0  ;;  %688 = vmatpush1.bf16.msra.mxu1 %v7238_v1  ;;  %v7269_v61 = vld [vmem:[%s10680_s1 + $0x144] ss:$20 sps:$4 sm:$0xff]   ;;  %v7271_v62 = vld [vmem:[%s10680_s1 + $0x14c] ss:$20 sps:$4 sm:$0xff]   ;;  %s6075_s21 = sshll.u32 %s8234_s20, 4  ;;  %s6076_s21 = int_to_ptr.vmem [resolvable:$true] %s6075_s21 }
  0xa5   :  { %v7944_v23 = vpop.eup %7943  ;;  %646 = vmatprep.subr.bf16.mxu0 %v7239_v2  ;;  %689 = vmatprep.subr.bf16.mxu1 %v7241_v3  ;;  %v7273_v1 = vld [vmem:[%s10680_s1 + $0x140] ss:$20 sps:$4 sm:$0xff]   ;;  %v7274_v2 = vld [vmem:[%s10680_s1 + $0x148] ss:$20 sps:$4 sm:$0xff]   ;;  %s8205_s23 = scalar_lea.vmem %s6076_s21, 32  ;;  %p8210_p1 = scmp.lt.s32.totalorder %s6076_s21, %s6076_s21 }
  0xa6   :  { %v7946_v25 = vpop.eup %7945  ;;  %v129_v26 = vmul.f32 0.0, %v7944_v23  ;;  %v8484_v23 = vld [vmem:[%s10679_s0 + $0x40] sm:$0xf]  ;;  %p8206_p0 = scmp.ne.s32.totalorder %s6076_s21, %s8205_s23  ;;  %p8211_p2 = scmp.lt.s32.totalorder %s8205_s23, %s8205_s23 }
  0xa7   :  { %v130_v28 = vmul.f32 0.0, %v7946_v25 }
  0xa8   :  { %v7948_v27 = vpop.eup %7947  ;;  %647 = vmatpush1.bf16.msra.mxu0 %v7243_v4  ;;  %690 = vmatpush1.bf16.msra.mxu1 %v7244_v5  ;;  %p8212_p3 = por %p8211_p2, %p8210_p1 }
  0xa9   :  { %v7950_v29 = vpop.eup %7949  ;;  %v131_v34 = vmul.f32 0.0, %v7948_v27  ;;  %648 = vmatprep.subr.bf16.mxu0 %v7245_v6  ;;  %691 = vmatprep.subr.bf16.mxu1 %v7247_v7 }
  0xaa   :  { %v132_v36 = vmul.f32 0.0, %v7950_v29  ;;  %p8213_p4 = pnand %p8212_p3, %p8206_p0 }
  0xac   :  { %649 = vmatpush1.bf16.msra.mxu0 %v7249_v8  ;;  %692 = vmatpush1.bf16.msra.mxu1 %v7250_v9  ;;  %v7275_v8 = vld [vmem:[%s10680_s1 + $0x16c] ss:$20 sps:$4 sm:$0xff]   ;;  %v7277_v9 = vld [vmem:[%s10680_s1 + $0x174] ss:$20 sps:$4 sm:$0xff]  }
  0xad   :  { %650 = vmatprep.subr.bf16.mxu0 %v7251_v10  ;;  %693 = vmatprep.subr.bf16.mxu1 %v7253_v11  ;;  %v7279_v11 = vld [vmem:[%s10680_s1 + $0x168] ss:$20 sps:$4 sm:$0xff]  }
  0xf9   :  { %v167_v30 = vpop.permute.xlu1 %166 }
  0xfa   :  { %v165_v31 = vpop.permute.xlu0 %164 }
  0xfb   :  { %v172_v32 = vsel %vm94_vm1, %v165_v31, %v167_v30  ;;  %v8358_v33 = vadd.f32 %v165_v31, %v129_v26 }
  0xfc   :  { %v8360_v35 = vadd.f32 %v172_v32, %v130_v28 }
  0xfd   :  { %7951 = vtanh.f32 %v8358_v33  ;;  %v171_v37 = vpop.permute.xlu1 %170  ;;  %v200_v38 = vmul.f32 %v8355_v24, %v8358_v33 }
  0xfe   :  { %7953 = vtanh.f32 %v8360_v35  ;;  %v169_v40 = vpop.permute.xlu0 %168  ;;  %v201_v41 = vmul.f32 %v8367_v39, %v8360_v35 }
  0xff   :  { %v173_v42 = vsel %vm94_vm1, %v169_v40, %v171_v37  ;;  %v8373_v43 = vadd.f32 %v169_v40, %v131_v34  ;;  %208 = vrot.lane.b32.xlu0 %v200_v38, %s8229_s28  ;;  %v7255_v37 = vld [vmem:[%s10680_s1 + $0xc8] ss:$20 sps:$4 sm:$0xff]   ;;  %v7256_v38 = vld [vmem:[%s10680_s1 + $0xd0] ss:$20 sps:$4 sm:$0xff]   ;;  %v8231_v40 = vmov 0.0  }
 0x100   :  { %v8376_v44 = vadd.f32 %v173_v42, %v132_v36  ;;  %210 = vrot.lane.b32.xlu1 %v201_v41, %s8229_s28  ;;  %651 = vmatpush1.bf16.msra.mxu0 %v7255_v37  ;;  %276 = vst [vmem:[#allocation2] sm:$0xff] %v8231_v40  ;;  %277 = vst.msk [vmem:[#allocation2 + $0x8] sm:$0xff] %vm94_vm1, %v8231_v40  ;;  %v7257_v42 = vld [vmem:[%s10680_s1 + $0xf4] ss:$20 sps:$4 sm:$0xff]  }
 0x101   :  { %7955 = vtanh.f32 %v8373_v43  ;;  %v193_v45 = vpop.permute.xlu1 %192  ;;  %694 = vmatpush1.bf16.msra.mxu1 %v7256_v38  ;;  %278 = vst [vmem:[#allocation2 + $0x10] sm:$0xff] %v8231_v40  ;;  %279 = vst.msk [vmem:[#allocation2 + $0x18] sm:$0xff] %vm94_vm1, %v8231_v40  ;;  %652 = vmatprep.subr.bf16.mxu0 %v7257_v42 }
 0x102   :  { %7957 = vtanh.f32 %v8376_v44  ;;  %v8381_v46 = vpop.permute.xlu0 %190 }
 0x103   :  { %v202_v47 = vmul.f32 %v8381_v46, %v8373_v43  ;;  %v8387_v48 = vsel %vm94_vm1, %v8381_v46, %v193_v45  ;;  %v7259_v45 = vld [vmem:[%s10680_s1 + $0xfc] ss:$20 sps:$4 sm:$0xff]  }
 0x104   :  { %v203_v49 = vmul.f32 %v8387_v48, %v8376_v44  ;;  %695 = vmatprep.subr.bf16.mxu1 %v7259_v45 }
 0x105   :  { %212 = vrot.lane.b32.xlu0 %v202_v47, %s8229_s28 }
 0x106   :  { %214 = vrot.lane.b32.xlu1 %v203_v49, %s8229_s28  ;;  %v7261_v49 = vld [vmem:[%s10680_s1 + $0xf0] ss:$20 sps:$4 sm:$0xff]  }
 0x107   :  { %v7952_v50 = vpop.eup %7951  ;;  %653 = vmatpush1.bf16.msra.mxu0 %v7261_v49 }
 0x108   :  { %v7954_v51 = vpop.eup %7953 }
 0x109   :  { %258 = vrot.lane.b32.xlu0 %v7952_v50, %s8229_s28  ;;  %v7262_v50 = vld [vmem:[%s10680_s1 + $0xf8] ss:$20 sps:$4 sm:$0xff]  }
 0x10a   :  { %260 = vrot.lane.b32.xlu1 %v7954_v51, %s8229_s28  ;;  %696 = vmatpush1.bf16.msra.mxu1 %v7262_v50 }
 0x10b   :  { %v7956_v52 = vpop.eup %7955  ;;  %697 = vmatprep.subr.bf16.mxu1 %v7265_v54 }
 0x10c   :  { %v7958_v53 = vpop.eup %7957 }
 0x10d   :  { %262 = vrot.lane.b32.xlu0 %v7956_v52, %s8229_s28 }
 0x10e   :  { %264 = vrot.lane.b32.xlu1 %v7958_v53, %s8229_s28  ;;  %v7263_v53 = vld [vmem:[%s10680_s1 + $0x11c] ss:$20 sps:$4 sm:$0xff]   ;;  %698 = vmatpush1.bf16.msra.mxu1 %v7268_v56 }
 0x10f   :  { %654 = vmatprep.subr.bf16.mxu0 %v7263_v53  ;;  %699 = vmatprep.subr.bf16.mxu1 %v7271_v62  ;;  %v7281_v53 = vld [vmem:[%s10680_s1 + $0x198] ss:$20 sps:$4 sm:$0xff]   ;;  %v7284_v62 = vld [vmem:[%s10680_s1 + $0x10] ss:$20 sps:$4 sm:$0xff]  }
 0x110   :  { %655 = vmatpush1.bf16.msra.mxu0 %v7267_v55 }
 0x111   :  { %656 = vmatprep.subr.bf16.mxu0 %v7269_v61 }
 0x112   :  { %700 = vmatpush1.bf16.msra.mxu1 %v7274_v2 }
 0x113   :  { %701 = vmatprep.subr.bf16.mxu1 %v7277_v9  ;;  %v7295_v9 = vld [vmem:[%s10680_s1 + $0x214] ss:$20 sps:$4 sm:$0xff]  }
 0x114   :  { %657 = vmatpush1.bf16.msra.mxu0 %v7273_v1 }
 0x115   :  { %658 = vmatprep.subr.bf16.mxu0 %v7275_v8  ;;  %v7292_v8 = vld [vmem:[%s10680_s1 + $0x60] ss:$20 sps:$4 sm:$0xff]  }
 0x118   :  { %659 = vmatpush1.bf16.msra.mxu0 %v7279_v11  ;;  %v7296_v11 = vld [vmem:[%s10680_s1 + $0x88] ss:$20 sps:$4 sm:$0xff]  }
 0x171   :  { %v209_v12 = vpop.permute.xlu0 %208 }
 0x172   :  { %v222_v15 = vadd.f32 %v8471_v14, %v209_v12  ;;  %v211_v16 = vpop.permute.xlu1 %210 }
 0x173   :  { %v216_v17 = vsel %vm149_vm0, %v209_v12, %v211_v16  ;;  %v7280_v12 = vld [vmem:[%s10680_s1 + $0x170] ss:$20 sps:$4 sm:$0xff]  }
 0x174   :  { %v6099_v18 = vmul.f32 -1.442695, %v222_v15  ;;  %v223_v19 = vadd.f32 %v216_v17, %v8466_v13  ;;  %702 = vmatpush1.bf16.msra.mxu1 %v7280_v12  ;;  %v7299_v12 = vld [vmem:[%s10680_s1 + $0x23c] ss:$20 sps:$4 sm:$0xff]  }
 0x176   :  { %7959 = vpow2.f32 %v6099_v18  ;;  %v6100_v20 = vmul.f32 -1.442695, %v223_v19 }
 0x177   :  { %v213_v21 = vpop.permute.xlu0 %212 }
 0x178   :  { %7961 = vpow2.f32 %v6100_v20  ;;  %v224_v25 = vadd.f32 %v8484_v23, %v213_v21  ;;  %v215_v26 = vpop.permute.xlu1 %214  ;;  %v7283_v20 = vld [vmem:[%s10680_s1 + $0x19c] ss:$20 sps:$4 sm:$0xff]  }
 0x179   :  { %v217_v27 = vsel %vm149_vm0, %v213_v21, %v215_v26  ;;  %v8232_v26 = vmov 0   ;;  %1155 = vmatprep.subr.bf16.mxu1 %v7283_v20  ;;  %v7307_v20 = vld [vmem:[%s10680_s1 + $0x28c] ss:$20 sps:$4 sm:$0xff]  }
 0x17a   :  { %v6101_v28 = vmul.f32 -1.442695, %v224_v25  ;;  %v225_v29 = vadd.f32 %v217_v27, %v8479_v22  ;;  %726 = vmatprep.subr.bf16.mxu0 %v8232_v26 }
 0x17b   :  { %v259_v57 = vpop.permute.xlu0 %258 }
 0x17c   :  { %7963 = vpow2.f32 %v6101_v28  ;;  %v6102_v30 = vmul.f32 -1.442695, %v225_v29  ;;  %v261_v58 = vpop.permute.xlu1 %260  ;;  %v8171_v28 = vld [vmem:[%s10681_s2] sm:$0xff]  ;;  %v8172_v29 = vld [vmem:[%s10681_s2 + $0x8] sm:$0xff] }
 0x17d   :  { %v266_v0 = vsel %vm149_vm0, %v259_v57, %v261_v58 }
 0x17e   :  { %7965 = vpow2.f32 %v6102_v30  ;;  %v8173_v30 = vld [vmem:[%s10681_s2 + $0x10] sm:$0xf] }
 0x17f   :  { %v263_v6 = vpop.permute.xlu0 %262 }
 0x180   :  { %v7960_v31 = vpop.eup %7959  ;;  %v265_v7 = vpop.permute.xlu1 %264 }
 0x181   :  { %v238_v32 = vadd.f32 1.0, %v7960_v31  ;;  %v267_v17 = vsel %vm149_vm0, %v263_v6, %v265_v7  ;;  %v8174_v31 = vld [vmem:[%s10681_s2 + $0x18] sm:$0xf]  ;;  %v7289_v7 = vld [vmem:[%s10680_s1 + $0x1e8] ss:$20 sps:$4 sm:$0xff]  }
 0x182   :  { %v7962_v34 = vpop.eup %7961 }
 0x183   :  { %7967 = vrcp.f32 %v238_v32  ;;  %v239_v36 = vadd.f32 1.0, %v7962_v34 }
 0x185   :  { %7969 = vrcp.f32 %v239_v36 }
 0x186   :  { %v7964_v41 = vpop.eup %7963 }
 0x187   :  { %v240_v47 = vadd.f32 1.0, %v7964_v41 }
 0x188   :  { %v7966_v51 = vpop.eup %7965 }
 0x189   :  { %7971 = vrcp.f32 %v240_v47  ;;  %v241_v52 = vadd.f32 1.0, %v7966_v51 }
 0x18b   :  { %7973 = vrcp.f32 %v241_v52 }
 0x18d   :  { %v7968_v59 = vpop.eup %7967 }
 0x18e   :  { %v272_v60 = vmul.f32 %v7968_v59, %v259_v57 }
 0x18f   :  { %v7970_v63 = vpop.eup %7969 }
 0x190   :  { %v285_v3 = vrot.slane %v272_v60, 6  ;;  %v273_v4 = vmul.f32 %v7970_v63, %v266_v0 }
 0x192   :  { %v286_v5 = vrot.slane %v273_v4, 6  ;;  %291 = vrot.lane.b32.xlu0 %v285_v3, %s8230_s10  ;;  %v7285_v4 = vld [vmem:[%s10680_s1 + $0x1c0] ss:$20 sps:$4 sm:$0xff]  }
 0x193   :  { %v7972_v10 = vpop.eup %7971 }
 0x194   :  { %v274_v15 = vmul.f32 %v7972_v10, %v263_v6  ;;  %293 = vrot.lane.b32.xlu1 %v286_v5, %s8230_s10  ;;  %v7291_v6 = vld [vmem:[%s10680_s1 + $0x1ec] ss:$20 sps:$4 sm:$0xff]   ;;  %v7293_v10 = vld [vmem:[%s10680_s1 + $0x210] ss:$20 sps:$4 sm:$0xff]  }
 0x195   :  { %v7974_v16 = vpop.eup %7973 }
 0x196   :  { %v287_v18 = vrot.slane %v274_v15, 6  ;;  %v275_v19 = vmul.f32 %v7974_v16, %v267_v17  ;;  %v7297_v15 = vld [vmem:[%s10680_s1 + $0x238] ss:$20 sps:$4 sm:$0xff]   ;;  %v7300_v16 = vld [vmem:[%s10680_s1 + $0xb0] ss:$20 sps:$4 sm:$0xff]  }
 0x197   :  { %v7303_v17 = vld [vmem:[%s10680_s1 + $0x264] ss:$20 sps:$4 sm:$0xff]  }
 0x198   :  { %v289_v21 = vrot.slane %v275_v19, 6  ;;  %v288_v25 = vsel %vm284_vm2, %v285_v3, %v287_v18  ;;  %v7287_v3 = vld [vmem:[%s10680_s1 + $0x1c4] ss:$20 sps:$4 sm:$0xff]   ;;  %v7301_v18 = vld [vmem:[%s10680_s1 + $0x260] ss:$20 sps:$4 sm:$0xff]  }
 0x199   :  { %295 = vrot.lane.b32.xlu0 %v288_v25, %s8230_s10  ;;  %v7304_v19 = vld [vmem:[%s10680_s1 + $0xd8] ss:$20 sps:$4 sm:$0xff]   ;;  %v7308_v25 = vld [vmem:[%s10680_s1 + $0x100] ss:$20 sps:$4 sm:$0xff]  }
 0x19a   :  { %v290_v27 = vsel %vm284_vm2, %v286_v5, %v289_v21  ;;  %v7288_v5 = vld [vmem:[%s10680_s1 + $0x38] ss:$20 sps:$4 sm:$0xff]   ;;  %v7305_v21 = vld [vmem:[%s10680_s1 + $0x288] ss:$20 sps:$4 sm:$0xff]  }
 0x19b   :  { %297 = vrot.lane.b32.xlu1 %v290_v27, %s8230_s10  ;;  %v7311_v27 = vld [vmem:[%s10680_s1 + $0x2b4] ss:$20 sps:$4 sm:$0xff]  }
 0x19d   :  { %1725 = vrot.lane.b32.xlu0 %v8171_v28, %s8230_s10  ;;  %v7309_v28 = vld [vmem:[%s10680_s1 + $0x2b0] ss:$20 sps:$4 sm:$0xff]  }
 0x19f   :  { %1727 = vrot.lane.b32.xlu1 %v8172_v29, %s8230_s10  ;;  %v7312_v29 = vld [vmem:[%s10680_s1 + $0x128] ss:$20 sps:$4 sm:$0xff]  }
 0x1a1   :  { %1729 = vrot.lane.b32.xlu0 %v8173_v30, %s8230_s10  ;;  %v7315_v30 = vld [vmem:[%s10680_s1 + $0x2dc] ss:$20 sps:$4 sm:$0xff]  }
 0x1a3   :  { %1731 = vrot.lane.b32.xlu1 %v8174_v31, %s8230_s10  ;;  %v7313_v31 = vld [vmem:[%s10680_s1 + $0x2d8] ss:$20 sps:$4 sm:$0xff]  }
 0x204   :  { %v292_v32 = vpop.permute.xlu0 %291 }
 0x206   :  { %v294_v34 = vpop.permute.xlu1 %293 }
 0x207   :  { %v299_v36 = vsel %vm94_vm1, %v292_v32, %v294_v34  ;;  %307 = vst.msk [vmem:[#allocation2 + $0x8] sm:$0xfc] %vm306_vm3, %v294_v34  ;;  %v7316_v32 = vld [vmem:[%s10680_s1 + $0x150] ss:$20 sps:$4 sm:$0xff]  }
 0x208   :  { %305 = vst [vmem:[#allocation2] sm:$0xfc] %v299_v36  ;;  %v7319_v34 = vld [vmem:[%s10680_s1 + $0x304] ss:$20 sps:$4 sm:$0xff]  }
 0x20b   :  { %v296_v37 = vpop.permute.xlu0 %295 }
 0x20d   :  { %v298_v38 = vpop.permute.xlu1 %297 }
 0x20e   :  { %v300_v40 = vsel %vm94_vm1, %v296_v37, %v298_v38  ;;  %310 = vst.msk [vmem:[#allocation2 + $0x18] sm:$0x3f] %vm309_vm4, %v298_v38  ;;  %v312_v52 = vld [vmem:[#allocation2 + $0x8] sm:$0xff]  ;;  %v7317_v37 = vld [vmem:[%s10680_s1 + $0x300] ss:$20 sps:$4 sm:$0xff]  }
 0x20f   :  { %308 = vst [vmem:[#allocation2 + $0x10] sm:$0x3f] %v300_v40  ;;  %v8577_v41 = vpop.permute.xlu0 %1725  ;;  %v778_v56 = vld [vmem:[#allocation2 + $0x8] sm:$0xfc]  ;;  %v311_v60 = vld [vmem:[#allocation2] sm:$0xff] }
 0x210   :  { %v1739_v42 = vmul.f32 %v8577_v41, %v8358_v33  ;;  %v7320_v38 = vld [vmem:[%s10680_s1 + $0x178] ss:$20 sps:$4 sm:$0xff]   ;;  %v777_v40 = vld [vmem:[#allocation2] sm:$0xfc] }
 0x211   :  { %v1728_v45 = vpop.permute.xlu1 %1727 }
 0x212   :  { %v8583_v47 = vsel %vm94_vm1, %v8577_v41, %v1728_v45  ;;  %1747 = vrot.lane.b32.xlu0 %v1739_v42, %s8233_s22  ;;  %v7323_v42 = vld [vmem:[%s10680_s1 + $0x194] ss:$20 sps:$4 sm:$0xff]  }
 0x213   :  { %v8586_v49 = vpop.permute.xlu0 %1729  ;;  %v1740_v50 = vmul.f32 %v8583_v47, %v8360_v35 }
 0x214   :  { %v1741_v51 = vmul.f32 %v8586_v49, %v8373_v43 }
 0x215   :  { %v1732_v54 = vpop.permute.xlu1 %1731  ;;  %1749 = vrot.lane.b32.xlu1 %v1740_v50, %s8233_s22  ;;  %v314_v55 = vld [vmem:[#allocation2 + $0x18] sm:$0xf]  ;;  %v7321_v50 = vld [vmem:[%s10680_s1 + $0x190] ss:$20 sps:$4 sm:$0xff]  }
 0x216   :  { %v780_v57 = vld [vmem:[#allocation2 + $0x18] sm:$0x3f]  ;;  %v8598_v58 = vsel %vm94_vm1, %v8586_v49, %v1732_v54  ;;  %1751 = vrot.lane.b32.xlu0 %v1741_v51, %s8233_s22  ;;  %v316_v59 = vpack.c.bf16 %v314_v55, %v312_v52  ;;  %v313_v61 = vld [vmem:[#allocation2 + $0x10] sm:$0xf]  ;;  %v7324_v52 = vld [vmem:[%s10680_s1 + $0x1a0] ss:$20 sps:$4 sm:$0xff]  }
 0x217   :  { %v782_v63 = vpack.c.bf16 %v780_v57, %v778_v56  ;;  %v8604_v0 = vpack.c.bf16 %v313_v61, %v311_v60  ;;  %v1742_v1 = vmul.f32 %v8598_v58, %v8376_v44  ;;  %v779_v36 = vld [vmem:[#allocation2 + $0x10] sm:$0x3f]  ;;  %v7325_v54 = vld [vmem:[%s10680_s1 + $0x1b8] ss:$20 sps:$4 sm:$0xff]   ;;  %v7328_v55 = vld [vmem:[%s10680_s1 + $0x1c8] ss:$20 sps:$4 sm:$0xff]  }
 0x218   :  { %6153 = vmatprep.mubr.msk.bf16.mxu0 %vm94_vm1, %v316_v59  ;;  %6154 = vmatprep.mubr.msk.bf16.mxu1 %vm94_vm1, %v316_v59  ;;  %v781_v45 = vpack.c.bf16 %v779_v36, %v777_v40  ;;  %v7331_v56 = vld [vmem:[%s10680_s1 + $0x1e4] ss:$20 sps:$4 sm:$0xff]   ;;  %v7329_v57 = vld [vmem:[%s10680_s1 + $0x1e0] ss:$20 sps:$4 sm:$0xff]   ;;  %v7333_v61 = vld [vmem:[%s10680_s1 + $0x208] ss:$20 sps:$4 sm:$0xff]  }
 0x219   :  { %v8610_v2 = vrot.slane %v782_v63, 1  ;;  %673 = vmatmul.mubr.bf16.vlgmr.msra.gmra.mrb[0].mxu0 %v8604_v0  ;;  %716 = vmatmul.mubr.bf16.vlgmr.msra.gmra.mrb[0].mxu1 %v8604_v0  ;;  %v7335_v60 = vld [vmem:[%s10680_s1 + $0x20c] ss:$20 sps:$4 sm:$0xff]   ;;  %v7339_v63 = vld [vmem:[%s10680_s1 + $0x234] ss:$20 sps:$4 sm:$0xff]  }
 0x21a   :  { %727 = vmatpush1.bf16.msra.mxu0 %v7284_v62  ;;  %1156 = vmatpush1.bf16.msra.mxu1 %v7281_v53  ;;  %v8714_v51 = vrot.slane %v781_v45, 1  ;;  %v7327_v53 = vld [vmem:[%s10680_s1 + $0x1bc] ss:$20 sps:$4 sm:$0xff]   ;;  %v7336_v62 = vld [vmem:[%s10680_s1 + $0x218] ss:$20 sps:$4 sm:$0xff]  }
 0x21b   :  { %1753 = vrot.lane.b32.xlu1 %v1742_v1, %s8233_s22  ;;  %6155 = vmatprep.mubr.msk.bf16.mxu0 %vm94_vm1, %v316_v59  ;;  %v7332_v59 = vld [vmem:[%s10680_s1 + $0x1f0] ss:$20 sps:$4 sm:$0xff]   ;;  %v7340_v1 = vld [vmem:[%s10680_s1 + $0x240] ss:$20 sps:$4 sm:$0xff]  }
 0x21c   :  { %6267 = vmatprep.mubr.msk.bf16.mxu1 %vm94_vm1, %v8610_v2  ;;  %728 = vmatprep.subr.bf16.mxu0 %v8232_v26  ;;  %v7370_v36 = vld [vmem:[%s10680_s1 + $0x350] ss:$20 sps:$4 sm:$0xff]  }
 0x21d   :  { %1157 = vmatprep.subr.bf16.mxu1 %v7287_v3  ;;  %v7341_v3 = vld [vmem:[%s10680_s1 + $0x258] ss:$20 sps:$4 sm:$0xff]   ;;  %v7373_v40 = vld [vmem:[%s10680_s1 + $0x370] ss:$20 sps:$4 sm:$0xff]  }
 0x21e   :  { %729 = vmatpush1.bf16.msra.mxu0 %v7288_v5  ;;  %1158 = vmatpush1.bf16.msra.mxu1 %v7285_v4  ;;  %v7344_v4 = vld [vmem:[%s10680_s1 + $0x268] ss:$20 sps:$4 sm:$0xff]   ;;  %v7347_v5 = vld [vmem:[%s10680_s1 + $0x284] ss:$20 sps:$4 sm:$0xff]  }
 0x21f   :  { %730 = vmatprep.subr.bf16.mxu0 %v8232_v26  ;;  %1159 = vmatprep.subr.bf16.mxu1 %v7291_v6  ;;  %v7345_v6 = vld [vmem:[%s10680_s1 + $0x280] ss:$20 sps:$4 sm:$0xff]   ;;  %v7381_v45 = vld [vmem:[%s10680_s1 + $0x39c] ss:$20 sps:$4 sm:$0xff]  }
 0x222   :  { %731 = vmatpush1.bf16.msra.mxu0 %v7292_v8  ;;  %1160 = vmatpush1.bf16.msra.mxu1 %v7289_v7  ;;  %v7348_v7 = vld [vmem:[%s10680_s1 + $0x290] ss:$20 sps:$4 sm:$0xff]   ;;  %v7351_v8 = vld [vmem:[%s10680_s1 + $0x2ac] ss:$20 sps:$4 sm:$0xff]  }
 0x223   :  { %732 = vmatprep.subr.bf16.mxu0 %v8232_v26  ;;  %1161 = vmatprep.subr.bf16.mxu1 %v7295_v9  ;;  %v7349_v9 = vld [vmem:[%s10680_s1 + $0x2a8] ss:$20 sps:$4 sm:$0xff]  }
 0x226   :  { %733 = vmatpush1.bf16.msra.mxu0 %v7296_v11  ;;  %1162 = vmatpush1.bf16.msra.mxu1 %v7293_v10  ;;  %v7352_v10 = vld [vmem:[%s10680_s1 + $0x2b8] ss:$20 sps:$4 sm:$0xff]   ;;  %v7355_v11 = vld [vmem:[%s10680_s1 + $0x2d4] ss:$20 sps:$4 sm:$0xff]  }
 0x227   :  { %734 = vmatprep.subr.bf16.mxu0 %v8232_v26  ;;  %1163 = vmatprep.subr.bf16.mxu1 %v7299_v12  ;;  %v7353_v12 = vld [vmem:[%s10680_s1 + $0x2d0] ss:$20 sps:$4 sm:$0xff]  }
 0x22a   :  { %735 = vmatpush1.bf16.msra.mxu0 %v7300_v16  ;;  %1164 = vmatpush1.bf16.msra.mxu1 %v7297_v15  ;;  %v7356_v15 = vld [vmem:[%s10680_s1 + $0x2e0] ss:$20 sps:$4 sm:$0xff]   ;;  %v7359_v16 = vld [vmem:[%s10680_s1 + $0x2fc] ss:$20 sps:$4 sm:$0xff]  }
 0x22b   :  { %736 = vmatprep.subr.bf16.mxu0 %v8232_v26  ;;  %1165 = vmatprep.subr.bf16.mxu1 %v7303_v17  ;;  %v7357_v17 = vld [vmem:[%s10680_s1 + $0x2f8] ss:$20 sps:$4 sm:$0xff]  }
 0x22e   :  { %737 = vmatpush1.bf16.msra.mxu0 %v7304_v19  ;;  %1166 = vmatpush1.bf16.msra.mxu1 %v7301_v18  ;;  %v1252_v18 = vld [vmem:[#allocation2 + $0x18] sm:$0xff] }
 0x22f   :  { %738 = vmatprep.subr.bf16.mxu0 %v8232_v26  ;;  %1167 = vmatprep.subr.bf16.mxu1 %v7307_v20  ;;  %v7360_v19 = vld [vmem:[%s10680_s1 + $0x308] ss:$20 sps:$4 sm:$0xff]   ;;  %v7363_v20 = vld [vmem:[%s10680_s1 + $0x324] ss:$20 sps:$4 sm:$0xff]  }
 0x232   :  { %739 = vmatpush1.bf16.msra.mxu0 %v7308_v25  ;;  %1168 = vmatpush1.bf16.msra.mxu1 %v7305_v21  ;;  %v7366_v21 = vld [vmem:[%s10680_s1 + $0x32c] ss:$20 sps:$4 sm:$0xff]  }
 0x233   :  { %740 = vmatprep.subr.bf16.mxu0 %v8232_v26  ;;  %1169 = vmatprep.subr.bf16.mxu1 %v7311_v27  ;;  %v1250_v25 = vld [vmem:[#allocation2 + $0x8] sm:$0xf0] }
 0x234   :  { %v1254_v27 = vpack.c.bf16 %v1252_v18, %v1250_v25  ;;  %v7423_v25 = vld [vmem:[%s10680_s1 + $0x380] ss:$20 sps:$4 sm:$0xff]  }
 0x236   :  { %741 = vmatpush1.bf16.msra.mxu0 %v7312_v29  ;;  %1170 = vmatpush1.bf16.msra.mxu1 %v7309_v28  ;;  %v7361_v28 = vld [vmem:[%s10680_s1 + $0x320] ss:$20 sps:$4 sm:$0xff]   ;;  %v7364_v29 = vld [vmem:[%s10680_s1 + $0x328] ss:$20 sps:$4 sm:$0xff]  }
 0x237   :  { %742 = vmatprep.subr.bf16.mxu0 %v8232_v26  ;;  %1171 = vmatprep.subr.bf16.mxu1 %v7315_v30  ;;  %v7369_v30 = vld [vmem:[%s10680_s1 + $0x34c] ss:$20 sps:$4 sm:$0xff]  }
 0x23a   :  { %743 = vmatpush1.bf16.msra.mxu0 %v7316_v32  ;;  %1172 = vmatpush1.bf16.msra.mxu1 %v7313_v31  ;;  %v8832_v31 = vrot.slane %v1254_v27, 2  ;;  %v7372_v32 = vld [vmem:[%s10680_s1 + $0x354] ss:$20 sps:$4 sm:$0xff]  }
 0x23b   :  { %744 = vmatprep.subr.bf16.mxu0 %v8232_v26  ;;  %1173 = vmatprep.subr.bf16.mxu1 %v7319_v34  ;;  %v7367_v34 = vld [vmem:[%s10680_s1 + $0x348] ss:$20 sps:$4 sm:$0xff]  }
 0x23c   :  { %v7424_v27 = vld [vmem:[%s10680_s1 + $0x3a8] ss:$20 sps:$4 sm:$0xff]  }
 0x23e   :  { %745 = vmatpush1.bf16.msra.mxu0 %v7320_v38  ;;  %1174 = vmatpush1.bf16.msra.mxu1 %v7317_v37  ;;  %v7375_v37 = vld [vmem:[%s10680_s1 + $0x374] ss:$20 sps:$4 sm:$0xff]   ;;  %v7378_v38 = vld [vmem:[%s10680_s1 + $0x37c] ss:$20 sps:$4 sm:$0xff]  }
 0x23f   :  { %1112 = vmatprep.subr.bf16.mxu0 %v7323_v42  ;;  %1198 = vmatprep.subr.bf16.mxu1 %v8232_v26  ;;  %v7376_v42 = vld [vmem:[%s10680_s1 + $0x378] ss:$20 sps:$4 sm:$0xff]  }
 0x241   :  { %759 = vmatmul.mubr.bf16.vlgmr.msra.gmra.mrb[4].mxu0 %v8604_v0  ;;  %1188 = vmatmul.mubr.bf16.vlgmr.msra.gmra.mrb[0].mxu1 %v8714_v51  ;;  %v7337_v0 = vld [vmem:[%s10680_s1 + $0x230] ss:$20 sps:$4 sm:$0xff]  }
 0x242   :  { %1113 = vmatpush1.bf16.msra.mxu0 %v7321_v50  ;;  %6266 = vmatprep.mubr.msk.bf16.mxu0 %vm94_vm1, %v8610_v2  ;;  %v7384_v50 = vld [vmem:[%s10680_s1 + $0x3a4] ss:$20 sps:$4 sm:$0xff]  }
 0x243   :  { %1199 = vmatpush1.bf16.msra.mxu1 %v7324_v52  ;;  %6268 = vmatprep.mubr.msk.bf16.mxu1 %vm94_vm1, %v8610_v2  ;;  %v7343_v2 = vld [vmem:[%s10680_s1 + $0x25c] ss:$20 sps:$4 sm:$0xff]   ;;  %v7382_v52 = vld [vmem:[%s10680_s1 + $0x3a0] ss:$20 sps:$4 sm:$0xff]  }
 0x244   :  { %1114 = vmatprep.subr.bf16.mxu0 %v7327_v53  ;;  %1200 = vmatprep.subr.bf16.mxu1 %v8232_v26  ;;  %v7387_v53 = vld [vmem:[%s10680_s1 + $0x3c4] ss:$20 sps:$4 sm:$0xff]  }
 0x246   :  { %1115 = vmatpush1.bf16.msra.mxu0 %v7325_v54  ;;  %v7390_v54 = vld [vmem:[%s10680_s1 + $0x3cc] ss:$20 sps:$4 sm:$0xff]  }
 0x247   :  { %1201 = vmatpush1.bf16.msra.mxu1 %v7328_v55  ;;  %1116 = vmatprep.subr.bf16.mxu0 %v7331_v56  ;;  %v7385_v55 = vld [vmem:[%s10680_s1 + $0x3c0] ss:$20 sps:$4 sm:$0xff]   ;;  %v7388_v56 = vld [vmem:[%s10680_s1 + $0x3c8] ss:$20 sps:$4 sm:$0xff]  }
 0x248   :  { %1202 = vmatprep.subr.bf16.mxu1 %v8232_v26 }
 0x24a   :  { %1117 = vmatpush1.bf16.msra.mxu0 %v7329_v57  ;;  %v7393_v57 = vld [vmem:[%s10680_s1 + $0x3ec] ss:$20 sps:$4 sm:$0xff]  }
 0x24b   :  { %1203 = vmatpush1.bf16.msra.mxu1 %v7332_v59  ;;  %1118 = vmatprep.subr.bf16.mxu0 %v7335_v60  ;;  %v7396_v59 = vld [vmem:[%s10680_s1 + $0x3f4] ss:$20 sps:$4 sm:$0xff]  }
 0x24c   :  { %1204 = vmatprep.subr.bf16.mxu1 %v8232_v26  ;;  %v7391_v60 = vld [vmem:[%s10680_s1 + $0x3e8] ss:$20 sps:$4 sm:$0xff]  }
 0x24e   :  { %1119 = vmatpush1.bf16.msra.mxu0 %v7333_v61  ;;  %v7394_v61 = vld [vmem:[%s10680_s1 + $0x3f0] ss:$20 sps:$4 sm:$0xff]  }
 0x24f   :  { %1205 = vmatpush1.bf16.msra.mxu1 %v7336_v62  ;;  %1120 = vmatprep.subr.bf16.mxu0 %v7339_v63  ;;  %v7399_v62 = vld [vmem:[%s10680_s1 + $0x414] ss:$20 sps:$4 sm:$0xff]   ;;  %v7402_v63 = vld [vmem:[%s10680_s1 + $0x41c] ss:$20 sps:$4 sm:$0xff]  }
 0x250   :  { %1206 = vmatprep.subr.bf16.mxu1 %v8232_v26 }
 0x252   :  { %1121 = vmatpush1.bf16.msra.mxu0 %v7337_v0  ;;  %v7397_v0 = vld [vmem:[%s10680_s1 + $0x410] ss:$20 sps:$4 sm:$0xff]  }
 0x253   :  { %1207 = vmatpush1.bf16.msra.mxu1 %v7340_v1  ;;  %1122 = vmatprep.subr.bf16.mxu0 %v7343_v2  ;;  %v7400_v1 = vld [vmem:[%s10680_s1 + $0x418] ss:$20 sps:$4 sm:$0xff]   ;;  %v7405_v2 = vld [vmem:[%s10680_s1 + $0x43c] ss:$20 sps:$4 sm:$0xff]  }
 0x254   :  { %1208 = vmatprep.subr.bf16.mxu1 %v8232_v26 }
 0x256   :  { %1123 = vmatpush1.bf16.msra.mxu0 %v7341_v3  ;;  %v7408_v3 = vld [vmem:[%s10680_s1 + $0x444] ss:$20 sps:$4 sm:$0xff]  }
 0x257   :  { %1209 = vmatpush1.bf16.msra.mxu1 %v7344_v4  ;;  %1124 = vmatprep.subr.bf16.mxu0 %v7347_v5  ;;  %v7403_v4 = vld [vmem:[%s10680_s1 + $0x438] ss:$20 sps:$4 sm:$0xff]   ;;  %v7406_v5 = vld [vmem:[%s10680_s1 + $0x440] ss:$20 sps:$4 sm:$0xff]  }
 0x258   :  { %1210 = vmatprep.subr.bf16.mxu1 %v8232_v26 }
 0x25a   :  { %1125 = vmatpush1.bf16.msra.mxu0 %v7345_v6  ;;  %v7411_v6 = vld [vmem:[%s10680_s1 + $0x464] ss:$20 sps:$4 sm:$0xff]  }
 0x25b   :  { %1211 = vmatpush1.bf16.msra.mxu1 %v7348_v7  ;;  %1126 = vmatprep.subr.bf16.mxu0 %v7351_v8  ;;  %v7414_v7 = vld [vmem:[%s10680_s1 + $0x46c] ss:$20 sps:$4 sm:$0xff]  }
 0x25c   :  { %1212 = vmatprep.subr.bf16.mxu1 %v8232_v26  ;;  %v7409_v8 = vld [vmem:[%s10680_s1 + $0x460] ss:$20 sps:$4 sm:$0xff]  }
 0x25e   :  { %1127 = vmatpush1.bf16.msra.mxu0 %v7349_v9  ;;  %v7412_v9 = vld [vmem:[%s10680_s1 + $0x468] ss:$20 sps:$4 sm:$0xff]  }
 0x25f   :  { %1213 = vmatpush1.bf16.msra.mxu1 %v7352_v10  ;;  %1128 = vmatprep.subr.bf16.mxu0 %v7355_v11  ;;  %v7417_v10 = vld [vmem:[%s10680_s1 + $0x48c] ss:$20 sps:$4 sm:$0xff]   ;;  %v7420_v11 = vld [vmem:[%s10680_s1 + $0x494] ss:$20 sps:$4 sm:$0xff]  }
 0x260   :  { %1214 = vmatprep.subr.bf16.mxu1 %v8232_v26 }
 0x262   :  { %1129 = vmatpush1.bf16.msra.mxu0 %v7353_v12  ;;  %v1251_v12 = vld [vmem:[#allocation2 + $0x10] sm:$0xff] }
 0x263   :  { %1215 = vmatpush1.bf16.msra.mxu1 %v7356_v15  ;;  %1130 = vmatprep.subr.bf16.mxu0 %v7359_v16  ;;  %v7415_v15 = vld [vmem:[%s10680_s1 + $0x488] ss:$20 sps:$4 sm:$0xff]   ;;  %v1249_v16 = vld [vmem:[#allocation2] sm:$0xf0] }
 0x264   :  { %1216 = vmatprep.subr.bf16.mxu1 %v8232_v26  ;;  %v1253_v18 = vpack.c.bf16 %v1251_v12, %v1249_v16 }
 0x266   :  { %1131 = vmatpush1.bf16.msra.mxu0 %v7357_v17  ;;  %v7418_v17 = vld [vmem:[%s10680_s1 + $0x490] ss:$20 sps:$4 sm:$0xff]  }
 0x267   :  { %1217 = vmatpush1.bf16.msra.mxu1 %v7360_v19  ;;  %1584 = vmatprep.subr.bf16.mxu0 %v7363_v20  ;;  %v7421_v19 = vld [vmem:[%s10680_s1 + $0x330] ss:$20 sps:$4 sm:$0xff]   ;;  %v1318_v20 = vrot.slane %v1253_v18, 2 }
 0x268   :  { %1627 = vmatprep.subr.bf16.mxu1 %v7366_v21  ;;  %v7422_v21 = vld [vmem:[%s10680_s1 + $0x358] ss:$20 sps:$4 sm:$0xff]  }
 0x269   :  { %1145 = vmatmul.mubr.bf16.vlgmr.msra.gmra.mrb[0].mxu0 %v8714_v51 }
 0x26a   :  { %1231 = vmatmul.mubr.bf16.vlgmr.msra.gmra.mrb[4].mxu1 %v8714_v51  ;;  %1585 = vmatpush1.bf16.msra.mxu0 %v7361_v28  ;;  %v7379_v51 = vld [vmem:[%s10680_s1 + $0x398] ss:$20 sps:$4 sm:$0xff]   ;;  %v7425_v28 = vld [vmem:[%s10680_s1 + $0x3d0] ss:$20 sps:$4 sm:$0xff]  }
 0x26b   :  { %6379 = vmatprep.mubr.msk.bf16.mxu0 %vm94_vm1, %v8832_v31  ;;  %1628 = vmatpush1.bf16.msra.mxu1 %v7364_v29  ;;  %v7426_v29 = vld [vmem:[%s10680_s1 + $0x3f8] ss:$20 sps:$4 sm:$0xff]  }
 0x26c   :  { %6380 = vmatprep.mubr.msk.bf16.mxu1 %vm94_vm1, %v8832_v31  ;;  %1586 = vmatprep.subr.bf16.mxu0 %v7369_v30  ;;  %v7427_v30 = vld [vmem:[%s10680_s1 + $0x420] ss:$20 sps:$4 sm:$0xff]  }
 0x26d   :  { %1629 = vmatprep.subr.bf16.mxu1 %v7372_v32  ;;  %v7429_v32 = vld [vmem:[%s10680_s1 + $0x470] ss:$20 sps:$4 sm:$0xff]  }
 0x26e   :  { %1587 = vmatpush1.bf16.msra.mxu0 %v7367_v34  ;;  %v7430_v34 = vld [vmem:[%s10680_s1 + $0x498] ss:$20 sps:$4 sm:$0xff]  }
 0x26f   :  { %1630 = vmatpush1.bf16.msra.mxu1 %v7370_v36  ;;  %1588 = vmatprep.subr.bf16.mxu0 %v7375_v37 }
 0x270   :  { %1631 = vmatprep.subr.bf16.mxu1 %v7378_v38 }
 0x272   :  { %1589 = vmatpush1.bf16.msra.mxu0 %v7373_v40 }
 0x273   :  { %1632 = vmatpush1.bf16.msra.mxu1 %v7376_v42  ;;  %1590 = vmatprep.subr.bf16.mxu0 %v7381_v45 }
 0x274   :  { %1633 = vmatprep.subr.bf16.mxu1 %v7384_v50 }
 0x276   :  { %1591 = vmatpush1.bf16.msra.mxu0 %v7379_v51 }
 0x277   :  { %1634 = vmatpush1.bf16.msra.mxu1 %v7382_v52  ;;  %1592 = vmatprep.subr.bf16.mxu0 %v7387_v53 }
 0x278   :  { %1635 = vmatprep.subr.bf16.mxu1 %v7390_v54 }
 0x27a   :  { %1593 = vmatpush1.bf16.msra.mxu0 %v7385_v55 }
 0x27b   :  { %1636 = vmatpush1.bf16.msra.mxu1 %v7388_v56  ;;  %1594 = vmatprep.subr.bf16.mxu0 %v7393_v57 }
 0x27c   :  { %1637 = vmatprep.subr.bf16.mxu1 %v7396_v59 }
 0x27e   :  { %1595 = vmatpush1.bf16.msra.mxu0 %v7391_v60  ;;  %v8175_v60 = vld [vmem:[%s10679_s0 + $0x10] sm:$0xff] }
 0x27f   :  { %1638 = vmatpush1.bf16.msra.mxu1 %v7394_v61  ;;  %1596 = vmatprep.subr.bf16.mxu0 %v7399_v62 }
 0x280   :  { %1639 = vmatprep.subr.bf16.mxu1 %v7402_v63 }
 0x282   :  { %1597 = vmatpush1.bf16.msra.mxu0 %v7397_v0 }
 0x283   :  { %1640 = vmatpush1.bf16.msra.mxu1 %v7400_v1  ;;  %1598 = vmatprep.subr.bf16.mxu0 %v7405_v2  ;;  %v8176_v1 = vld [vmem:[%s10679_s0 + $0x38] sm:$0xf] }
 0x284   :  { %1641 = vmatprep.subr.bf16.mxu1 %v7408_v3 }
 0x286   :  { %1599 = vmatpush1.bf16.msra.mxu0 %v7403_v4 }
 0x287   :  { %1642 = vmatpush1.bf16.msra.mxu1 %v7406_v5  ;;  %1600 = vmatprep.subr.bf16.mxu0 %v7411_v6 }
 0x288   :  { %1643 = vmatprep.subr.bf16.mxu1 %v7414_v7 }
 0x28a   :  { %1601 = vmatpush1.bf16.msra.mxu0 %v7409_v8  ;;  %v8178_v8 = vld [vmem:[%s10681_s2 + $0x28] sm:$0xff] }
 0x28b   :  { %1644 = vmatpush1.bf16.msra.mxu1 %v7412_v9  ;;  %1602 = vmatprep.subr.bf16.mxu0 %v7417_v10  ;;  %v8179_v9 = vld [vmem:[%s10681_s2 + $0x30] sm:$0xf]  ;;  %v8180_v10 = vld [vmem:[%s10681_s2 + $0x38] sm:$0xf] }
 0x28c   :  { %1645 = vmatprep.subr.bf16.mxu1 %v7420_v11 }
 0x28e   :  { %1603 = vmatpush1.bf16.msra.mxu0 %v7415_v15 }
 0x28f   :  { %1646 = vmatpush1.bf16.msra.mxu1 %v7418_v17  ;;  %1670 = vmatprep.subr.bf16.mxu0 %v8232_v26 }
 0x291   :  { %1617 = vmatmul.mubr.bf16.vlgmr.msra.gmra.mrb[0].mxu0 %v1318_v20 }
 0x292   :  { %1660 = vmatmul.mubr.bf16.vlgmr.msra.gmra.mrb[0].mxu1 %v1318_v20  ;;  %1671 = vmatpush1.bf16.msra.mxu0 %v7421_v19  ;;  %v8181_v19 = vld [vmem:[%s10679_s0 + $0x8] sm:$0xff] }
 0x293   :  { %6381 = vmatprep.mubr.msk.bf16.mxu0 %vm94_vm1, %v8832_v31  ;;  %1672 = vmatprep.subr.bf16.mxu0 %v8232_v26  ;;  %v7428_v31 = vld [vmem:[%s10680_s1 + $0x448] ss:$20 sps:$4 sm:$0xff]  }
 0x296   :  { %1673 = vmatpush1.bf16.msra.mxu0 %v7422_v21  ;;  %v1750_v21 = vpop.permute.xlu1 %1749 }
 0x297   :  { %1674 = vmatprep.subr.bf16.mxu0 %v8232_v26 }
 0x29a   :  { %1675 = vmatpush1.bf16.msra.mxu0 %v7423_v25  ;;  %v8182_v25 = vld [vmem:[%s10679_s0] sm:$0xff] }
 0x29b   :  { %1676 = vmatprep.subr.bf16.mxu0 %v8232_v26 }
 0x29e   :  { %1677 = vmatpush1.bf16.msra.mxu0 %v7424_v27 }
 0x29f   :  { %1678 = vmatprep.subr.bf16.mxu0 %v8232_v26 }
 0x2a2   :  { %1679 = vmatpush1.bf16.msra.mxu0 %v7425_v28  ;;  %v1748_v28 = vpop.permute.xlu0 %1747 }
 0x2a3   :  { %1680 = vmatprep.subr.bf16.mxu0 %v8232_v26 }
 0x2a6   :  { %1681 = vmatpush1.bf16.msra.mxu0 %v7426_v29  ;;  %v1756_v29 = vsel %vm1755_vm5, %v1748_v28, %v1750_v21 }
 0x2a7   :  { %1682 = vmatprep.subr.bf16.mxu0 %v8232_v26 }
 0x2aa   :  { %1683 = vmatpush1.bf16.msra.mxu0 %v7427_v30 }
 0x2ab   :  { %1684 = vmatprep.subr.bf16.mxu0 %v8232_v26 }
 0x2ae   :  { %1685 = vmatpush1.bf16.msra.mxu0 %v7428_v31 }
 0x2af   :  { %1686 = vmatprep.subr.bf16.mxu0 %v8232_v26 }
 0x2b2   :  { %1687 = vmatpush1.bf16.msra.mxu0 %v7429_v32  ;;  %v8183_v32 = vld [vmem:[%s10679_s0 + $0x30] sm:$0xf] }
 0x2b3   :  { %1688 = vmatprep.subr.bf16.mxu0 %v8232_v26 }
 0x2b6   :  { %1689 = vmatpush1.bf16.msra.mxu0 %v7430_v34 }
 0x2b9   :  { %1703 = vmatmul.mubr.bf16.vlgmr.msra.gmra.mrb[8].mxu0 %v1318_v20 }
 0x314   :  { %v760_v36 = vpop.f32.mrb[4].mxu0 }
 0x315   :  { %v762_v37 = vpop.f32.mrb[5].mxu0  ;;  %v771_v42 = vadd.f32 %v760_v36, %v8466_v13  ;;  %v1754_v36 = vpop.permute.xlu1 %1753 }
 0x316   :  { %v763_v38 = vpop.f32.mrb[6].mxu0  ;;  %v8184_v37 = vld [vmem:[%s10679_s0 + $0x28] sm:$0xf] }
 0x317   :  { %v765_v40 = vpop.f32.mrb[7].mxu0  ;;  %v776_v50 = vadd.f32 %v763_v38, %v8479_v22 }
 0x33d   :  { %v1232_v45 = vpop.f32.mrb[4].mxu1 }
 0x33e   :  { %v1243_v51 = vadd.f32 %v1232_v45, %v771_v42  ;;  %v1234_v52 = vpop.f32.mrb[5].mxu1  ;;  %v1752_v42 = vpop.permute.xlu0 %1751 }
 0x33f   :  { %v1235_v53 = vpop.f32.mrb[6].mxu1 }
 0x340   :  { %v1248_v54 = vadd.f32 %v1235_v53, %v776_v50  ;;  %v1237_v55 = vpop.f32.mrb[7].mxu1  ;;  %v1757_v50 = vsel %vm1755_vm5, %v1752_v42, %v1754_v36 }
 0x364   :  { %v1618_v56 = vpop.f32.mrb[0].mxu0 }
 0x365   :  { %v1661_v57 = vpop.f32.mrb[0].mxu1  ;;  %v1620_v59 = vpop.f32.mrb[1].mxu0  ;;  %v7143_v27 = vadd.f32 %v8182_v25, %v1618_v56 }
 0x366   :  { %v8991_v61 = vadd.f32 %v8175_v60, %v1661_v57  ;;  %v1663_v62 = vpop.f32.mrb[1].mxu1  ;;  %v1622_v63 = vpop.f32.mrb[2].mxu0  ;;  %v9035_v20 = vadd.f32 %v8181_v19, %v1620_v59 }
 0x367   :  { %v8994_v13 = vadd.f32 %v8471_v14, %v1663_v62  ;;  %v1665_v22 = vpop.f32.mrb[2].mxu1  ;;  %v1624_v0 = vpop.f32.mrb[3].mxu0  ;;  %v1762_v31 = vadd.f32 %v7143_v27, %v1756_v29  ;;  %v7145_v38 = vadd.f32 %v8184_v37, %v1622_v63 }
 0x368   :  { %7975 = vtanh.f32 %v8991_v61  ;;  %v9000_v2 = vadd.f32 %v8176_v1, %v1665_v22  ;;  %v1667_v3 = vpop.f32.mrb[3].mxu1  ;;  %v1763_v30 = vadd.f32 %v9035_v20, %v1750_v21  ;;  %v7146_v34 = vadd.f32 %v8183_v32, %v1624_v0 }
 0x369   :  { %7977 = vtanh.f32 %v8994_v13  ;;  %v9004_v4 = vadd.f32 %v8484_v23, %v1667_v3  ;;  %v8177_v23 = vld [vmem:[%s10681_s2 + $0x20] sm:$0xff]  ;;  %v6382_v45 = vmul.f32 -1.442695, %v1762_v31  ;;  %v1764_v52 = vadd.f32 %v7145_v38, %v1757_v50 }
 0x36a   :  { %7979 = vtanh.f32 %v9000_v2  ;;  %v6383_v40 = vmul.f32 -1.442695, %v1763_v30 }
 0x36b   :  { %7981 = vtanh.f32 %v9004_v4 }
 0x36c   :  { %7983 = vpow2.f32 %v6383_v40 }
 0x36d   :  { %7985 = vpow2.f32 %v6382_v45 }
 0x372   :  { %v7976_v14 = vpop.eup %7975 }
 0x373   :  { %v7978_v5 = vpop.eup %7977  ;;  %1852 = vrot.lane.b32.xlu0 %v7976_v14, %s8229_s28 }
 0x374   :  { %1854 = vrot.lane.b32.xlu1 %v7978_v5, %s8229_s28  ;;  %v7980_v6 = vpop.eup %7979 }
 0x375   :  { %v7982_v7 = vpop.eup %7981 }
 0x376   :  { %v7984_v55 = vpop.eup %7983 }
 0x377   :  { %1856 = vrot.lane.b32.xlu0 %v7980_v6, %s8229_s28  ;;  %v7986_v56 = vpop.eup %7985  ;;  %v1779_v57 = vadd.f32 1.0, %v7984_v55 }
 0x378   :  { %1858 = vrot.lane.b32.xlu1 %v7982_v7, %s8229_s28  ;;  %v1778_v59 = vadd.f32 1.0, %v7986_v56 }
 0x37b   :  { %1794 = vrot.lane.b32.xlu0 %v8177_v23, %s8230_s10 }
 0x37c   :  { %1796 = vrot.lane.b32.xlu1 %v8178_v8, %s8230_s10 }
 0x37f   :  { %1798 = vrot.lane.b32.xlu0 %v8179_v9, %s8230_s10 }
 0x380   :  { %1800 = vrot.lane.b32.xlu1 %v8180_v10, %s8230_s10 }
 0x38c   :  { %v1704_v11 = vpop.f32.mrb[8].mxu0 }
 0x38d   :  { %v9028_v12 = vadd.f32 %v1704_v11, %v1243_v51  ;;  %v1706_v15 = vpop.f32.mrb[9].mxu0  ;;  %v1765_v51 = vadd.f32 %v7146_v34, %v1754_v36 }
 0x38e   :  { %v1707_v16 = vpop.f32.mrb[10].mxu0 }
 0x38f   :  { %v9030_v17 = vadd.f32 %v1707_v16, %v1248_v54  ;;  %v1709_v18 = vpop.f32.mrb[11].mxu0  ;;  %v6385_v53 = vmul.f32 -1.442695, %v1765_v51  ;;  %v6384_v54 = vmul.f32 -1.442695, %v1764_v52 }
 0x391   :  { %7987 = vpow2.f32 %v6385_v53 }
 0x392   :  { %7989 = vpow2.f32 %v6384_v54 }
 0x393   :  { %7991 = vrcp.f32 %v1779_v57 }
 0x394   :  { %7993 = vrcp.f32 %v1778_v59 }
 0x39b   :  { %v7988_v60 = vpop.eup %7987 }
 0x39c   :  { %v7990_v62 = vpop.eup %7989  ;;  %v1781_v63 = vadd.f32 1.0, %v7988_v60 }
 0x39d   :  { %v1780_v22 = vadd.f32 1.0, %v7990_v62  ;;  %v7992_v1 = vpop.eup %7991 }
 0x39e   :  { %7995 = vrcp.f32 %v1781_v63  ;;  %v7994_v14 = vpop.eup %7993 }
 0x39f   :  { %7997 = vrcp.f32 %v1780_v22 }
 0x3a8   :  { %v7996_v8 = vpop.eup %7995 }
 0x3a9   :  { %v7998_v10 = vpop.eup %7997 }
 0x3e5   :  { %v1853_v0 = vpop.permute.xlu0 %1852 }
 0x3e6   :  { %v1855_v3 = vpop.permute.xlu1 %1854 }
 0x3e7   :  { %v1860_v5 = vsel %vm149_vm0, %v1853_v0, %v1855_v3  ;;  %v1867_v6 = vmul.f32 %v7992_v1, %v1855_v3 }
 0x3e8   :  { %v1866_v7 = vmul.f32 %v7994_v14, %v1860_v5 }
 0x3e9   :  { %1876 = vrot.lane.b32.xlu1 %v1867_v6, %s8230_s10  ;;  %v1857_v23 = vpop.permute.xlu0 %1856 }
 0x3ea   :  { %1874 = vrot.lane.b32.xlu0 %v1866_v7, %s8230_s10  ;;  %v1859_v9 = vpop.permute.xlu1 %1858 }
 0x3eb   :  { %v1861_v11 = vsel %vm149_vm0, %v1857_v23, %v1859_v9  ;;  %v1869_v15 = vmul.f32 %v7996_v8, %v1859_v9 }
 0x3ec   :  { %v1868_v16 = vmul.f32 %v7998_v10, %v1861_v11 }
 0x3ed   :  { %1880 = vrot.lane.b32.xlu1 %v1869_v15, %s8230_s10  ;;  %v9055_v18 = vpop.permute.xlu0 %1794 }
 0x3ee   :  { %1878 = vrot.lane.b32.xlu0 %v1868_v16, %s8230_s10  ;;  %v1797_v19 = vpop.permute.xlu1 %1796  ;;  %v1808_v25 = vmul.f32 %v9055_v18, %v8358_v33 }
 0x3ef   :  { %v9059_v21 = vsel %vm94_vm1, %v9055_v18, %v1797_v19 }
 0x3f0   :  { %v1809_v27 = vmul.f32 %v9059_v21, %v8360_v35  ;;  %v1812_v30 = vadd.f32 %v9035_v20, %v1808_v25  ;;  %v7431_v25 = vld [vmem:[%s10680_s1] ss:$20 sps:$4 sm:$0xff]  }
 0x3f1   :  { %v9065_v28 = vpop.permute.xlu0 %1798 }
 0x3f2   :  { %v1801_v29 = vpop.permute.xlu1 %1800  ;;  %v1813_v32 = vadd.f32 %v8991_v61, %v1809_v27  ;;  %v1810_v36 = vmul.f32 %v9065_v28, %v8373_v43  ;;  %v6386_v38 = vmul.f32 -1.442695, %v1812_v30  ;;  %v7433_v27 = vld [vmem:[%s10680_s1 + $0x4] ss:$20 sps:$4 sm:$0xff]   ;;  %v7436_v30 = vld [vmem:[%s10680_s1 + $0xc] ss:$20 sps:$4 sm:$0xff]  }
 0x3f3   :  { %v9070_v31 = vsel %vm94_vm1, %v9065_v28, %v1801_v29  ;;  %v7434_v29 = vld [vmem:[%s10680_s1 + $0x8] ss:$20 sps:$4 sm:$0xff]   ;;  %2325 = vmatprep.subr.bf16.mxu1 %v7433_v27  ;;  %2368 = vmatprep.subr.bf16.mxu0 %v7436_v30  ;;  %v7473_v30 = vld [vmem:[%s10680_s1 + $0x118] ss:$20 sps:$4 sm:$0xff]  }
 0x3f4   :  { %v1811_v37 = vmul.f32 %v9070_v31, %v8376_v44  ;;  %v6387_v40 = vmul.f32 -1.442695, %v1813_v32  ;;  %v1814_v42 = vadd.f32 %v7146_v34, %v1810_v36  ;;  %7999 = vpow2.f32 %v6386_v38  ;;  %v7439_v32 = vld [vmem:[%s10680_s1 + $0x2c] ss:$20 sps:$4 sm:$0xff]   ;;  %v7442_v36 = vld [vmem:[%s10680_s1 + $0x34] ss:$20 sps:$4 sm:$0xff]   ;;  %2326 = vmatpush1.bf16.msra.mxu1 %v7431_v25  ;;  %2369 = vmatpush1.bf16.msra.mxu0 %v7434_v29 }
 0x3f5   :  { %2327 = vmatprep.subr.bf16.mxu1 %v7439_v32  ;;  %v7440_v38 = vld [vmem:[%s10680_s1 + $0x30] ss:$20 sps:$4 sm:$0xff]   ;;  %2370 = vmatprep.subr.bf16.mxu0 %v7442_v36  ;;  %v7476_v36 = vld [vmem:[%s10680_s1 + $0x120] ss:$20 sps:$4 sm:$0xff]  }
 0x3f6   :  { %v1815_v45 = vadd.f32 %v9000_v2, %v1811_v37  ;;  %8001 = vpow2.f32 %v6387_v40  ;;  %v6388_v20 = vmul.f32 -1.442695, %v1814_v42  ;;  %v7437_v37 = vld [vmem:[%s10680_s1 + $0x28] ss:$20 sps:$4 sm:$0xff]  }
 0x3f7   :  { %v7445_v40 = vld [vmem:[%s10680_s1 + $0x54] ss:$20 sps:$4 sm:$0xff]   ;;  %v7448_v42 = vld [vmem:[%s10680_s1 + $0x5c] ss:$20 sps:$4 sm:$0xff]  }
 0x3f8   :  { %v6389_v50 = vmul.f32 -1.442695, %v1815_v45  ;;  %8003 = vpow2.f32 %v6388_v20  ;;  %2328 = vmatpush1.bf16.msra.mxu1 %v7437_v37  ;;  %v7443_v45 = vld [vmem:[%s10680_s1 + $0x50] ss:$20 sps:$4 sm:$0xff]   ;;  %2371 = vmatpush1.bf16.msra.mxu0 %v7440_v38  ;;  %v7446_v20 = vld [vmem:[%s10680_s1 + $0x58] ss:$20 sps:$4 sm:$0xff]  }
 0x3f9   :  { %2329 = vmatprep.subr.bf16.mxu1 %v7445_v40  ;;  %2372 = vmatprep.subr.bf16.mxu0 %v7448_v42  ;;  %v7475_v32 = vld [vmem:[%s10680_s1 + $0x11c] ss:$20 sps:$4 sm:$0xff]   ;;  %v7478_v40 = vld [vmem:[%s10680_s1 + $0x124] ss:$20 sps:$4 sm:$0xff]  }
 0x3fa   :  { %8005 = vpow2.f32 %v6389_v50  ;;  %v7451_v50 = vld [vmem:[%s10680_s1 + $0x7c] ss:$20 sps:$4 sm:$0xff]  }
 0x3fc   :  { %2330 = vmatpush1.bf16.msra.mxu1 %v7443_v45  ;;  %2373 = vmatpush1.bf16.msra.mxu0 %v7446_v20 }
 0x3fd   :  { %2331 = vmatprep.subr.bf16.mxu1 %v7451_v50 }
 0x3fe   :  { %v8000_v51 = vpop.eup %7999 }
 0x3ff   :  { %v1828_v61 = vadd.f32 1.0, %v8000_v51  ;;  %v7454_v51 = vld [vmem:[%s10680_s1 + $0x84] ss:$20 sps:$4 sm:$0xff]  }
 0x400   :  { %v8002_v52 = vpop.eup %8001  ;;  %2374 = vmatprep.subr.bf16.mxu0 %v7454_v51  ;;  %v7479_v51 = vld [vmem:[%s10680_s1 + $0x140] ss:$20 sps:$4 sm:$0xff]  }
 0x401   :  { %v1829_v53 = vadd.f32 1.0, %v8002_v52  ;;  %8007 = vrcp.f32 %v1828_v61  ;;  %v7449_v52 = vld [vmem:[%s10680_s1 + $0x78] ss:$20 sps:$4 sm:$0xff]   ;;  %v7452_v61 = vld [vmem:[%s10680_s1 + $0x80] ss:$20 sps:$4 sm:$0xff]  }
 0x402   :  { %v8004_v54 = vpop.eup %8003  ;;  %2332 = vmatpush1.bf16.msra.mxu1 %v7449_v52  ;;  %2375 = vmatpush1.bf16.msra.mxu0 %v7452_v61  ;;  %v7481_v52 = vld [vmem:[%s10680_s1 + $0x144] ss:$20 sps:$4 sm:$0xff]   ;;  %v7482_v61 = vld [vmem:[%s10680_s1 + $0x148] ss:$20 sps:$4 sm:$0xff]  }
 0x403   :  { %8009 = vrcp.f32 %v1829_v53  ;;  %v1830_v56 = vadd.f32 1.0, %v8004_v54  ;;  %v7457_v53 = vld [vmem:[%s10680_s1 + $0xa4] ss:$20 sps:$4 sm:$0xff]   ;;  %v7460_v54 = vld [vmem:[%s10680_s1 + $0xac] ss:$20 sps:$4 sm:$0xff]  }
 0x404   :  { %v8006_v55 = vpop.eup %8005  ;;  %2333 = vmatprep.subr.bf16.mxu1 %v7457_v53  ;;  %2376 = vmatprep.subr.bf16.mxu0 %v7460_v54 }
 0x405   :  { %v1831_v57 = vadd.f32 1.0, %v8006_v55  ;;  %8011 = vrcp.f32 %v1830_v56  ;;  %v7455_v55 = vld [vmem:[%s10680_s1 + $0xa0] ss:$20 sps:$4 sm:$0xff]   ;;  %v7458_v56 = vld [vmem:[%s10680_s1 + $0xa8] ss:$20 sps:$4 sm:$0xff]  }
 0x406   :  { %2334 = vmatpush1.bf16.msra.mxu1 %v7455_v55  ;;  %2377 = vmatpush1.bf16.msra.mxu0 %v7458_v56  ;;  %v7484_v55 = vld [vmem:[%s10680_s1 + $0x14c] ss:$20 sps:$4 sm:$0xff]  }
 0x407   :  { %8013 = vrcp.f32 %v1831_v57  ;;  %v7463_v57 = vld [vmem:[%s10680_s1 + $0xcc] ss:$20 sps:$4 sm:$0xff]  }
 0x408   :  { %2335 = vmatprep.subr.bf16.mxu1 %v7463_v57 }
 0x40b   :  { %v8008_v34 = vpop.eup %8007 }
 0x40c   :  { %v1840_v60 = vmul.f32 %v8008_v34, %v8358_v33  ;;  %v7466_v34 = vld [vmem:[%s10680_s1 + $0xd4] ss:$20 sps:$4 sm:$0xff]  }
 0x40d   :  { %v8010_v2 = vpop.eup %8009  ;;  %2378 = vmatprep.subr.bf16.mxu0 %v7466_v34 }
 0x40e   :  { %v1841_v62 = vmul.f32 %v8010_v2, %v8360_v35  ;;  %v7461_v2 = vld [vmem:[%s10680_s1 + $0xc8] ss:$20 sps:$4 sm:$0xff]  }
 0x40f   :  { %v8012_v1 = vpop.eup %8011  ;;  %2336 = vmatpush1.bf16.msra.mxu1 %v7461_v2 }
 0x410   :  { %v1842_v6 = vmul.f32 %v8012_v1, %v8373_v43 }
 0x411   :  { %v8014_v14 = vpop.eup %8013 }
 0x412   :  { %v1843_v7 = vmul.f32 %v8014_v14, %v8376_v44 }
 0x45b   :  { %v1877_v59 = vpop.permute.xlu1 %1876 }
 0x45c   :  { %v1875_v63 = vpop.permute.xlu0 %1874 }
 0x45d   :  { %v1882_v22 = vsel %vm94_vm1, %v1875_v63, %v1877_v59  ;;  %v9081_v0 = vadd.f32 %v1875_v63, %v1840_v60  ;;  %v7464_v59 = vld [vmem:[%s10680_s1 + $0xd0] ss:$20 sps:$4 sm:$0xff]  }
 0x45e   :  { %v9083_v3 = vadd.f32 %v1882_v22, %v1841_v62  ;;  %2379 = vmatpush1.bf16.msra.mxu0 %v7464_v59  ;;  %v7485_v59 = vld [vmem:[%s10680_s1 + $0x168] ss:$20 sps:$4 sm:$0xff]  }
 0x45f   :  { %8015 = vtanh.f32 %v9081_v0  ;;  %v1892_v5 = vmul.f32 %v9081_v0, %v8355_v24  ;;  %v1881_v35 = vpop.permute.xlu1 %1880 }
 0x460   :  { %8017 = vtanh.f32 %v9083_v3  ;;  %v1893_v33 = vmul.f32 %v9083_v3, %v8367_v39  ;;  %v1879_v23 = vpop.permute.xlu0 %1878 }
 0x461   :  { %1900 = vrot.lane.b32.xlu0 %v1892_v5, %s8229_s28  ;;  %v1883_v8 = vsel %vm94_vm1, %v1879_v23, %v1881_v35  ;;  %v9096_v9 = vadd.f32 %v1879_v23, %v1842_v6 }
 0x462   :  { %1902 = vrot.lane.b32.xlu1 %v1893_v33, %s8229_s28  ;;  %v9098_v10 = vadd.f32 %v1883_v8, %v1843_v7 }
 0x463   :  { %8019 = vtanh.f32 %v9096_v9  ;;  %v1894_v11 = vmul.f32 %v9096_v9, %v8381_v46 }
 0x464   :  { %8021 = vtanh.f32 %v9098_v10  ;;  %v1895_v43 = vmul.f32 %v9098_v10, %v8387_v48 }
 0x465   :  { %1904 = vrot.lane.b32.xlu0 %v1894_v11, %s8229_s28 }
 0x466   :  { %1906 = vrot.lane.b32.xlu1 %v1895_v43, %s8229_s28 }
 0x469   :  { %v8016_v44 = vpop.eup %8015 }
 0x46a   :  { %v8018_v15 = vpop.eup %8017  ;;  %1950 = vrot.lane.b32.xlu0 %v8016_v44, %s8229_s28 }
 0x46b   :  { %1952 = vrot.lane.b32.xlu1 %v8018_v15, %s8229_s28  ;;  %v7467_v15 = vld [vmem:[%s10680_s1 + $0xf0] ss:$20 sps:$4 sm:$0xff]  }
 0x46d   :  { %v8020_v16 = vpop.eup %8019 }
 0x46e   :  { %v8022_v19 = vpop.eup %8021  ;;  %1954 = vrot.lane.b32.xlu0 %v8020_v16, %s8229_s28  ;;  %v7472_v16 = vld [vmem:[%s10680_s1 + $0xfc] ss:$20 sps:$4 sm:$0xff]  }
 0x46f   :  { %1956 = vrot.lane.b32.xlu1 %v8022_v19, %s8229_s28  ;;  %2380 = vmatprep.subr.bf16.mxu0 %v7472_v16 }
 0x4d3   :  { %v1901_v60 = vpop.permute.xlu0 %1900 }
 0x4d4   :  { %v1914_v62 = vadd.f32 %v8994_v13, %v1901_v60  ;;  %v1903_v63 = vpop.permute.xlu1 %1902 }
 0x4d5   :  { %v1908_v22 = vsel %vm149_vm0, %v1901_v60, %v1903_v63  ;;  %v7487_v60 = vld [vmem:[%s10680_s1 + $0x16c] ss:$20 sps:$4 sm:$0xff]  }
 0x4d6   :  { %v6390_v1 = vmul.f32 -1.442695, %v1914_v62  ;;  %v1915_v14 = vadd.f32 %v1908_v22, %v9028_v12  ;;  %v7488_v62 = vld [vmem:[%s10680_s1 + $0x170] ss:$20 sps:$4 sm:$0xff]   ;;  %v7490_v22 = vld [vmem:[%s10680_s1 + $0x174] ss:$20 sps:$4 sm:$0xff]  }
 0x4d7   :  { %v1905_v33 = vpop.permute.xlu0 %1904 }
 0x4d8   :  { %8023 = vpow2.f32 %v6390_v1  ;;  %v6391_v5 = vmul.f32 -1.442695, %v1915_v14  ;;  %v1916_v35 = vadd.f32 %v9004_v4, %v1905_v33  ;;  %v1907_v6 = vpop.permute.xlu1 %1906  ;;  %v7469_v4 = vld [vmem:[%s10680_s1 + $0xf4] ss:$20 sps:$4 sm:$0xff]  }
 0x4d9   :  { %v1909_v7 = vsel %vm149_vm0, %v1905_v33, %v1907_v6  ;;  %2337 = vmatprep.subr.bf16.mxu1 %v7469_v4 }
 0x4da   :  { %8025 = vpow2.f32 %v6391_v5  ;;  %v6392_v23 = vmul.f32 -1.442695, %v1916_v35  ;;  %v1917_v8 = vadd.f32 %v1909_v7, %v9030_v17  ;;  %v7470_v17 = vld [vmem:[%s10680_s1 + $0xf8] ss:$20 sps:$4 sm:$0xff]   ;;  %2338 = vmatpush1.bf16.msra.mxu1 %v7467_v15  ;;  %v7493_v7 = vld [vmem:[%s10680_s1 + $0x19c] ss:$20 sps:$4 sm:$0xff]  }
 0x4db   :  { %2381 = vmatpush1.bf16.msra.mxu0 %v7470_v17  ;;  %2339 = vmatprep.subr.bf16.mxu1 %v7475_v32 }
 0x4dc   :  { %8027 = vpow2.f32 %v6392_v23  ;;  %v6393_v13 = vmul.f32 -1.442695, %v1917_v8  ;;  %v1951_v37 = vpop.permute.xlu0 %1950  ;;  %2382 = vmatprep.subr.bf16.mxu0 %v7478_v40  ;;  %v3404_v8 = vmul.f32 %v9081_v0, %v8577_v41 }
 0x4dd   :  { %v1953_v38 = vpop.permute.xlu1 %1952 }
 0x4de   :  { %8029 = vpow2.f32 %v6393_v13  ;;  %2340 = vmatpush1.bf16.msra.mxu1 %v7473_v30  ;;  %v1958_v50 = vsel %vm149_vm0, %v1951_v37, %v1953_v38  ;;  %v3405_v13 = vmul.f32 %v9083_v3, %v8583_v47  ;;  %v7494_v38 = vld [vmem:[%s10680_s1 + $0x10] ss:$20 sps:$4 sm:$0xff]  }
 0x4df   :  { %2383 = vmatpush1.bf16.msra.mxu0 %v7476_v36  ;;  %2341 = vmatprep.subr.bf16.mxu1 %v7481_v52  ;;  %v7501_v52 = vld [vmem:[%s10680_s1 + $0x1ec] ss:$20 sps:$4 sm:$0xff]  }
 0x4e0   :  { %v1955_v57 = vpop.permute.xlu0 %1954  ;;  %2384 = vmatprep.subr.bf16.mxu0 %v7484_v55  ;;  %v7503_v55 = vld [vmem:[%s10680_s1 + $0x210] ss:$20 sps:$4 sm:$0xff]  }
 0x4e1   :  { %v1957_v34 = vpop.permute.xlu1 %1956 }
 0x4e2   :  { %v8024_v11 = vpop.eup %8023  ;;  %2342 = vmatpush1.bf16.msra.mxu1 %v7479_v51  ;;  %v1959_v14 = vsel %vm149_vm0, %v1955_v57, %v1957_v34  ;;  %v7498_v51 = vld [vmem:[%s10680_s1 + $0x38] ss:$20 sps:$4 sm:$0xff]  }
 0x4e3   :  { %v1930_v43 = vadd.f32 1.0, %v8024_v11  ;;  %2385 = vmatpush1.bf16.msra.mxu0 %v7482_v61  ;;  %2343 = vmatprep.subr.bf16.mxu1 %v7487_v60  ;;  %v3406_v11 = vmul.f32 %v9096_v9, %v8586_v49  ;;  %v7499_v61 = vld [vmem:[%s10680_s1 + $0x1e8] ss:$20 sps:$4 sm:$0xff]   ;;  %v7507_v34 = vld [vmem:[%s10680_s1 + $0x238] ss:$20 sps:$4 sm:$0xff]  }
 0x4e4   :  { %v8026_v44 = vpop.eup %8025  ;;  %2386 = vmatprep.subr.bf16.mxu0 %v7490_v22  ;;  %v7511_v60 = vld [vmem:[%s10680_s1 + $0x260] ss:$20 sps:$4 sm:$0xff]   ;;  %v7515_v22 = vld [vmem:[%s10680_s1 + $0x288] ss:$20 sps:$4 sm:$0xff]  }
 0x4e5   :  { %8031 = vrcp.f32 %v1930_v43  ;;  %v1931_v12 = vadd.f32 1.0, %v8026_v44  ;;  %v3407_v43 = vmul.f32 %v9098_v10, %v8598_v58 }
 0x4e6   :  { %v8028_v19 = vpop.eup %8027  ;;  %2344 = vmatpush1.bf16.msra.mxu1 %v7485_v59  ;;  %v7513_v59 = vld [vmem:[%s10680_s1 + $0x264] ss:$20 sps:$4 sm:$0xff]  }
 0x4e7   :  { %8033 = vrcp.f32 %v1931_v12  ;;  %v1932_v25 = vadd.f32 1.0, %v8028_v19  ;;  %2387 = vmatpush1.bf16.msra.mxu0 %v7488_v62  ;;  %2411 = vmatprep.subr.bf16.mxu1 %v8232_v26  ;;  %v7514_v62 = vld [vmem:[%s10680_s1 + $0xd8] ss:$20 sps:$4 sm:$0xff]  }
 0x4e8   :  { %v8030_v27 = vpop.eup %8029  ;;  %2839 = vmatprep.subr.bf16.mxu0 %v7493_v7  ;;  %v7526_v7 = vld [vmem:[%s10680_s1 + $0x150] ss:$20 sps:$4 sm:$0xff]  }
 0x4e9   :  { %8035 = vrcp.f32 %v1932_v25  ;;  %v1933_v29 = vadd.f32 1.0, %v8030_v27  ;;  %v7491_v25 = vld [vmem:[%s10680_s1 + $0x198] ss:$20 sps:$4 sm:$0xff]  }
 0x4eb   :  { %8037 = vrcp.f32 %v1933_v29 }
 0x4ef   :  { %v8032_v42 = vpop.eup %8031 }
 0x4f0   :  { %v1964_v45 = vmul.f32 %v8032_v42, %v1951_v37 }
 0x4f1   :  { %v8034_v20 = vpop.eup %8033 }
 0x4f2   :  { %v1972_v53 = vrot.slane %v1964_v45, 6  ;;  %v1965_v54 = vmul.f32 %v8034_v20, %v1958_v50  ;;  %v7497_v20 = vld [vmem:[%s10680_s1 + $0x1c4] ss:$20 sps:$4 sm:$0xff]   ;;  %v7495_v50 = vld [vmem:[%s10680_s1 + $0x1c0] ss:$20 sps:$4 sm:$0xff]  }
 0x4f3   :  { %v8036_v2 = vpop.eup %8035 }
 0x4f4   :  { %v1973_v56 = vrot.slane %v1965_v54, 6  ;;  %1978 = vrot.lane.b32.xlu0 %v1972_v53, %s8230_s10  ;;  %v1966_v63 = vmul.f32 %v8036_v2, %v1955_v57  ;;  %v7505_v54 = vld [vmem:[%s10680_s1 + $0x214] ss:$20 sps:$4 sm:$0xff]   ;;  %v7509_v57 = vld [vmem:[%s10680_s1 + $0x23c] ss:$20 sps:$4 sm:$0xff]  }
 0x4f5   :  { %v8038_v1 = vpop.eup %8037  ;;  %v7510_v2 = vld [vmem:[%s10680_s1 + $0xb0] ss:$20 sps:$4 sm:$0xff]  }
 0x4f6   :  { %1980 = vrot.lane.b32.xlu1 %v1973_v56, %s8230_s10  ;;  %v1974_v5 = vrot.slane %v1966_v63, 6  ;;  %v1967_v33 = vmul.f32 %v8038_v1, %v1959_v14  ;;  %v7517_v63 = vld [vmem:[%s10680_s1 + $0x28c] ss:$20 sps:$4 sm:$0xff]   ;;  %v7521_v14 = vld [vmem:[%s10680_s1 + $0x2b4] ss:$20 sps:$4 sm:$0xff]  }
 0x4f7   :  { %v7518_v1 = vld [vmem:[%s10680_s1 + $0x100] ss:$20 sps:$4 sm:$0xff]  }
 0x4f8   :  { %v1976_v35 = vrot.slane %v1967_v33, 6  ;;  %v1975_v6 = vsel %vm284_vm2, %v1972_v53, %v1974_v5  ;;  %v7502_v53 = vld [vmem:[%s10680_s1 + $0x60] ss:$20 sps:$4 sm:$0xff]   ;;  %v7519_v5 = vld [vmem:[%s10680_s1 + $0x2b0] ss:$20 sps:$4 sm:$0xff]  }
 0x4f9   :  { %1982 = vrot.lane.b32.xlu0 %v1975_v6, %s8230_s10  ;;  %v7522_v33 = vld [vmem:[%s10680_s1 + $0x128] ss:$20 sps:$4 sm:$0xff]   ;;  %v7523_v6 = vld [vmem:[%s10680_s1 + $0x2d8] ss:$20 sps:$4 sm:$0xff]  }
 0x4fa   :  { %v1977_v23 = vsel %vm284_vm2, %v1973_v56, %v1976_v35  ;;  %v7506_v56 = vld [vmem:[%s10680_s1 + $0x88] ss:$20 sps:$4 sm:$0xff]  }
 0x4fb   :  { %1984 = vrot.lane.b32.xlu1 %v1977_v23, %s8230_s10  ;;  %v7525_v35 = vld [vmem:[%s10680_s1 + $0x2dc] ss:$20 sps:$4 sm:$0xff]   ;;  %v7529_v23 = vld [vmem:[%s10680_s1 + $0x304] ss:$20 sps:$4 sm:$0xff]  }
 0x4fd   :  { %3412 = vrot.lane.b32.xlu0 %v3404_v8, %s8233_s22 }
 0x4ff   :  { %3414 = vrot.lane.b32.xlu1 %v3405_v13, %s8233_s22  ;;  %v7527_v13 = vld [vmem:[%s10680_s1 + $0x300] ss:$20 sps:$4 sm:$0xff]  }
 0x501   :  { %3416 = vrot.lane.b32.xlu0 %v3406_v11, %s8233_s22  ;;  %v7530_v11 = vld [vmem:[%s10680_s1 + $0x178] ss:$20 sps:$4 sm:$0xff]  }
 0x503   :  { %3418 = vrot.lane.b32.xlu1 %v3407_v43, %s8233_s22 }
 0x566   :  { %v1979_v44 = vpop.permute.xlu0 %1978 }
 0x568   :  { %v1981_v12 = vpop.permute.xlu1 %1980 }
 0x569   :  { %v1986_v15 = vsel %vm94_vm1, %v1979_v44, %v1981_v12  ;;  %1993 = vst.msk [vmem:[#allocation2 + $0x8] sm:$0xfc] %vm306_vm3, %v1981_v12  ;;  %v7533_v44 = vld [vmem:[%s10680_s1 + $0x194] ss:$20 sps:$4 sm:$0xff]  }
 0x56a   :  { %1992 = vst [vmem:[#allocation2] sm:$0xfc] %v1986_v15  ;;  %v7531_v15 = vld [vmem:[%s10680_s1 + $0x190] ss:$20 sps:$4 sm:$0xff]  }
 0x56b   :  { %v1983_v4 = vpop.permute.xlu0 %1982 }
 0x56d   :  { %v1985_v17 = vpop.permute.xlu1 %1984 }
 0x56e   :  { %v1987_v16 = vsel %vm94_vm1, %v1983_v4, %v1985_v17  ;;  %1995 = vst.msk [vmem:[#allocation2 + $0x18] sm:$0x3f] %vm309_vm4, %v1985_v17  ;;  %v7534_v17 = vld [vmem:[%s10680_s1 + $0x1a0] ss:$20 sps:$4 sm:$0xff]  }
 0x56f   :  { %1994 = vst [vmem:[#allocation2 + $0x10] sm:$0x3f] %v1987_v16  ;;  %v7537_v16 = vld [vmem:[%s10680_s1 + $0x1bc] ss:$20 sps:$4 sm:$0xff]  }
 0x570   :  { %v1997_v19 = vld [vmem:[#allocation2 + $0x8] sm:$0xff] }
 0x571   :  { %v2463_v29 = vld [vmem:[#allocation2 + $0x8] sm:$0xfc]  ;;  %v1996_v36 = vld [vmem:[#allocation2] sm:$0xff] }
 0x572   :  { %v2462_v43 = vld [vmem:[#allocation2] sm:$0xfc] }
 0x575   :  { %v1999_v27 = vld [vmem:[#allocation2 + $0x18] sm:$0xf] }
 0x576   :  { %v2465_v30 = vld [vmem:[#allocation2 + $0x18] sm:$0x3f]  ;;  %v2001_v32 = vpack.c.bf16 %v1999_v27, %v1997_v19  ;;  %v1998_v37 = vld [vmem:[#allocation2 + $0x10] sm:$0xf] }
 0x577   :  { %v2467_v40 = vpack.c.bf16 %v2465_v30, %v2463_v29  ;;  %v9272_v42 = vpack.c.bf16 %v1998_v37, %v1996_v36  ;;  %v2464_v8 = vld [vmem:[#allocation2 + $0x10] sm:$0x3f]  ;;  %v7535_v19 = vld [vmem:[%s10680_s1 + $0x1b8] ss:$20 sps:$4 sm:$0xff]   ;;  %v7543_v36 = vld [vmem:[%s10680_s1 + $0x208] ss:$20 sps:$4 sm:$0xff]  }
 0x578   :  { %6444 = vmatprep.mubr.msk.bf16.mxu1 %vm94_vm1, %v2001_v32  ;;  %6445 = vmatprep.mubr.msk.bf16.mxu0 %vm94_vm1, %v2001_v32  ;;  %v2466_v12 = vpack.c.bf16 %v2464_v8, %v2462_v43  ;;  %v7541_v27 = vld [vmem:[%s10680_s1 + $0x1e4] ss:$20 sps:$4 sm:$0xff]   ;;  %v7539_v29 = vld [vmem:[%s10680_s1 + $0x1e0] ss:$20 sps:$4 sm:$0xff]  }
 0x579   :  { %v9276_v45 = vrot.slane %v2467_v40, 1  ;;  %2358 = vmatmul.mubr.bf16.vlgmr.msra.gmra.mrb[8].mxu1 %v9272_v42  ;;  %2401 = vmatmul.mubr.bf16.vlgmr.msra.gmra.mrb[12].mxu0 %v9272_v42  ;;  %v7542_v30 = vld [vmem:[%s10680_s1 + $0x1f0] ss:$20 sps:$4 sm:$0xff]   ;;  %v7546_v37 = vld [vmem:[%s10680_s1 + $0x218] ss:$20 sps:$4 sm:$0xff]  }
 0x57a   :  { %2412 = vmatpush1.bf16.msra.mxu1 %v7494_v38  ;;  %2840 = vmatpush1.bf16.msra.mxu0 %v7491_v25  ;;  %v9379_v4 = vrot.slane %v2466_v12, 1  ;;  %v7538_v25 = vld [vmem:[%s10680_s1 + $0x1c8] ss:$20 sps:$4 sm:$0xff]   ;;  %v7547_v40 = vld [vmem:[%s10680_s1 + $0x230] ss:$20 sps:$4 sm:$0xff]  }
 0x57b   :  { %6446 = vmatprep.mubr.msk.bf16.mxu1 %vm94_vm1, %v2001_v32  ;;  %6558 = vmatprep.mubr.msk.bf16.mxu0 %vm94_vm1, %v9276_v45  ;;  %v7545_v32 = vld [vmem:[%s10680_s1 + $0x20c] ss:$20 sps:$4 sm:$0xff]   ;;  %v7549_v38 = vld [vmem:[%s10680_s1 + $0x234] ss:$20 sps:$4 sm:$0xff]   ;;  %v7580_v8 = vld [vmem:[%s10680_s1 + $0x350] ss:$20 sps:$4 sm:$0xff]  }
 0x57c   :  { %2413 = vmatprep.subr.bf16.mxu1 %v8232_v26  ;;  %2841 = vmatprep.subr.bf16.mxu0 %v7497_v20  ;;  %v7551_v20 = vld [vmem:[%s10680_s1 + $0x258] ss:$20 sps:$4 sm:$0xff]   ;;  %v7583_v43 = vld [vmem:[%s10680_s1 + $0x370] ss:$20 sps:$4 sm:$0xff]  }
 0x57d   :  { %v7591_v12 = vld [vmem:[%s10680_s1 + $0x39c] ss:$20 sps:$4 sm:$0xff]  }
 0x57e   :  { %2414 = vmatpush1.bf16.msra.mxu1 %v7498_v51  ;;  %2842 = vmatpush1.bf16.msra.mxu0 %v7495_v50  ;;  %v7554_v50 = vld [vmem:[%s10680_s1 + $0x268] ss:$20 sps:$4 sm:$0xff]   ;;  %v7557_v51 = vld [vmem:[%s10680_s1 + $0x284] ss:$20 sps:$4 sm:$0xff]  }
 0x57f   :  { %2415 = vmatprep.subr.bf16.mxu1 %v8232_v26  ;;  %2843 = vmatprep.subr.bf16.mxu0 %v7501_v52  ;;  %v7555_v52 = vld [vmem:[%s10680_s1 + $0x280] ss:$20 sps:$4 sm:$0xff]  }
 0x582   :  { %2416 = vmatpush1.bf16.msra.mxu1 %v7502_v53  ;;  %2844 = vmatpush1.bf16.msra.mxu0 %v7499_v61  ;;  %v7558_v61 = vld [vmem:[%s10680_s1 + $0x290] ss:$20 sps:$4 sm:$0xff]   ;;  %v7561_v53 = vld [vmem:[%s10680_s1 + $0x2ac] ss:$20 sps:$4 sm:$0xff]  }
 0x583   :  { %2417 = vmatprep.subr.bf16.mxu1 %v8232_v26  ;;  %2845 = vmatprep.subr.bf16.mxu0 %v7505_v54  ;;  %v7559_v54 = vld [vmem:[%s10680_s1 + $0x2a8] ss:$20 sps:$4 sm:$0xff]  }
 0x586   :  { %2418 = vmatpush1.bf16.msra.mxu1 %v7506_v56  ;;  %2846 = vmatpush1.bf16.msra.mxu0 %v7503_v55  ;;  %v7562_v55 = vld [vmem:[%s10680_s1 + $0x2b8] ss:$20 sps:$4 sm:$0xff]   ;;  %v7565_v56 = vld [vmem:[%s10680_s1 + $0x2d4] ss:$20 sps:$4 sm:$0xff]  }
 0x587   :  { %2419 = vmatprep.subr.bf16.mxu1 %v8232_v26  ;;  %2847 = vmatprep.subr.bf16.mxu0 %v7509_v57  ;;  %v7563_v57 = vld [vmem:[%s10680_s1 + $0x2d0] ss:$20 sps:$4 sm:$0xff]  }
 0x58a   :  { %2420 = vmatpush1.bf16.msra.mxu1 %v7510_v2  ;;  %2848 = vmatpush1.bf16.msra.mxu0 %v7507_v34  ;;  %v7566_v34 = vld [vmem:[%s10680_s1 + $0x2e0] ss:$20 sps:$4 sm:$0xff]   ;;  %v7569_v2 = vld [vmem:[%s10680_s1 + $0x2fc] ss:$20 sps:$4 sm:$0xff]  }
 0x58b   :  { %2421 = vmatprep.subr.bf16.mxu1 %v8232_v26  ;;  %2849 = vmatprep.subr.bf16.mxu0 %v7513_v59  ;;  %v7567_v59 = vld [vmem:[%s10680_s1 + $0x2f8] ss:$20 sps:$4 sm:$0xff]  }
 0x58e   :  { %2422 = vmatpush1.bf16.msra.mxu1 %v7514_v62  ;;  %2850 = vmatpush1.bf16.msra.mxu0 %v7511_v60  ;;  %v2936_v60 = vld [vmem:[#allocation2 + $0x18] sm:$0xff] }
 0x58f   :  { %2423 = vmatprep.subr.bf16.mxu1 %v8232_v26  ;;  %2851 = vmatprep.subr.bf16.mxu0 %v7517_v63  ;;  %v7570_v62 = vld [vmem:[%s10680_s1 + $0x308] ss:$20 sps:$4 sm:$0xff]   ;;  %v7573_v63 = vld [vmem:[%s10680_s1 + $0x324] ss:$20 sps:$4 sm:$0xff]  }
 0x592   :  { %2424 = vmatpush1.bf16.msra.mxu1 %v7518_v1  ;;  %2852 = vmatpush1.bf16.msra.mxu0 %v7515_v22  ;;  %v7576_v22 = vld [vmem:[%s10680_s1 + $0x32c] ss:$20 sps:$4 sm:$0xff]  }
 0x593   :  { %2425 = vmatprep.subr.bf16.mxu1 %v8232_v26  ;;  %2853 = vmatprep.subr.bf16.mxu0 %v7521_v14  ;;  %v2934_v1 = vld [vmem:[#allocation2 + $0x8] sm:$0xf0] }
 0x594   :  { %v2938_v14 = vpack.c.bf16 %v2936_v60, %v2934_v1  ;;  %v7633_v1 = vld [vmem:[%s10680_s1 + $0x380] ss:$20 sps:$4 sm:$0xff]  }
 0x596   :  { %2426 = vmatpush1.bf16.msra.mxu1 %v7522_v33  ;;  %2854 = vmatpush1.bf16.msra.mxu0 %v7519_v5  ;;  %v7571_v5 = vld [vmem:[%s10680_s1 + $0x320] ss:$20 sps:$4 sm:$0xff]   ;;  %v7574_v33 = vld [vmem:[%s10680_s1 + $0x328] ss:$20 sps:$4 sm:$0xff]  }
 0x597   :  { %2427 = vmatprep.subr.bf16.mxu1 %v8232_v26  ;;  %2855 = vmatprep.subr.bf16.mxu0 %v7525_v35  ;;  %v7579_v35 = vld [vmem:[%s10680_s1 + $0x34c] ss:$20 sps:$4 sm:$0xff]  }
 0x59a   :  { %2428 = vmatpush1.bf16.msra.mxu1 %v7526_v7  ;;  %2856 = vmatpush1.bf16.msra.mxu0 %v7523_v6  ;;  %v9497_v6 = vrot.slane %v2938_v14, 2  ;;  %v7582_v7 = vld [vmem:[%s10680_s1 + $0x354] ss:$20 sps:$4 sm:$0xff]  }
 0x59b   :  { %2429 = vmatprep.subr.bf16.mxu1 %v8232_v26  ;;  %2857 = vmatprep.subr.bf16.mxu0 %v7529_v23  ;;  %v7577_v23 = vld [vmem:[%s10680_s1 + $0x348] ss:$20 sps:$4 sm:$0xff]  }
 0x59c   :  { %v7634_v14 = vld [vmem:[%s10680_s1 + $0x3a8] ss:$20 sps:$4 sm:$0xff]  }
 0x59e   :  { %2430 = vmatpush1.bf16.msra.mxu1 %v7530_v11  ;;  %2858 = vmatpush1.bf16.msra.mxu0 %v7527_v13  ;;  %v7585_v13 = vld [vmem:[%s10680_s1 + $0x374] ss:$20 sps:$4 sm:$0xff]   ;;  %v7588_v11 = vld [vmem:[%s10680_s1 + $0x37c] ss:$20 sps:$4 sm:$0xff]  }
 0x59f   :  { %2796 = vmatprep.subr.bf16.mxu1 %v7533_v44  ;;  %2882 = vmatprep.subr.bf16.mxu0 %v8232_v26  ;;  %v7586_v44 = vld [vmem:[%s10680_s1 + $0x378] ss:$20 sps:$4 sm:$0xff]  }
 0x5a1   :  { %2444 = vmatmul.mubr.bf16.vlgmr.msra.gmra.mrb[12].mxu1 %v9272_v42  ;;  %2872 = vmatmul.mubr.bf16.vlgmr.msra.gmra.mrb[12].mxu0 %v9379_v4  ;;  %v7550_v42 = vld [vmem:[%s10680_s1 + $0x240] ss:$20 sps:$4 sm:$0xff]  }
 0x5a2   :  { %2797 = vmatpush1.bf16.msra.mxu1 %v7531_v15  ;;  %6557 = vmatprep.mubr.msk.bf16.mxu1 %vm94_vm1, %v9276_v45  ;;  %v7594_v15 = vld [vmem:[%s10680_s1 + $0x3a4] ss:$20 sps:$4 sm:$0xff]  }
 0x5a3   :  { %2883 = vmatpush1.bf16.msra.mxu0 %v7534_v17  ;;  %6559 = vmatprep.mubr.msk.bf16.mxu0 %vm94_vm1, %v9276_v45  ;;  %v7553_v45 = vld [vmem:[%s10680_s1 + $0x25c] ss:$20 sps:$4 sm:$0xff]   ;;  %v7592_v17 = vld [vmem:[%s10680_s1 + $0x3a0] ss:$20 sps:$4 sm:$0xff]  }
 0x5a4   :  { %2798 = vmatprep.subr.bf16.mxu1 %v7537_v16  ;;  %2884 = vmatprep.subr.bf16.mxu0 %v8232_v26  ;;  %v7597_v16 = vld [vmem:[%s10680_s1 + $0x3c4] ss:$20 sps:$4 sm:$0xff]  }
 0x5a6   :  { %2799 = vmatpush1.bf16.msra.mxu1 %v7535_v19  ;;  %v7600_v19 = vld [vmem:[%s10680_s1 + $0x3cc] ss:$20 sps:$4 sm:$0xff]  }
 0x5a7   :  { %2885 = vmatpush1.bf16.msra.mxu0 %v7538_v25  ;;  %2800 = vmatprep.subr.bf16.mxu1 %v7541_v27  ;;  %v7595_v25 = vld [vmem:[%s10680_s1 + $0x3c0] ss:$20 sps:$4 sm:$0xff]   ;;  %v7598_v27 = vld [vmem:[%s10680_s1 + $0x3c8] ss:$20 sps:$4 sm:$0xff]  }
 0x5a8   :  { %2886 = vmatprep.subr.bf16.mxu0 %v8232_v26 }
 0x5aa   :  { %2801 = vmatpush1.bf16.msra.mxu1 %v7539_v29  ;;  %v7603_v29 = vld [vmem:[%s10680_s1 + $0x3ec] ss:$20 sps:$4 sm:$0xff]  }
 0x5ab   :  { %2887 = vmatpush1.bf16.msra.mxu0 %v7542_v30  ;;  %2802 = vmatprep.subr.bf16.mxu1 %v7545_v32  ;;  %v7606_v30 = vld [vmem:[%s10680_s1 + $0x3f4] ss:$20 sps:$4 sm:$0xff]  }
 0x5ac   :  { %2888 = vmatprep.subr.bf16.mxu0 %v8232_v26  ;;  %v7601_v32 = vld [vmem:[%s10680_s1 + $0x3e8] ss:$20 sps:$4 sm:$0xff]  }
 0x5ae   :  { %2803 = vmatpush1.bf16.msra.mxu1 %v7543_v36  ;;  %v7604_v36 = vld [vmem:[%s10680_s1 + $0x3f0] ss:$20 sps:$4 sm:$0xff]  }
 0x5af   :  { %2889 = vmatpush1.bf16.msra.mxu0 %v7546_v37  ;;  %2804 = vmatprep.subr.bf16.mxu1 %v7549_v38  ;;  %v7609_v37 = vld [vmem:[%s10680_s1 + $0x414] ss:$20 sps:$4 sm:$0xff]   ;;  %v7612_v38 = vld [vmem:[%s10680_s1 + $0x41c] ss:$20 sps:$4 sm:$0xff]  }
 0x5b0   :  { %2890 = vmatprep.subr.bf16.mxu0 %v8232_v26 }
 0x5b2   :  { %2805 = vmatpush1.bf16.msra.mxu1 %v7547_v40  ;;  %v7607_v40 = vld [vmem:[%s10680_s1 + $0x410] ss:$20 sps:$4 sm:$0xff]  }
 0x5b3   :  { %2891 = vmatpush1.bf16.msra.mxu0 %v7550_v42  ;;  %2806 = vmatprep.subr.bf16.mxu1 %v7553_v45  ;;  %v7610_v42 = vld [vmem:[%s10680_s1 + $0x418] ss:$20 sps:$4 sm:$0xff]   ;;  %v7615_v45 = vld [vmem:[%s10680_s1 + $0x43c] ss:$20 sps:$4 sm:$0xff]  }
 0x5b4   :  { %2892 = vmatprep.subr.bf16.mxu0 %v8232_v26 }
 0x5b6   :  { %2807 = vmatpush1.bf16.msra.mxu1 %v7551_v20  ;;  %v7618_v20 = vld [vmem:[%s10680_s1 + $0x444] ss:$20 sps:$4 sm:$0xff]  }
 0x5b7   :  { %2893 = vmatpush1.bf16.msra.mxu0 %v7554_v50  ;;  %2808 = vmatprep.subr.bf16.mxu1 %v7557_v51  ;;  %v7613_v50 = vld [vmem:[%s10680_s1 + $0x438] ss:$20 sps:$4 sm:$0xff]   ;;  %v7616_v51 = vld [vmem:[%s10680_s1 + $0x440] ss:$20 sps:$4 sm:$0xff]  }
 0x5b8   :  { %2894 = vmatprep.subr.bf16.mxu0 %v8232_v26 }
 0x5ba   :  { %2809 = vmatpush1.bf16.msra.mxu1 %v7555_v52  ;;  %v7621_v52 = vld [vmem:[%s10680_s1 + $0x464] ss:$20 sps:$4 sm:$0xff]  }
 0x5bb   :  { %2895 = vmatpush1.bf16.msra.mxu0 %v7558_v61  ;;  %2810 = vmatprep.subr.bf16.mxu1 %v7561_v53  ;;  %v7624_v61 = vld [vmem:[%s10680_s1 + $0x46c] ss:$20 sps:$4 sm:$0xff]  }
 0x5bc   :  { %2896 = vmatprep.subr.bf16.mxu0 %v8232_v26  ;;  %v7619_v53 = vld [vmem:[%s10680_s1 + $0x460] ss:$20 sps:$4 sm:$0xff]  }
 0x5be   :  { %2811 = vmatpush1.bf16.msra.mxu1 %v7559_v54  ;;  %v7622_v54 = vld [vmem:[%s10680_s1 + $0x468] ss:$20 sps:$4 sm:$0xff]  }
 0x5bf   :  { %2897 = vmatpush1.bf16.msra.mxu0 %v7562_v55  ;;  %2812 = vmatprep.subr.bf16.mxu1 %v7565_v56  ;;  %v7627_v55 = vld [vmem:[%s10680_s1 + $0x48c] ss:$20 sps:$4 sm:$0xff]   ;;  %v7630_v56 = vld [vmem:[%s10680_s1 + $0x494] ss:$20 sps:$4 sm:$0xff]  }
 0x5c0   :  { %2898 = vmatprep.subr.bf16.mxu0 %v8232_v26 }
 0x5c2   :  { %2813 = vmatpush1.bf16.msra.mxu1 %v7563_v57  ;;  %v2935_v57 = vld [vmem:[#allocation2 + $0x10] sm:$0xff] }
 0x5c3   :  { %2899 = vmatpush1.bf16.msra.mxu0 %v7566_v34  ;;  %2814 = vmatprep.subr.bf16.mxu1 %v7569_v2  ;;  %v7625_v34 = vld [vmem:[%s10680_s1 + $0x488] ss:$20 sps:$4 sm:$0xff]   ;;  %v2933_v2 = vld [vmem:[#allocation2] sm:$0xf0] }
 0x5c4   :  { %2900 = vmatprep.subr.bf16.mxu0 %v8232_v26  ;;  %v2937_v60 = vpack.c.bf16 %v2935_v57, %v2933_v2 }
 0x5c6   :  { %2815 = vmatpush1.bf16.msra.mxu1 %v7567_v59  ;;  %v7628_v59 = vld [vmem:[%s10680_s1 + $0x490] ss:$20 sps:$4 sm:$0xff]  }
 0x5c7   :  { %2901 = vmatpush1.bf16.msra.mxu0 %v7570_v62  ;;  %3267 = vmatprep.subr.bf16.mxu1 %v7573_v63  ;;  %v7631_v62 = vld [vmem:[%s10680_s1 + $0x330] ss:$20 sps:$4 sm:$0xff]   ;;  %v3001_v63 = vrot.slane %v2937_v60, 2 }
 0x5c8   :  { %3310 = vmatprep.subr.bf16.mxu0 %v7576_v22  ;;  %v7632_v22 = vld [vmem:[%s10680_s1 + $0x358] ss:$20 sps:$4 sm:$0xff]  }
 0x5c9   :  { %2829 = vmatmul.mubr.bf16.vlgmr.msra.gmra.mrb[8].mxu1 %v9379_v4 }
 0x5ca   :  { %2915 = vmatmul.mubr.bf16.vlgmr.msra.gmra.mrb[16].mxu0 %v9379_v4  ;;  %3268 = vmatpush1.bf16.msra.mxu1 %v7571_v5  ;;  %v7589_v4 = vld [vmem:[%s10680_s1 + $0x398] ss:$20 sps:$4 sm:$0xff]   ;;  %v7635_v5 = vld [vmem:[%s10680_s1 + $0x3d0] ss:$20 sps:$4 sm:$0xff]  }
 0x5cb   :  { %6670 = vmatprep.mubr.msk.bf16.mxu1 %vm94_vm1, %v9497_v6  ;;  %3311 = vmatpush1.bf16.msra.mxu0 %v7574_v33  ;;  %v7636_v33 = vld [vmem:[%s10680_s1 + $0x3f8] ss:$20 sps:$4 sm:$0xff]  }
 0x5cc   :  { %6671 = vmatprep.mubr.msk.bf16.mxu0 %vm94_vm1, %v9497_v6  ;;  %3269 = vmatprep.subr.bf16.mxu1 %v7579_v35  ;;  %v7637_v35 = vld [vmem:[%s10680_s1 + $0x420] ss:$20 sps:$4 sm:$0xff]  }
 0x5cd   :  { %3312 = vmatprep.subr.bf16.mxu0 %v7582_v7  ;;  %v7639_v7 = vld [vmem:[%s10680_s1 + $0x470] ss:$20 sps:$4 sm:$0xff]  }
 0x5ce   :  { %3270 = vmatpush1.bf16.msra.mxu1 %v7577_v23  ;;  %v7640_v23 = vld [vmem:[%s10680_s1 + $0x498] ss:$20 sps:$4 sm:$0xff]  }
 0x5cf   :  { %3313 = vmatpush1.bf16.msra.mxu0 %v7580_v8  ;;  %3271 = vmatprep.subr.bf16.mxu1 %v7585_v13 }
 0x5d0   :  { %3314 = vmatprep.subr.bf16.mxu0 %v7588_v11 }
 0x5d2   :  { %3272 = vmatpush1.bf16.msra.mxu1 %v7583_v43 }
 0x5d3   :  { %3315 = vmatpush1.bf16.msra.mxu0 %v7586_v44  ;;  %3273 = vmatprep.subr.bf16.mxu1 %v7591_v12  ;;  %v8185_v44 = vld [vmem:[%s10679_s0 + $0x20] sm:$0xff] }
 0x5d4   :  { %3316 = vmatprep.subr.bf16.mxu0 %v7594_v15 }
 0x5d6   :  { %3274 = vmatpush1.bf16.msra.mxu1 %v7589_v4  ;;  %v8186_v4 = vld [vmem:[%s10679_s0 + $0x48] sm:$0xf] }
 0x5d7   :  { %3317 = vmatpush1.bf16.msra.mxu0 %v7592_v17  ;;  %3275 = vmatprep.subr.bf16.mxu1 %v7597_v16 }
 0x5d8   :  { %3318 = vmatprep.subr.bf16.mxu0 %v7600_v19 }
 0x5da   :  { %3276 = vmatpush1.bf16.msra.mxu1 %v7595_v25 }
 0x5db   :  { %3319 = vmatpush1.bf16.msra.mxu0 %v7598_v27  ;;  %3277 = vmatprep.subr.bf16.mxu1 %v7603_v29 }
 0x5dc   :  { %3320 = vmatprep.subr.bf16.mxu0 %v7606_v30 }
 0x5de   :  { %3278 = vmatpush1.bf16.msra.mxu1 %v7601_v32 }
 0x5df   :  { %3321 = vmatpush1.bf16.msra.mxu0 %v7604_v36  ;;  %3279 = vmatprep.subr.bf16.mxu1 %v7609_v37  ;;  %v8187_v37 = vld [vmem:[%s10679_s0 + $0x10] sm:$0xff] }
 0x5e0   :  { %3322 = vmatprep.subr.bf16.mxu0 %v7612_v38 }
 0x5e2   :  { %3280 = vmatpush1.bf16.msra.mxu1 %v7607_v40 }
 0x5e3   :  { %3323 = vmatpush1.bf16.msra.mxu0 %v7610_v42  ;;  %3281 = vmatprep.subr.bf16.mxu1 %v7615_v45  ;;  %v8188_v45 = vld [vmem:[%s10679_s0 + $0x18] sm:$0xff] }
 0x5e4   :  { %3324 = vmatprep.subr.bf16.mxu0 %v7618_v20 }
 0x5e6   :  { %3282 = vmatpush1.bf16.msra.mxu1 %v7613_v50 }
 0x5e7   :  { %3325 = vmatpush1.bf16.msra.mxu0 %v7616_v51  ;;  %3283 = vmatprep.subr.bf16.mxu1 %v7621_v52 }
 0x5e8   :  { %3326 = vmatprep.subr.bf16.mxu0 %v7624_v61  ;;  %v8189_v61 = vld [vmem:[%s10679_s0 + $0x38] sm:$0xf] }
 0x5ea   :  { %3284 = vmatpush1.bf16.msra.mxu1 %v7619_v53 }
 0x5eb   :  { %3327 = vmatpush1.bf16.msra.mxu0 %v7622_v54  ;;  %3285 = vmatprep.subr.bf16.mxu1 %v7627_v55  ;;  %v8190_v54 = vld [vmem:[%s10679_s0 + $0x40] sm:$0xf] }
 0x5ec   :  { %3328 = vmatprep.subr.bf16.mxu0 %v7630_v56 }
 0x5ee   :  { %3286 = vmatpush1.bf16.msra.mxu1 %v7625_v34 }
 0x5ef   :  { %3329 = vmatpush1.bf16.msra.mxu0 %v7628_v59  ;;  %3353 = vmatprep.subr.bf16.mxu1 %v8232_v26 }
 0x5f1   :  { %3300 = vmatmul.mubr.bf16.vlgmr.msra.gmra.mrb[8].mxu1 %v3001_v63 }
 0x5f2   :  { %3343 = vmatmul.mubr.bf16.vlgmr.msra.gmra.mrb[12].mxu0 %v3001_v63  ;;  %3354 = vmatpush1.bf16.msra.mxu1 %v7631_v62 }
 0x5f3   :  { %6672 = vmatprep.mubr.msk.bf16.mxu1 %vm94_vm1, %v9497_v6  ;;  %3355 = vmatprep.subr.bf16.mxu1 %v8232_v26  ;;  %v7638_v6 = vld [vmem:[%s10680_s1 + $0x448] ss:$20 sps:$4 sm:$0xff]  }
 0x5f6   :  { %3356 = vmatpush1.bf16.msra.mxu1 %v7632_v22 }
 0x5f7   :  { %3357 = vmatprep.subr.bf16.mxu1 %v8232_v26 }
 0x5fa   :  { %3358 = vmatpush1.bf16.msra.mxu1 %v7633_v1 }
 0x5fb   :  { %3359 = vmatprep.subr.bf16.mxu1 %v8232_v26 }
 0x5fe   :  { %3360 = vmatpush1.bf16.msra.mxu1 %v7634_v14  ;;  %v8191_v14 = vld [vmem:[%s10679_s0 + $0x8] sm:$0xff] }
 0x5ff   :  { %3361 = vmatprep.subr.bf16.mxu1 %v8232_v26 }
 0x602   :  { %3362 = vmatpush1.bf16.msra.mxu1 %v7635_v5 }
 0x603   :  { %3363 = vmatprep.subr.bf16.mxu1 %v8232_v26 }
 0x606   :  { %3364 = vmatpush1.bf16.msra.mxu1 %v7636_v33  ;;  %v3415_v33 = vpop.permute.xlu1 %3414 }
 0x607   :  { %3365 = vmatprep.subr.bf16.mxu1 %v8232_v26 }
 0x60a   :  { %3366 = vmatpush1.bf16.msra.mxu1 %v7637_v35  ;;  %v8192_v35 = vld [vmem:[%s10679_s0] sm:$0xff] }
 0x60b   :  { %3367 = vmatprep.subr.bf16.mxu1 %v8232_v26 }
 0x60e   :  { %3368 = vmatpush1.bf16.msra.mxu1 %v7638_v6 }
 0x60f   :  { %3369 = vmatprep.subr.bf16.mxu1 %v8232_v26 }
 0x612   :  { %3370 = vmatpush1.bf16.msra.mxu1 %v7639_v7  ;;  %v3413_v7 = vpop.permute.xlu0 %3412 }
 0x613   :  { %3371 = vmatprep.subr.bf16.mxu1 %v8232_v26 }
 0x616   :  { %3372 = vmatpush1.bf16.msra.mxu1 %v7640_v23  ;;  %v3420_v23 = vsel %vm1755_vm5, %v3413_v7, %v3415_v33  ;;  %v3455_v7 = vmul.f32 %v9083_v3, %v9059_v21 }
 0x619   :  { %3386 = vmatmul.mubr.bf16.vlgmr.msra.gmra.mrb[16].mxu1 %v3001_v63 }
 0x674   :  { %v2445_v8 = vpop.f32.mrb[12].mxu1 }
 0x675   :  { %v2447_v13 = vpop.f32.mrb[13].mxu1  ;;  %v2456_v12 = vadd.f32 %v8185_v44, %v2445_v8  ;;  %v8193_v44 = vld [vmem:[%s10679_s0 + $0x30] sm:$0xf] }
 0x676   :  { %v2448_v11 = vpop.f32.mrb[14].mxu1 }
 0x677   :  { %v2450_v43 = vpop.f32.mrb[15].mxu1  ;;  %v2461_v17 = vadd.f32 %v8186_v4, %v2448_v11  ;;  %v8194_v4 = vld [vmem:[%s10679_s0 + $0x28] sm:$0xf] }
 0x69d   :  { %v2916_v15 = vpop.f32.mrb[16].mxu0 }
 0x69e   :  { %v2927_v16 = vadd.f32 %v2916_v15, %v2456_v12  ;;  %v2918_v19 = vpop.f32.mrb[17].mxu0  ;;  %v3419_v15 = vpop.permute.xlu1 %3418 }
 0x69f   :  { %v2919_v25 = vpop.f32.mrb[18].mxu0 }
 0x6a0   :  { %v2932_v27 = vadd.f32 %v2919_v25, %v2461_v17  ;;  %v2921_v29 = vpop.f32.mrb[19].mxu0 }
 0x6c4   :  { %v3301_v30 = vpop.f32.mrb[8].mxu1 }
 0x6c5   :  { %v3344_v32 = vpop.f32.mrb[12].mxu0  ;;  %v3303_v36 = vpop.f32.mrb[9].mxu1  ;;  %v7151_v6 = vadd.f32 %v8192_v35, %v3301_v30 }
 0x6c6   :  { %v9660_v38 = vadd.f32 %v8187_v37, %v3344_v32  ;;  %v3346_v40 = vpop.f32.mrb[13].mxu0  ;;  %v3305_v42 = vpop.f32.mrb[10].mxu1  ;;  %v7152_v5 = vadd.f32 %v8191_v14, %v3303_v36 }
 0x6c7   :  { %v9665_v20 = vadd.f32 %v8188_v45, %v3346_v40  ;;  %v3348_v50 = vpop.f32.mrb[14].mxu0  ;;  %v3307_v51 = vpop.f32.mrb[11].mxu1  ;;  %v3426_v13 = vadd.f32 %v7151_v6, %v3420_v23  ;;  %v7153_v17 = vadd.f32 %v8194_v4, %v3305_v42  ;;  %v3454_v6 = vmul.f32 %v9081_v0, %v9055_v18 }
 0x6c8   :  { %8039 = vtanh.f32 %v9660_v38  ;;  %v3350_v52 = vpop.f32.mrb[15].mxu0  ;;  %v9672_v53 = vadd.f32 %v8189_v61, %v3348_v50  ;;  %v3427_v8 = vadd.f32 %v7152_v5, %v3415_v33  ;;  %v7154_v12 = vadd.f32 %v8193_v44, %v3307_v51 }
 0x6c9   :  { %8041 = vtanh.f32 %v9665_v20  ;;  %v9677_v55 = vadd.f32 %v8190_v54, %v3350_v52  ;;  %v6673_v43 = vmul.f32 -1.442695, %v3426_v13  ;;  %v3458_v23 = vadd.f32 %v7152_v5, %v3454_v6  ;;  %v7643_v6 = vld [vmem:[%s10680_s1 + $0x4] ss:$20 sps:$4 sm:$0xff]  }
 0x6ca   :  { %8043 = vtanh.f32 %v9672_v53  ;;  %v6674_v11 = vmul.f32 -1.442695, %v3427_v8  ;;  %v3429_v25 = vadd.f32 %v7154_v12, %v3419_v15  ;;  %v3459_v8 = vadd.f32 %v9660_v38, %v3455_v7  ;;  %v7644_v7 = vld [vmem:[%s10680_s1 + $0x8] ss:$20 sps:$4 sm:$0xff]   ;;  %3971 = vmatprep.subr.bf16.mxu0 %v7643_v6 }
 0x6cb   :  { %8045 = vtanh.f32 %v9677_v55  ;;  %v6677_v13 = vmul.f32 -1.442695, %v3458_v23  ;;  %v3457_v44 = vmul.f32 %v9098_v10, %v9070_v31  ;;  %v7646_v23 = vld [vmem:[%s10680_s1 + $0xc] ss:$20 sps:$4 sm:$0xff]  }
 0x6cc   :  { %8047 = vpow2.f32 %v6674_v11  ;;  %v6676_v29 = vmul.f32 -1.442695, %v3429_v25  ;;  %v6678_v11 = vmul.f32 -1.442695, %v3459_v8  ;;  %v7649_v8 = vld [vmem:[%s10680_s1 + $0x2c] ss:$20 sps:$4 sm:$0xff]   ;;  %4014 = vmatprep.subr.bf16.mxu1 %v7646_v23 }
 0x6cd   :  { %8049 = vpow2.f32 %v6673_v43  ;;  %v3456_v43 = vmul.f32 %v9096_v9, %v9065_v28  ;;  %v3461_v4 = vadd.f32 %v9672_v53, %v3457_v44  ;;  %4015 = vmatpush1.bf16.msra.mxu1 %v7644_v7  ;;  %v7655_v44 = vld [vmem:[%s10680_s1 + $0x54] ss:$20 sps:$4 sm:$0xff]  }
 0x6ce   :  { %8051 = vpow2.f32 %v6676_v29 }
 0x6d2   :  { %v8040_v56 = vpop.eup %8039 }
 0x6d3   :  { %v8042_v57 = vpop.eup %8041  ;;  %3498 = vrot.lane.b32.xlu0 %v8040_v56, %s8229_s28 }
 0x6d4   :  { %3500 = vrot.lane.b32.xlu1 %v8042_v57, %s8229_s28  ;;  %v8044_v34 = vpop.eup %8043 }
 0x6d5   :  { %v8046_v2 = vpop.eup %8045 }
 0x6d6   :  { %v8048_v32 = vpop.eup %8047 }
 0x6d7   :  { %3502 = vrot.lane.b32.xlu0 %v8044_v34, %s8229_s28  ;;  %v8050_v36 = vpop.eup %8049  ;;  %v3443_v37 = vadd.f32 1.0, %v8048_v32 }
 0x6d8   :  { %3504 = vrot.lane.b32.xlu1 %v8046_v2, %s8229_s28  ;;  %v3442_v40 = vadd.f32 1.0, %v8050_v36  ;;  %v8052_v45 = vpop.eup %8051 }
 0x6d9   :  { %v3445_v51 = vadd.f32 1.0, %v8052_v45 }
 0x6ec   :  { %v3387_v59 = vpop.f32.mrb[16].mxu1 }
 0x6ed   :  { %v9685_v60 = vadd.f32 %v3387_v59, %v2927_v16  ;;  %v3389_v62 = vpop.f32.mrb[17].mxu1  ;;  %v3417_v16 = vpop.permute.xlu0 %3416 }
 0x6ee   :  { %v3390_v63 = vpop.f32.mrb[18].mxu1  ;;  %v3421_v19 = vsel %vm1755_vm5, %v3417_v16, %v3419_v15  ;;  %v3460_v15 = vadd.f32 %v7154_v12, %v3456_v43  ;;  %v6680_v16 = vmul.f32 -1.442695, %v3461_v4  ;;  %v7650_v43 = vld [vmem:[%s10680_s1 + $0x30] ss:$20 sps:$4 sm:$0xff]  }
 0x6ef   :  { %v9687_v22 = vadd.f32 %v3390_v63, %v2932_v27  ;;  %v3392_v1 = vpop.f32.mrb[19].mxu1  ;;  %v3428_v27 = vadd.f32 %v7153_v17, %v3421_v19  ;;  %v7653_v4 = vld [vmem:[%s10680_s1 + $0x50] ss:$20 sps:$4 sm:$0xff]  }
 0x6f0   :  { %v6679_v17 = vmul.f32 -1.442695, %v3460_v15  ;;  %v7658_v15 = vld [vmem:[%s10680_s1 + $0x5c] ss:$20 sps:$4 sm:$0xff]  }
 0x6f1   :  { %v6675_v30 = vmul.f32 -1.442695, %v3428_v27 }
 0x6f3   :  { %8053 = vpow2.f32 %v6675_v30 }
 0x6f4   :  { %8055 = vrcp.f32 %v3443_v37 }
 0x6f5   :  { %8057 = vrcp.f32 %v3442_v40 }
 0x6f6   :  { %8059 = vrcp.f32 %v3445_v51 }
 0x6fd   :  { %v8054_v50 = vpop.eup %8053 }
 0x6fe   :  { %v3444_v42 = vadd.f32 1.0, %v8054_v50  ;;  %v8056_v61 = vpop.eup %8055 }
 0x6ff   :  { %v8058_v56 = vpop.eup %8057 }
 0x700   :  { %8061 = vrcp.f32 %v3444_v42  ;;  %v8060_v62 = vpop.eup %8059 }
 0x701   :  { %8063 = vpow2.f32 %v6677_v13  ;;  %v7652_v13 = vld [vmem:[%s10680_s1 + $0x34] ss:$20 sps:$4 sm:$0xff]  }
 0x702   :  { %8065 = vpow2.f32 %v6678_v11  ;;  %v7647_v11 = vld [vmem:[%s10680_s1 + $0x28] ss:$20 sps:$4 sm:$0xff]   ;;  %4016 = vmatprep.subr.bf16.mxu1 %v7652_v13 }
 0x703   :  { %8067 = vpow2.f32 %v6679_v17  ;;  %4017 = vmatpush1.bf16.msra.mxu1 %v7650_v43  ;;  %v7656_v17 = vld [vmem:[%s10680_s1 + $0x58] ss:$20 sps:$4 sm:$0xff]  }
 0x704   :  { %8069 = vpow2.f32 %v6680_v16  ;;  %v7661_v16 = vld [vmem:[%s10680_s1 + $0x7c] ss:$20 sps:$4 sm:$0xff]   ;;  %4018 = vmatprep.subr.bf16.mxu1 %v7658_v15 }
 0x707   :  { %4019 = vmatpush1.bf16.msra.mxu1 %v7656_v17  ;;  %v7683_v17 = vld [vmem:[%s10680_s1 + $0x118] ss:$20 sps:$4 sm:$0xff]  }
 0x70a   :  { %v8062_v1 = vpop.eup %8061 }
 0x70b   :  { %v8064_v19 = vpop.eup %8063 }
 0x70c   :  { %v8066_v25 = vpop.eup %8065  ;;  %v3474_v38 = vadd.f32 1.0, %v8064_v19  ;;  %v7664_v19 = vld [vmem:[%s10680_s1 + $0x84] ss:$20 sps:$4 sm:$0xff]  }
 0x70d   :  { %v3475_v5 = vadd.f32 1.0, %v8066_v25  ;;  %v8068_v27 = vpop.eup %8067  ;;  %v7659_v25 = vld [vmem:[%s10680_s1 + $0x78] ss:$20 sps:$4 sm:$0xff]   ;;  %4020 = vmatprep.subr.bf16.mxu1 %v7664_v19  ;;  %v7686_v19 = vld [vmem:[%s10680_s1 + $0x120] ss:$20 sps:$4 sm:$0xff]  }
 0x70e   :  { %8071 = vrcp.f32 %v3474_v38  ;;  %v8070_v29 = vpop.eup %8069  ;;  %v3476_v30 = vadd.f32 1.0, %v8068_v27  ;;  %v7662_v38 = vld [vmem:[%s10680_s1 + $0x80] ss:$20 sps:$4 sm:$0xff]  }
 0x70f   :  { %8073 = vrcp.f32 %v3475_v5  ;;  %v3477_v32 = vadd.f32 1.0, %v8070_v29  ;;  %v7667_v5 = vld [vmem:[%s10680_s1 + $0xa4] ss:$20 sps:$4 sm:$0xff]   ;;  %v7670_v27 = vld [vmem:[%s10680_s1 + $0xac] ss:$20 sps:$4 sm:$0xff]   ;;  %4021 = vmatpush1.bf16.msra.mxu1 %v7662_v38 }
 0x710   :  { %8075 = vrcp.f32 %v3476_v30  ;;  %v7665_v29 = vld [vmem:[%s10680_s1 + $0xa0] ss:$20 sps:$4 sm:$0xff]   ;;  %v7668_v30 = vld [vmem:[%s10680_s1 + $0xa8] ss:$20 sps:$4 sm:$0xff]   ;;  %4022 = vmatprep.subr.bf16.mxu1 %v7670_v27  ;;  %v7691_v27 = vld [vmem:[%s10680_s1 + $0x144] ss:$20 sps:$4 sm:$0xff]  }
 0x711   :  { %8077 = vrcp.f32 %v3477_v32  ;;  %v7673_v32 = vld [vmem:[%s10680_s1 + $0xcc] ss:$20 sps:$4 sm:$0xff]  }
 0x713   :  { %4023 = vmatpush1.bf16.msra.mxu1 %v7668_v30  ;;  %v7694_v30 = vld [vmem:[%s10680_s1 + $0x14c] ss:$20 sps:$4 sm:$0xff]  }
 0x718   :  { %v8072_v36 = vpop.eup %8071 }
 0x719   :  { %v8074_v37 = vpop.eup %8073  ;;  %v3486_v53 = vmul.f32 %v8072_v36, %v9081_v0  ;;  %v7676_v36 = vld [vmem:[%s10680_s1 + $0xd4] ss:$20 sps:$4 sm:$0xff]  }
 0x71a   :  { %v3487_v40 = vmul.f32 %v8074_v37, %v9083_v3  ;;  %v8076_v0 = vpop.eup %8075  ;;  %v7671_v37 = vld [vmem:[%s10680_s1 + $0xc8] ss:$20 sps:$4 sm:$0xff]   ;;  %4024 = vmatprep.subr.bf16.mxu1 %v7676_v36 }
 0x71b   :  { %v8078_v3 = vpop.eup %8077 }
 0x745   :  { %v3499_v52 = vpop.permute.xlu0 %3498 }
 0x746   :  { %v3501_v54 = vpop.permute.xlu1 %3500 }
 0x747   :  { %v3506_v57 = vsel %vm149_vm0, %v3499_v52, %v3501_v54  ;;  %v3513_v34 = vmul.f32 %v8056_v61, %v3501_v54 }
 0x748   :  { %v3512_v2 = vmul.f32 %v8058_v56, %v3506_v57  ;;  %v3488_v56 = vmul.f32 %v8076_v0, %v9096_v9  ;;  %v3489_v57 = vmul.f32 %v8078_v3, %v9098_v10 }
 0x749   :  { %3522 = vrot.lane.b32.xlu1 %v3513_v34, %s8230_s10  ;;  %v3503_v59 = vpop.permute.xlu0 %3502 }
 0x74a   :  { %3520 = vrot.lane.b32.xlu0 %v3512_v2, %s8230_s10  ;;  %v3505_v63 = vpop.permute.xlu1 %3504 }
 0x74b   :  { %v3507_v14 = vsel %vm149_vm0, %v3503_v59, %v3505_v63  ;;  %v3515_v33 = vmul.f32 %v8060_v62, %v3505_v63 }
 0x74c   :  { %v3514_v35 = vmul.f32 %v8062_v1, %v3507_v14 }
 0x74d   :  { %3526 = vrot.lane.b32.xlu1 %v3515_v33, %s8230_s10 }
 0x74e   :  { %3524 = vrot.lane.b32.xlu0 %v3514_v35, %s8230_s10  ;;  %v7641_v35 = vld [vmem:[%s10680_s1] ss:$20 sps:$4 sm:$0xff]  }
 0x74f   :  { %3972 = vmatpush1.bf16.msra.mxu0 %v7641_v35 }
 0x750   :  { %3973 = vmatprep.subr.bf16.mxu0 %v7649_v8 }
 0x753   :  { %3974 = vmatpush1.bf16.msra.mxu0 %v7647_v11 }
 0x754   :  { %3975 = vmatprep.subr.bf16.mxu0 %v7655_v44 }
 0x757   :  { %3976 = vmatpush1.bf16.msra.mxu0 %v7653_v4 }
 0x758   :  { %3977 = vmatprep.subr.bf16.mxu0 %v7661_v16  ;;  %v7685_v16 = vld [vmem:[%s10680_s1 + $0x11c] ss:$20 sps:$4 sm:$0xff]  }
 0x75b   :  { %3978 = vmatpush1.bf16.msra.mxu0 %v7659_v25  ;;  %v7688_v25 = vld [vmem:[%s10680_s1 + $0x124] ss:$20 sps:$4 sm:$0xff]  }
 0x75c   :  { %3979 = vmatprep.subr.bf16.mxu0 %v7667_v5  ;;  %v7689_v5 = vld [vmem:[%s10680_s1 + $0x140] ss:$20 sps:$4 sm:$0xff]  }
 0x75f   :  { %3980 = vmatpush1.bf16.msra.mxu0 %v7665_v29  ;;  %v7692_v29 = vld [vmem:[%s10680_s1 + $0x148] ss:$20 sps:$4 sm:$0xff]  }
 0x760   :  { %3981 = vmatprep.subr.bf16.mxu0 %v7673_v32 }
 0x763   :  { %3982 = vmatpush1.bf16.msra.mxu0 %v7671_v37 }
 0x7bb   :  { %v3523_v12 = vpop.permute.xlu1 %3522 }
 0x7bc   :  { %v3521_v45 = vpop.permute.xlu0 %3520 }
 0x7bd   :  { %v3528_v50 = vsel %vm94_vm1, %v3521_v45, %v3523_v12  ;;  %v9722_v51 = vadd.f32 %v3521_v45, %v3486_v53  ;;  %v7674_v12 = vld [vmem:[%s10680_s1 + $0xd0] ss:$20 sps:$4 sm:$0xff]  }
 0x7be   :  { %v9724_v42 = vadd.f32 %v3528_v50, %v3487_v40  ;;  %4025 = vmatpush1.bf16.msra.mxu1 %v7674_v12  ;;  %v7695_v12 = vld [vmem:[%s10680_s1 + $0x168] ss:$20 sps:$4 sm:$0xff]  }
 0x7bf   :  { %v3538_v52 = vmul.f32 %v9722_v51, %v8355_v24  ;;  %8079 = vtanh.f32 %v9722_v51  ;;  %v3527_v54 = vpop.permute.xlu1 %3526 }
 0x7c0   :  { %v3539_v61 = vmul.f32 %v9724_v42, %v8367_v39  ;;  %8081 = vtanh.f32 %v9724_v42  ;;  %v3525_v34 = vpop.permute.xlu0 %3524 }
 0x7c1   :  { %3546 = vrot.lane.b32.xlu0 %v3538_v52, %s8229_s28  ;;  %v3529_v2 = vsel %vm94_vm1, %v3525_v34, %v3527_v54  ;;  %v9737_v59 = vadd.f32 %v3525_v34, %v3488_v56 }
 0x7c2   :  { %3548 = vrot.lane.b32.xlu1 %v3539_v61, %s8229_s28  ;;  %v9739_v62 = vadd.f32 %v3529_v2, %v3489_v57 }
 0x7c3   :  { %8083 = vtanh.f32 %v9737_v59  ;;  %v3540_v63 = vmul.f32 %v9737_v59, %v8381_v46 }
 0x7c4   :  { %8085 = vtanh.f32 %v9739_v62  ;;  %v3541_v1 = vmul.f32 %v9739_v62, %v8387_v48 }
 0x7c5   :  { %3550 = vrot.lane.b32.xlu0 %v3540_v63, %s8229_s28 }
 0x7c6   :  { %3552 = vrot.lane.b32.xlu1 %v3541_v1, %s8229_s28 }
 0x7c9   :  { %v8080_v9 = vpop.eup %8079 }
 0x7ca   :  { %v8082_v10 = vpop.eup %8081  ;;  %3596 = vrot.lane.b32.xlu0 %v8080_v9, %s8229_s28 }
 0x7cb   :  { %3598 = vrot.lane.b32.xlu1 %v8082_v10, %s8229_s28 }
 0x7cd   :  { %v8084_v14 = vpop.eup %8083 }
 0x7ce   :  { %v8086_v33 = vpop.eup %8085  ;;  %3600 = vrot.lane.b32.xlu0 %v8084_v14, %s8229_s28  ;;  %v7682_v14 = vld [vmem:[%s10680_s1 + $0xfc] ss:$20 sps:$4 sm:$0xff]  }
 0x7cf   :  { %3602 = vrot.lane.b32.xlu1 %v8086_v33, %s8229_s28  ;;  %4026 = vmatprep.subr.bf16.mxu1 %v7682_v14 }
 0x833   :  { %v3547_v53 = vpop.permute.xlu0 %3546 }
 0x834   :  { %v3560_v40 = vadd.f32 %v9665_v20, %v3547_v53  ;;  %v3549_v45 = vpop.permute.xlu1 %3548 }
 0x835   :  { %v3554_v50 = vsel %vm149_vm0, %v3547_v53, %v3549_v45  ;;  %v7697_v53 = vld [vmem:[%s10680_s1 + $0x16c] ss:$20 sps:$4 sm:$0xff]   ;;  %v7698_v45 = vld [vmem:[%s10680_s1 + $0x170] ss:$20 sps:$4 sm:$0xff]  }
 0x836   :  { %v6681_v52 = vmul.f32 -1.442695, %v3560_v40  ;;  %v3561_v61 = vadd.f32 %v3554_v50, %v9685_v60  ;;  %v7677_v60 = vld [vmem:[%s10680_s1 + $0xf0] ss:$20 sps:$4 sm:$0xff]   ;;  %v7700_v50 = vld [vmem:[%s10680_s1 + $0x174] ss:$20 sps:$4 sm:$0xff]  }
 0x837   :  { %v3551_v3 = vpop.permute.xlu0 %3550 }
 0x838   :  { %8087 = vpow2.f32 %v6681_v52  ;;  %v6682_v0 = vmul.f32 -1.442695, %v3561_v61  ;;  %v3562_v54 = vadd.f32 %v9677_v55, %v3551_v3  ;;  %v3553_v56 = vpop.permute.xlu1 %3552  ;;  %v7679_v55 = vld [vmem:[%s10680_s1 + $0xf4] ss:$20 sps:$4 sm:$0xff]  }
 0x839   :  { %v3555_v57 = vsel %vm149_vm0, %v3551_v3, %v3553_v56  ;;  %3983 = vmatprep.subr.bf16.mxu0 %v7679_v55  ;;  %v7703_v56 = vld [vmem:[%s10680_s1 + $0x19c] ss:$20 sps:$4 sm:$0xff]  }
 0x83a   :  { %8089 = vpow2.f32 %v6682_v0  ;;  %v6683_v34 = vmul.f32 -1.442695, %v3562_v54  ;;  %v3563_v2 = vadd.f32 %v3555_v57, %v9687_v22  ;;  %v7680_v22 = vld [vmem:[%s10680_s1 + $0xf8] ss:$20 sps:$4 sm:$0xff]   ;;  %3984 = vmatpush1.bf16.msra.mxu0 %v7677_v60 }
 0x83b   :  { %4027 = vmatpush1.bf16.msra.mxu1 %v7680_v22  ;;  %3985 = vmatprep.subr.bf16.mxu0 %v7685_v16  ;;  %v7712_v16 = vld [vmem:[%s10680_s1 + $0x60] ss:$20 sps:$4 sm:$0xff]  }
 0x83c   :  { %8091 = vpow2.f32 %v6683_v34  ;;  %v6684_v1 = vmul.f32 -1.442695, %v3563_v2  ;;  %v3597_v6 = vpop.permute.xlu0 %3596  ;;  %4028 = vmatprep.subr.bf16.mxu1 %v7688_v25  ;;  %v5050_v2 = vmul.f32 %v9722_v51, %v8577_v41  ;;  %v7713_v25 = vld [vmem:[%s10680_s1 + $0x210] ss:$20 sps:$4 sm:$0xff]  }
 0x83d   :  { %v3599_v7 = vpop.permute.xlu1 %3598 }
 0x83e   :  { %v3604_v44 = vsel %vm149_vm0, %v3597_v6, %v3599_v7  ;;  %3986 = vmatpush1.bf16.msra.mxu0 %v7683_v17  ;;  %v7709_v17 = vld [vmem:[%s10680_s1 + $0x1e8] ss:$20 sps:$4 sm:$0xff]  }
 0x83f   :  { %4029 = vmatpush1.bf16.msra.mxu1 %v7686_v19  ;;  %3987 = vmatprep.subr.bf16.mxu0 %v7691_v27  ;;  %v7715_v19 = vld [vmem:[%s10680_s1 + $0x214] ss:$20 sps:$4 sm:$0xff]   ;;  %v7717_v27 = vld [vmem:[%s10680_s1 + $0x238] ss:$20 sps:$4 sm:$0xff]  }
 0x840   :  { %v3601_v36 = vpop.permute.xlu0 %3600  ;;  %4030 = vmatprep.subr.bf16.mxu1 %v7694_v30  ;;  %v7723_v30 = vld [vmem:[%s10680_s1 + $0x264] ss:$20 sps:$4 sm:$0xff]  }
 0x841   :  { %v3603_v37 = vpop.permute.xlu1 %3602 }
 0x842   :  { %v8088_v63 = vpop.eup %8087  ;;  %3988 = vmatpush1.bf16.msra.mxu0 %v7689_v5  ;;  %v3605_v0 = vsel %vm149_vm0, %v3601_v36, %v3603_v37  ;;  %v7719_v5 = vld [vmem:[%s10680_s1 + $0x23c] ss:$20 sps:$4 sm:$0xff]   ;;  %v7727_v37 = vld [vmem:[%s10680_s1 + $0x28c] ss:$20 sps:$4 sm:$0xff]  }
 0x843   :  { %v3576_v20 = vadd.f32 1.0, %v8088_v63  ;;  %4031 = vmatpush1.bf16.msra.mxu1 %v7692_v29  ;;  %3989 = vmatprep.subr.bf16.mxu0 %v7697_v53  ;;  %v5051_v63 = vmul.f32 %v9724_v42, %v8583_v47  ;;  %v7701_v47 = vld [vmem:[%s10680_s1 + $0x198] ss:$20 sps:$4 sm:$0xff]   ;;  %v7720_v29 = vld [vmem:[%s10680_s1 + $0xb0] ss:$20 sps:$4 sm:$0xff]  }
 0x844   :  { %v8090_v9 = vpop.eup %8089  ;;  %4032 = vmatprep.subr.bf16.mxu1 %v7700_v50  ;;  %v7728_v53 = vld [vmem:[%s10680_s1 + $0x100] ss:$20 sps:$4 sm:$0xff]   ;;  %v7732_v50 = vld [vmem:[%s10680_s1 + $0x128] ss:$20 sps:$4 sm:$0xff]  }
 0x845   :  { %8093 = vrcp.f32 %v3576_v20  ;;  %v3577_v10 = vadd.f32 1.0, %v8090_v9 }
 0x846   :  { %8095 = vpow2.f32 %v6684_v1  ;;  %v8092_v33 = vpop.eup %8091  ;;  %3990 = vmatpush1.bf16.msra.mxu0 %v7695_v12  ;;  %v7725_v12 = vld [vmem:[%s10680_s1 + $0x288] ss:$20 sps:$4 sm:$0xff]  }
 0x847   :  { %8097 = vrcp.f32 %v3577_v10  ;;  %v3578_v35 = vadd.f32 1.0, %v8092_v33  ;;  %4033 = vmatpush1.bf16.msra.mxu1 %v7698_v45  ;;  %4057 = vmatprep.subr.bf16.mxu0 %v8232_v26  ;;  %v7729_v45 = vld [vmem:[%s10680_s1 + $0x2b0] ss:$20 sps:$4 sm:$0xff]  }
 0x848   :  { %4485 = vmatprep.subr.bf16.mxu1 %v7703_v56  ;;  %v7737_v56 = vld [vmem:[%s10680_s1 + $0x300] ss:$20 sps:$4 sm:$0xff]  }
 0x849   :  { %8099 = vrcp.f32 %v3578_v35 }
 0x84f   :  { %v8094_v23 = vpop.eup %8093 }
 0x850   :  { %v8096_v8 = vpop.eup %8095  ;;  %v3610_v13 = vmul.f32 %v8094_v23, %v3597_v6  ;;  %v7704_v23 = vld [vmem:[%s10680_s1 + $0x10] ss:$20 sps:$4 sm:$0xff]  }
 0x851   :  { %v8098_v11 = vpop.eup %8097  ;;  %v3579_v43 = vadd.f32 1.0, %v8096_v8 }
 0x852   :  { %v3618_v15 = vrot.slane %v3610_v13, 6  ;;  %v3611_v4 = vmul.f32 %v8098_v11, %v3604_v44  ;;  %v7705_v44 = vld [vmem:[%s10680_s1 + $0x1c0] ss:$20 sps:$4 sm:$0xff]  }
 0x853   :  { %8101 = vrcp.f32 %v3579_v43  ;;  %v8100_v32 = vpop.eup %8099  ;;  %v7707_v43 = vld [vmem:[%s10680_s1 + $0x1c4] ss:$20 sps:$4 sm:$0xff]  }
 0x854   :  { %v3619_v38 = vrot.slane %v3611_v4, 6  ;;  %3624 = vrot.lane.b32.xlu0 %v3618_v15, %s8230_s10  ;;  %v3612_v40 = vmul.f32 %v8100_v32, %v3601_v36  ;;  %v7711_v4 = vld [vmem:[%s10680_s1 + $0x1ec] ss:$20 sps:$4 sm:$0xff]  }
 0x855   :  { %v7721_v32 = vld [vmem:[%s10680_s1 + $0x260] ss:$20 sps:$4 sm:$0xff]   ;;  %v7724_v36 = vld [vmem:[%s10680_s1 + $0xd8] ss:$20 sps:$4 sm:$0xff]  }
 0x856   :  { %3626 = vrot.lane.b32.xlu1 %v3619_v38, %s8230_s10  ;;  %v3620_v61 = vrot.slane %v3612_v40, 6  ;;  %v7731_v40 = vld [vmem:[%s10680_s1 + $0x2b4] ss:$20 sps:$4 sm:$0xff]  }
 0x858   :  { %v3621_v54 = vsel %vm284_vm2, %v3618_v15, %v3620_v61  ;;  %v7708_v15 = vld [vmem:[%s10680_s1 + $0x38] ss:$20 sps:$4 sm:$0xff]  }
 0x859   :  { %3628 = vrot.lane.b32.xlu0 %v3621_v54, %s8230_s10  ;;  %v7733_v61 = vld [vmem:[%s10680_s1 + $0x2d8] ss:$20 sps:$4 sm:$0xff]  }
 0x85d   :  { %v8102_v52 = vpop.eup %8101  ;;  %5058 = vrot.lane.b32.xlu0 %v5050_v2, %s8233_s22  ;;  %v7743_v2 = vld [vmem:[%s10680_s1 + $0x194] ss:$20 sps:$4 sm:$0xff]  }
 0x85e   :  { %v3613_v3 = vmul.f32 %v8102_v52, %v3605_v0  ;;  %v7735_v52 = vld [vmem:[%s10680_s1 + $0x2dc] ss:$20 sps:$4 sm:$0xff]  }
 0x85f   :  { %v7736_v0 = vld [vmem:[%s10680_s1 + $0x150] ss:$20 sps:$4 sm:$0xff]  }
 0x860   :  { %v3622_v57 = vrot.slane %v3613_v3, 6  ;;  %v7739_v3 = vld [vmem:[%s10680_s1 + $0x304] ss:$20 sps:$4 sm:$0xff]  }
 0x862   :  { %v3623_v34 = vsel %vm284_vm2, %v3619_v38, %v3622_v57  ;;  %v7716_v38 = vld [vmem:[%s10680_s1 + $0x88] ss:$20 sps:$4 sm:$0xff]   ;;  %v7740_v57 = vld [vmem:[%s10680_s1 + $0x178] ss:$20 sps:$4 sm:$0xff]  }
 0x863   :  { %3630 = vrot.lane.b32.xlu1 %v3623_v34, %s8230_s10 }
 0x867   :  { %5060 = vrot.lane.b32.xlu1 %v5051_v63, %s8233_s22 }
 0x8c6   :  { %v3625_v20 = vpop.permute.xlu0 %3624 }
 0x8c8   :  { %v3627_v1 = vpop.permute.xlu1 %3626 }
 0x8c9   :  { %v3632_v9 = vsel %vm94_vm1, %v3625_v20, %v3627_v1  ;;  %3639 = vst.msk [vmem:[#allocation2 + $0x8] sm:$0xfc] %vm306_vm3, %v3627_v1  ;;  %v7741_v20 = vld [vmem:[%s10680_s1 + $0x190] ss:$20 sps:$4 sm:$0xff]  }
 0x8ca   :  { %3638 = vst [vmem:[#allocation2] sm:$0xfc] %v3632_v9  ;;  %v7744_v9 = vld [vmem:[%s10680_s1 + $0x1a0] ss:$20 sps:$4 sm:$0xff]  }
 0x8cb   :  { %v3629_v10 = vpop.permute.xlu0 %3628 }
 0x8d0   :  { %v3643_v55 = vld [vmem:[#allocation2 + $0x8] sm:$0xff] }
 0x8d1   :  { %v4109_v14 = vld [vmem:[#allocation2 + $0x8] sm:$0xfc]  ;;  %v3642_v6 = vld [vmem:[#allocation2] sm:$0xff] }
 0x8d2   :  { %v4108_v34 = vld [vmem:[#allocation2] sm:$0xfc] }
 0x8d5   :  { %v3631_v60 = vpop.permute.xlu1 %3630 }
 0x8d6   :  { %v3633_v41 = vsel %vm94_vm1, %v3629_v10, %v3631_v60  ;;  %3641 = vst.msk [vmem:[#allocation2 + $0x18] sm:$0x3f] %vm309_vm4, %v3631_v60  ;;  %v7747_v10 = vld [vmem:[%s10680_s1 + $0x1bc] ss:$20 sps:$4 sm:$0xff]   ;;  %v7745_v60 = vld [vmem:[%s10680_s1 + $0x1b8] ss:$20 sps:$4 sm:$0xff]  }
 0x8d7   :  { %3640 = vst [vmem:[#allocation2 + $0x10] sm:$0x3f] %v3633_v41  ;;  %v7748_v41 = vld [vmem:[%s10680_s1 + $0x1c8] ss:$20 sps:$4 sm:$0xff]  }
 0x8dd   :  { %v3645_v22 = vld [vmem:[#allocation2 + $0x18] sm:$0xf] }
 0x8de   :  { %v4111_v33 = vld [vmem:[#allocation2 + $0x18] sm:$0x3f]  ;;  %v3647_v35 = vpack.c.bf16 %v3645_v22, %v3643_v55  ;;  %v3644_v7 = vld [vmem:[#allocation2 + $0x10] sm:$0xf] }
 0x8df   :  { %v4113_v8 = vpack.c.bf16 %v4111_v33, %v4109_v14  ;;  %v9907_v13 = vpack.c.bf16 %v3644_v7, %v3642_v6  ;;  %v4110_v54 = vld [vmem:[#allocation2 + $0x10] sm:$0x3f]  ;;  %v7751_v55 = vld [vmem:[%s10680_s1 + $0x1e4] ss:$20 sps:$4 sm:$0xff]   ;;  %v7755_v14 = vld [vmem:[%s10680_s1 + $0x20c] ss:$20 sps:$4 sm:$0xff]  }
 0x8e0   :  { %6735 = vmatprep.mubr.msk.bf16.mxu0 %vm94_vm1, %v3647_v35  ;;  %6736 = vmatprep.mubr.msk.bf16.mxu1 %vm94_vm1, %v3647_v35  ;;  %v4112_v63 = vpack.c.bf16 %v4110_v54, %v4108_v34  ;;  %v7752_v22 = vld [vmem:[%s10680_s1 + $0x1f0] ss:$20 sps:$4 sm:$0xff]   ;;  %v7753_v33 = vld [vmem:[%s10680_s1 + $0x208] ss:$20 sps:$4 sm:$0xff]  }
 0x8e1   :  { %v9911_v11 = vrot.slane %v4113_v8, 1  ;;  %4004 = vmatmul.mubr.bf16.vlgmr.msra.gmra.mrb[20].mxu0 %v9907_v13  ;;  %4047 = vmatmul.mubr.bf16.vlgmr.msra.gmra.mrb[20].mxu1 %v9907_v13  ;;  %v7759_v6 = vld [vmem:[%s10680_s1 + $0x234] ss:$20 sps:$4 sm:$0xff]   ;;  %v7757_v7 = vld [vmem:[%s10680_s1 + $0x230] ss:$20 sps:$4 sm:$0xff]  }
 0x8e2   :  { %4058 = vmatpush1.bf16.msra.mxu0 %v7704_v23  ;;  %4486 = vmatpush1.bf16.msra.mxu1 %v7701_v47  ;;  %v10014_v1 = vrot.slane %v4112_v63, 1  ;;  %v7749_v47 = vld [vmem:[%s10680_s1 + $0x1e0] ss:$20 sps:$4 sm:$0xff]   ;;  %v7763_v8 = vld [vmem:[%s10680_s1 + $0x25c] ss:$20 sps:$4 sm:$0xff]  }
 0x8e3   :  { %6737 = vmatprep.mubr.msk.bf16.mxu0 %vm94_vm1, %v3647_v35  ;;  %6849 = vmatprep.mubr.msk.bf16.mxu1 %vm94_vm1, %v9911_v11  ;;  %v7756_v35 = vld [vmem:[%s10680_s1 + $0x218] ss:$20 sps:$4 sm:$0xff]   ;;  %v7760_v23 = vld [vmem:[%s10680_s1 + $0x240] ss:$20 sps:$4 sm:$0xff]   ;;  %v7798_v54 = vld [vmem:[%s10680_s1 + $0x37c] ss:$20 sps:$4 sm:$0xff]  }
 0x8e4   :  { %4059 = vmatprep.subr.bf16.mxu0 %v8232_v26  ;;  %4487 = vmatprep.subr.bf16.mxu1 %v7707_v43  ;;  %v7767_v43 = vld [vmem:[%s10680_s1 + $0x284] ss:$20 sps:$4 sm:$0xff]   ;;  %v7801_v34 = vld [vmem:[%s10680_s1 + $0x39c] ss:$20 sps:$4 sm:$0xff]  }
 0x8e5   :  { %v7799_v63 = vld [vmem:[%s10680_s1 + $0x398] ss:$20 sps:$4 sm:$0xff]  }
 0x8e6   :  { %4060 = vmatpush1.bf16.msra.mxu0 %v7708_v15  ;;  %4488 = vmatpush1.bf16.msra.mxu1 %v7705_v44  ;;  %v7765_v44 = vld [vmem:[%s10680_s1 + $0x280] ss:$20 sps:$4 sm:$0xff]   ;;  %v7768_v15 = vld [vmem:[%s10680_s1 + $0x290] ss:$20 sps:$4 sm:$0xff]  }
 0x8e7   :  { %4061 = vmatprep.subr.bf16.mxu0 %v8232_v26  ;;  %4489 = vmatprep.subr.bf16.mxu1 %v7711_v4  ;;  %v7771_v4 = vld [vmem:[%s10680_s1 + $0x2ac] ss:$20 sps:$4 sm:$0xff]  }
 0x8ea   :  { %4062 = vmatpush1.bf16.msra.mxu0 %v7712_v16  ;;  %4490 = vmatpush1.bf16.msra.mxu1 %v7709_v17  ;;  %v7769_v17 = vld [vmem:[%s10680_s1 + $0x2a8] ss:$20 sps:$4 sm:$0xff]   ;;  %v7772_v16 = vld [vmem:[%s10680_s1 + $0x2b8] ss:$20 sps:$4 sm:$0xff]  }
 0x8eb   :  { %4063 = vmatprep.subr.bf16.mxu0 %v8232_v26  ;;  %4491 = vmatprep.subr.bf16.mxu1 %v7715_v19  ;;  %v7775_v19 = vld [vmem:[%s10680_s1 + $0x2d4] ss:$20 sps:$4 sm:$0xff]  }
 0x8ee   :  { %4064 = vmatpush1.bf16.msra.mxu0 %v7716_v38  ;;  %4492 = vmatpush1.bf16.msra.mxu1 %v7713_v25  ;;  %v7773_v25 = vld [vmem:[%s10680_s1 + $0x2d0] ss:$20 sps:$4 sm:$0xff]   ;;  %v7776_v38 = vld [vmem:[%s10680_s1 + $0x2e0] ss:$20 sps:$4 sm:$0xff]  }
 0x8ef   :  { %4065 = vmatprep.subr.bf16.mxu0 %v8232_v26  ;;  %4493 = vmatprep.subr.bf16.mxu1 %v7719_v5  ;;  %v7779_v5 = vld [vmem:[%s10680_s1 + $0x2fc] ss:$20 sps:$4 sm:$0xff]  }
 0x8f2   :  { %4066 = vmatpush1.bf16.msra.mxu0 %v7720_v29  ;;  %4494 = vmatpush1.bf16.msra.mxu1 %v7717_v27  ;;  %v7777_v27 = vld [vmem:[%s10680_s1 + $0x2f8] ss:$20 sps:$4 sm:$0xff]  }
 0x8f3   :  { %4067 = vmatprep.subr.bf16.mxu0 %v8232_v26  ;;  %4495 = vmatprep.subr.bf16.mxu1 %v7723_v30  ;;  %v4582_v29 = vld [vmem:[#allocation2 + $0x18] sm:$0xff] }
 0x8f4   :  { %v7780_v30 = vld [vmem:[%s10680_s1 + $0x308] ss:$20 sps:$4 sm:$0xff]  }
 0x8f6   :  { %4068 = vmatpush1.bf16.msra.mxu0 %v7724_v36  ;;  %4496 = vmatpush1.bf16.msra.mxu1 %v7721_v32  ;;  %v7783_v32 = vld [vmem:[%s10680_s1 + $0x324] ss:$20 sps:$4 sm:$0xff]   ;;  %v7786_v36 = vld [vmem:[%s10680_s1 + $0x32c] ss:$20 sps:$4 sm:$0xff]  }
 0x8f7   :  { %4069 = vmatprep.subr.bf16.mxu0 %v8232_v26  ;;  %4497 = vmatprep.subr.bf16.mxu1 %v7727_v37  ;;  %v4580_v37 = vld [vmem:[#allocation2 + $0x8] sm:$0xf0] }
 0x8fa   :  { %4070 = vmatpush1.bf16.msra.mxu0 %v7728_v53  ;;  %4498 = vmatpush1.bf16.msra.mxu1 %v7725_v12  ;;  %v4584_v12 = vpack.c.bf16 %v4582_v29, %v4580_v37  ;;  %v7781_v53 = vld [vmem:[%s10680_s1 + $0x320] ss:$20 sps:$4 sm:$0xff]   ;;  %v7845_v37 = vld [vmem:[%s10680_s1 + $0x3d0] ss:$20 sps:$4 sm:$0xff]  }
 0x8fb   :  { %4071 = vmatprep.subr.bf16.mxu0 %v8232_v26  ;;  %4499 = vmatprep.subr.bf16.mxu1 %v7731_v40  ;;  %v7784_v40 = vld [vmem:[%s10680_s1 + $0x328] ss:$20 sps:$4 sm:$0xff]  }
 0x8fe   :  { %4072 = vmatpush1.bf16.msra.mxu0 %v7732_v50  ;;  %4500 = vmatpush1.bf16.msra.mxu1 %v7729_v45  ;;  %v7789_v45 = vld [vmem:[%s10680_s1 + $0x34c] ss:$20 sps:$4 sm:$0xff]   ;;  %v10132_v50 = vrot.slane %v4584_v12, 2 }
 0x8ff   :  { %4073 = vmatprep.subr.bf16.mxu0 %v8232_v26  ;;  %4501 = vmatprep.subr.bf16.mxu1 %v7735_v52  ;;  %v7792_v52 = vld [vmem:[%s10680_s1 + $0x354] ss:$20 sps:$4 sm:$0xff]   ;;  %v7846_v12 = vld [vmem:[%s10680_s1 + $0x3f8] ss:$20 sps:$4 sm:$0xff]  }
 0x902   :  { %4074 = vmatpush1.bf16.msra.mxu0 %v7736_v0  ;;  %4502 = vmatpush1.bf16.msra.mxu1 %v7733_v61  ;;  %v7787_v61 = vld [vmem:[%s10680_s1 + $0x348] ss:$20 sps:$4 sm:$0xff]   ;;  %v7790_v0 = vld [vmem:[%s10680_s1 + $0x350] ss:$20 sps:$4 sm:$0xff]  }
 0x903   :  { %4075 = vmatprep.subr.bf16.mxu0 %v8232_v26  ;;  %4503 = vmatprep.subr.bf16.mxu1 %v7739_v3  ;;  %v7795_v3 = vld [vmem:[%s10680_s1 + $0x374] ss:$20 sps:$4 sm:$0xff]  }
 0x906   :  { %4076 = vmatpush1.bf16.msra.mxu0 %v7740_v57  ;;  %4504 = vmatpush1.bf16.msra.mxu1 %v7737_v56  ;;  %v7793_v56 = vld [vmem:[%s10680_s1 + $0x370] ss:$20 sps:$4 sm:$0xff]   ;;  %v7796_v57 = vld [vmem:[%s10680_s1 + $0x378] ss:$20 sps:$4 sm:$0xff]  }
 0x907   :  { %4442 = vmatprep.subr.bf16.mxu0 %v7743_v2  ;;  %4528 = vmatprep.subr.bf16.mxu1 %v8232_v26  ;;  %v7804_v2 = vld [vmem:[%s10680_s1 + $0x3a4] ss:$20 sps:$4 sm:$0xff]  }
 0x909   :  { %4090 = vmatmul.mubr.bf16.vlgmr.msra.gmra.mrb[24].mxu0 %v9907_v13  ;;  %4518 = vmatmul.mubr.bf16.vlgmr.msra.gmra.mrb[20].mxu1 %v10014_v1  ;;  %v7761_v13 = vld [vmem:[%s10680_s1 + $0x258] ss:$20 sps:$4 sm:$0xff]  }
 0x90a   :  { %4443 = vmatpush1.bf16.msra.mxu0 %v7741_v20  ;;  %6848 = vmatprep.mubr.msk.bf16.mxu0 %vm94_vm1, %v9911_v11  ;;  %v7802_v20 = vld [vmem:[%s10680_s1 + $0x3a0] ss:$20 sps:$4 sm:$0xff]  }
 0x90b   :  { %4529 = vmatpush1.bf16.msra.mxu1 %v7744_v9  ;;  %6850 = vmatprep.mubr.msk.bf16.mxu1 %vm94_vm1, %v9911_v11  ;;  %v7764_v11 = vld [vmem:[%s10680_s1 + $0x268] ss:$20 sps:$4 sm:$0xff]   ;;  %v7810_v9 = vld [vmem:[%s10680_s1 + $0x3cc] ss:$20 sps:$4 sm:$0xff]  }
 0x90c   :  { %4444 = vmatprep.subr.bf16.mxu0 %v7747_v10  ;;  %4530 = vmatprep.subr.bf16.mxu1 %v8232_v26  ;;  %v7805_v10 = vld [vmem:[%s10680_s1 + $0x3c0] ss:$20 sps:$4 sm:$0xff]  }
 0x90e   :  { %4445 = vmatpush1.bf16.msra.mxu0 %v7745_v60  ;;  %v7808_v60 = vld [vmem:[%s10680_s1 + $0x3c8] ss:$20 sps:$4 sm:$0xff]  }
 0x90f   :  { %4531 = vmatpush1.bf16.msra.mxu1 %v7748_v41  ;;  %4446 = vmatprep.subr.bf16.mxu0 %v7751_v55  ;;  %v7813_v41 = vld [vmem:[%s10680_s1 + $0x3ec] ss:$20 sps:$4 sm:$0xff]   ;;  %v7816_v55 = vld [vmem:[%s10680_s1 + $0x3f4] ss:$20 sps:$4 sm:$0xff]  }
 0x910   :  { %4532 = vmatprep.subr.bf16.mxu1 %v8232_v26 }
 0x912   :  { %4447 = vmatpush1.bf16.msra.mxu0 %v7749_v47  ;;  %v7811_v47 = vld [vmem:[%s10680_s1 + $0x3e8] ss:$20 sps:$4 sm:$0xff]  }
 0x913   :  { %4533 = vmatpush1.bf16.msra.mxu1 %v7752_v22  ;;  %4448 = vmatprep.subr.bf16.mxu0 %v7755_v14  ;;  %v7814_v22 = vld [vmem:[%s10680_s1 + $0x3f0] ss:$20 sps:$4 sm:$0xff]   ;;  %v7819_v14 = vld [vmem:[%s10680_s1 + $0x414] ss:$20 sps:$4 sm:$0xff]  }
 0x914   :  { %4534 = vmatprep.subr.bf16.mxu1 %v8232_v26 }
 0x916   :  { %4449 = vmatpush1.bf16.msra.mxu0 %v7753_v33  ;;  %v7822_v33 = vld [vmem:[%s10680_s1 + $0x41c] ss:$20 sps:$4 sm:$0xff]  }
 0x917   :  { %4535 = vmatpush1.bf16.msra.mxu1 %v7756_v35  ;;  %4450 = vmatprep.subr.bf16.mxu0 %v7759_v6  ;;  %v7817_v35 = vld [vmem:[%s10680_s1 + $0x410] ss:$20 sps:$4 sm:$0xff]   ;;  %v7820_v6 = vld [vmem:[%s10680_s1 + $0x418] ss:$20 sps:$4 sm:$0xff]  }
 0x918   :  { %4536 = vmatprep.subr.bf16.mxu1 %v8232_v26 }
 0x91a   :  { %4451 = vmatpush1.bf16.msra.mxu0 %v7757_v7  ;;  %v7825_v7 = vld [vmem:[%s10680_s1 + $0x43c] ss:$20 sps:$4 sm:$0xff]  }
 0x91b   :  { %4537 = vmatpush1.bf16.msra.mxu1 %v7760_v23  ;;  %4452 = vmatprep.subr.bf16.mxu0 %v7763_v8  ;;  %v7828_v23 = vld [vmem:[%s10680_s1 + $0x444] ss:$20 sps:$4 sm:$0xff]  }
 0x91c   :  { %4538 = vmatprep.subr.bf16.mxu1 %v8232_v26  ;;  %v7823_v8 = vld [vmem:[%s10680_s1 + $0x438] ss:$20 sps:$4 sm:$0xff]  }
 0x91e   :  { %4453 = vmatpush1.bf16.msra.mxu0 %v7761_v13  ;;  %v7826_v13 = vld [vmem:[%s10680_s1 + $0x440] ss:$20 sps:$4 sm:$0xff]  }
 0x91f   :  { %4539 = vmatpush1.bf16.msra.mxu1 %v7764_v11  ;;  %4454 = vmatprep.subr.bf16.mxu0 %v7767_v43  ;;  %v7831_v11 = vld [vmem:[%s10680_s1 + $0x464] ss:$20 sps:$4 sm:$0xff]   ;;  %v7834_v43 = vld [vmem:[%s10680_s1 + $0x46c] ss:$20 sps:$4 sm:$0xff]  }
 0x920   :  { %4540 = vmatprep.subr.bf16.mxu1 %v8232_v26 }
 0x922   :  { %4455 = vmatpush1.bf16.msra.mxu0 %v7765_v44  ;;  %v7829_v44 = vld [vmem:[%s10680_s1 + $0x460] ss:$20 sps:$4 sm:$0xff]  }
 0x923   :  { %4541 = vmatpush1.bf16.msra.mxu1 %v7768_v15  ;;  %4456 = vmatprep.subr.bf16.mxu0 %v7771_v4  ;;  %v7832_v15 = vld [vmem:[%s10680_s1 + $0x468] ss:$20 sps:$4 sm:$0xff]   ;;  %v7837_v4 = vld [vmem:[%s10680_s1 + $0x48c] ss:$20 sps:$4 sm:$0xff]  }
 0x924   :  { %4542 = vmatprep.subr.bf16.mxu1 %v8232_v26 }
 0x926   :  { %4457 = vmatpush1.bf16.msra.mxu0 %v7769_v17  ;;  %v7840_v17 = vld [vmem:[%s10680_s1 + $0x494] ss:$20 sps:$4 sm:$0xff]  }
 0x927   :  { %4543 = vmatpush1.bf16.msra.mxu1 %v7772_v16  ;;  %4458 = vmatprep.subr.bf16.mxu0 %v7775_v19  ;;  %v4581_v16 = vld [vmem:[#allocation2 + $0x10] sm:$0xff]  ;;  %v7835_v19 = vld [vmem:[%s10680_s1 + $0x488] ss:$20 sps:$4 sm:$0xff]  }
 0x928   :  { %4544 = vmatprep.subr.bf16.mxu1 %v8232_v26 }
 0x92a   :  { %4459 = vmatpush1.bf16.msra.mxu0 %v7773_v25  ;;  %v4579_v25 = vld [vmem:[#allocation2] sm:$0xf0] }
 0x92b   :  { %4545 = vmatpush1.bf16.msra.mxu1 %v7776_v38  ;;  %4460 = vmatprep.subr.bf16.mxu0 %v7779_v5  ;;  %v7838_v38 = vld [vmem:[%s10680_s1 + $0x490] ss:$20 sps:$4 sm:$0xff]   ;;  %v4583_v5 = vpack.c.bf16 %v4581_v16, %v4579_v25 }
 0x92c   :  { %4546 = vmatprep.subr.bf16.mxu1 %v8232_v26 }
 0x92d   :  { %v4647_v29 = vrot.slane %v4583_v5, 2  ;;  %v5061_v5 = vpop.permute.xlu1 %5060 }
 0x92e   :  { %4461 = vmatpush1.bf16.msra.mxu0 %v7777_v27  ;;  %v7841_v27 = vld [vmem:[%s10680_s1 + $0x330] ss:$20 sps:$4 sm:$0xff]  }
 0x92f   :  { %4547 = vmatpush1.bf16.msra.mxu1 %v7780_v30  ;;  %4913 = vmatprep.subr.bf16.mxu0 %v7783_v32  ;;  %v7842_v30 = vld [vmem:[%s10680_s1 + $0x358] ss:$20 sps:$4 sm:$0xff]   ;;  %v7843_v32 = vld [vmem:[%s10680_s1 + $0x380] ss:$20 sps:$4 sm:$0xff]  }
 0x930   :  { %4956 = vmatprep.subr.bf16.mxu1 %v7786_v36  ;;  %v7844_v36 = vld [vmem:[%s10680_s1 + $0x3a8] ss:$20 sps:$4 sm:$0xff]  }
 0x931   :  { %4475 = vmatmul.mubr.bf16.vlgmr.msra.gmra.mrb[20].mxu0 %v10014_v1 }
 0x932   :  { %4561 = vmatmul.mubr.bf16.vlgmr.msra.gmra.mrb[24].mxu1 %v10014_v1  ;;  %4914 = vmatpush1.bf16.msra.mxu0 %v7781_v53  ;;  %v7807_v1 = vld [vmem:[%s10680_s1 + $0x3c4] ss:$20 sps:$4 sm:$0xff]   ;;  %v7847_v53 = vld [vmem:[%s10680_s1 + $0x420] ss:$20 sps:$4 sm:$0xff]  }
 0x933   :  { %6961 = vmatprep.mubr.msk.bf16.mxu0 %vm94_vm1, %v10132_v50  ;;  %4957 = vmatpush1.bf16.msra.mxu1 %v7784_v40  ;;  %v7848_v40 = vld [vmem:[%s10680_s1 + $0x448] ss:$20 sps:$4 sm:$0xff]  }
 0x934   :  { %6962 = vmatprep.mubr.msk.bf16.mxu1 %vm94_vm1, %v10132_v50  ;;  %4915 = vmatprep.subr.bf16.mxu0 %v7789_v45  ;;  %v7849_v45 = vld [vmem:[%s10680_s1 + $0x470] ss:$20 sps:$4 sm:$0xff]  }
 0x935   :  { %4958 = vmatprep.subr.bf16.mxu1 %v7792_v52 }
 0x936   :  { %4916 = vmatpush1.bf16.msra.mxu0 %v7787_v61 }
 0x937   :  { %4959 = vmatpush1.bf16.msra.mxu1 %v7790_v0  ;;  %4917 = vmatprep.subr.bf16.mxu0 %v7795_v3 }
 0x938   :  { %4960 = vmatprep.subr.bf16.mxu1 %v7798_v54  ;;  %v8195_v54 = vld [vmem:[%s10679_s0 + $0x20] sm:$0xff] }
 0x93a   :  { %4918 = vmatpush1.bf16.msra.mxu0 %v7793_v56 }
 0x93b   :  { %4961 = vmatpush1.bf16.msra.mxu1 %v7796_v57  ;;  %4919 = vmatprep.subr.bf16.mxu0 %v7801_v34  ;;  %v8196_v34 = vld [vmem:[%s10679_s0 + $0x48] sm:$0xf] }
 0x93c   :  { %4962 = vmatprep.subr.bf16.mxu1 %v7804_v2 }
 0x93e   :  { %4920 = vmatpush1.bf16.msra.mxu0 %v7799_v63 }
 0x93f   :  { %4963 = vmatpush1.bf16.msra.mxu1 %v7802_v20  ;;  %4921 = vmatprep.subr.bf16.mxu0 %v7807_v1 }
 0x940   :  { %4964 = vmatprep.subr.bf16.mxu1 %v7810_v9 }
 0x942   :  { %4922 = vmatpush1.bf16.msra.mxu0 %v7805_v10 }
 0x943   :  { %4965 = vmatpush1.bf16.msra.mxu1 %v7808_v60  ;;  %4923 = vmatprep.subr.bf16.mxu0 %v7813_v41 }
 0x944   :  { %4966 = vmatprep.subr.bf16.mxu1 %v7816_v55 }
 0x946   :  { %4924 = vmatpush1.bf16.msra.mxu0 %v7811_v47  ;;  %v8197_v47 = vld [vmem:[%s10679_s0 + $0x10] sm:$0xff] }
 0x947   :  { %4967 = vmatpush1.bf16.msra.mxu1 %v7814_v22  ;;  %4925 = vmatprep.subr.bf16.mxu0 %v7819_v14 }
 0x948   :  { %4968 = vmatprep.subr.bf16.mxu1 %v7822_v33 }
 0x94a   :  { %4926 = vmatpush1.bf16.msra.mxu0 %v7817_v35  ;;  %v8198_v35 = vld [vmem:[%s10679_s0 + $0x18] sm:$0xff] }
 0x94b   :  { %4969 = vmatpush1.bf16.msra.mxu1 %v7820_v6  ;;  %4927 = vmatprep.subr.bf16.mxu0 %v7825_v7 }
 0x94c   :  { %4970 = vmatprep.subr.bf16.mxu1 %v7828_v23 }
 0x94e   :  { %4928 = vmatpush1.bf16.msra.mxu0 %v7823_v8 }
 0x94f   :  { %4971 = vmatpush1.bf16.msra.mxu1 %v7826_v13  ;;  %4929 = vmatprep.subr.bf16.mxu0 %v7831_v11 }
 0x950   :  { %4972 = vmatprep.subr.bf16.mxu1 %v7834_v43  ;;  %v5052_v43 = vmul.f32 %v9737_v59, %v8586_v49 }
 0x952   :  { %4930 = vmatpush1.bf16.msra.mxu0 %v7829_v44  ;;  %v5053_v44 = vmul.f32 %v9739_v62, %v8598_v58  ;;  %v8200_v58 = vld [vmem:[%s10679_s0] sm:$0xff] }
 0x953   :  { %4973 = vmatpush1.bf16.msra.mxu1 %v7832_v15  ;;  %4931 = vmatprep.subr.bf16.mxu0 %v7837_v4 }
 0x954   :  { %4974 = vmatprep.subr.bf16.mxu1 %v7840_v17 }
 0x956   :  { %4932 = vmatpush1.bf16.msra.mxu0 %v7835_v19 }
 0x957   :  { %4975 = vmatpush1.bf16.msra.mxu1 %v7838_v38  ;;  %4999 = vmatprep.subr.bf16.mxu0 %v8232_v26  ;;  %v8199_v38 = vld [vmem:[%s10679_s0 + $0x8] sm:$0xff] }
 0x958   :  { %5377 = vmatprep.subr.bf16.mxu1 %v8232_v26 }
 0x959   :  { %4946 = vmatmul.mubr.bf16.vlgmr.msra.gmra.mrb[20].mxu0 %v4647_v29 }
 0x95a   :  { %4989 = vmatmul.mubr.bf16.vlgmr.msra.gmra.mrb[20].mxu1 %v4647_v29  ;;  %5000 = vmatpush1.bf16.msra.mxu0 %v7841_v27 }
 0x95b   :  { %6963 = vmatprep.mubr.msk.bf16.mxu0 %vm94_vm1, %v10132_v50  ;;  %5001 = vmatprep.subr.bf16.mxu0 %v8232_v26  ;;  %v7850_v50 = vld [vmem:[%s10680_s1 + $0x498] ss:$20 sps:$4 sm:$0xff]  }
 0x95e   :  { %5002 = vmatpush1.bf16.msra.mxu0 %v7842_v30 }
 0x95f   :  { %5003 = vmatprep.subr.bf16.mxu0 %v8232_v26 }
 0x962   :  { %5004 = vmatpush1.bf16.msra.mxu0 %v7843_v32 }
 0x963   :  { %5005 = vmatprep.subr.bf16.mxu0 %v8232_v26 }
 0x966   :  { %5006 = vmatpush1.bf16.msra.mxu0 %v7844_v36 }
 0x967   :  { %5007 = vmatprep.subr.bf16.mxu0 %v8232_v26 }
 0x96a   :  { %5008 = vmatpush1.bf16.msra.mxu0 %v7845_v37 }
 0x96b   :  { %5009 = vmatprep.subr.bf16.mxu0 %v8232_v26 }
 0x96e   :  { %5010 = vmatpush1.bf16.msra.mxu0 %v7846_v12 }
 0x96f   :  { %5011 = vmatprep.subr.bf16.mxu0 %v8232_v26 }
 0x972   :  { %5012 = vmatpush1.bf16.msra.mxu0 %v7847_v53 }
 0x973   :  { %5013 = vmatprep.subr.bf16.mxu0 %v8232_v26 }
 0x976   :  { %5014 = vmatpush1.bf16.msra.mxu0 %v7848_v40 }
 0x977   :  { %5015 = vmatprep.subr.bf16.mxu0 %v8232_v26 }
 0x97a   :  { %5016 = vmatpush1.bf16.msra.mxu0 %v7849_v45 }
 0x97b   :  { %5017 = vmatprep.subr.bf16.mxu0 %v8232_v26 }
 0x97e   :  { %5018 = vmatpush1.bf16.msra.mxu0 %v7850_v50 }
 0x97f   :  { %5486 = vmatprep.subr.bf16.mxu0 %v8232_v26 }
 0x981   :  { %5032 = vmatmul.mubr.bf16.vlgmr.msra.gmra.mrb[28].mxu0 %v4647_v29  ;;  %v5059_v29 = vpop.permute.xlu0 %5058 }
 0x982   :  { %v5066_v30 = vsel %vm1755_vm5, %v5059_v29, %v5061_v5 }
 0x9dc   :  { %v4091_v52 = vpop.f32.mrb[24].mxu0 }
 0x9dd   :  { %v4093_v61 = vpop.f32.mrb[25].mxu0  ;;  %v4102_v56 = vadd.f32 %v8195_v54, %v4091_v52  ;;  %v8201_v52 = vld [vmem:[%s10679_s0 + $0x40] sm:$0xf] }
 0x9de   :  { %v4094_v0 = vpop.f32.mrb[26].mxu0 }
 0x9df   :  { %v4096_v3 = vpop.f32.mrb[27].mxu0  ;;  %v4107_v2 = vadd.f32 %v8196_v34, %v4094_v0  ;;  %v8202_v0 = vld [vmem:[%s10679_s0 + $0x38] sm:$0xf] }
 0xa05   :  { %v4562_v57 = vpop.f32.mrb[24].mxu1 }
 0xa06   :  { %v4573_v63 = vadd.f32 %v4562_v57, %v4102_v56  ;;  %v4564_v20 = vpop.f32.mrb[25].mxu1 }
 0xa07   :  { %v4565_v1 = vpop.f32.mrb[26].mxu1 }
 0xa08   :  { %v4578_v9 = vadd.f32 %v4565_v1, %v4107_v2  ;;  %v4567_v10 = vpop.f32.mrb[27].mxu1 }
 0xa09   :  { %v5100_v10 = vmul.f32 %v9722_v51, %v9055_v18  ;;  %v8204_v18 = vld [vmem:[%s10679_s0 + $0x30] sm:$0xf] }
 0xa2c   :  { %v4947_v60 = vpop.f32.mrb[20].mxu0 }
 0xa2d   :  { %v4990_v41 = vpop.f32.mrb[20].mxu1  ;;  %v4949_v55 = vpop.f32.mrb[21].mxu0  ;;  %v7159_v27 = vadd.f32 %v8200_v58, %v4947_v60  ;;  %v5101_v60 = vmul.f32 %v9724_v42, %v9059_v21 }
 0xa2e   :  { %v10297_v22 = vadd.f32 %v8197_v47, %v4990_v41  ;;  %v4992_v14 = vpop.f32.mrb[21].mxu1  ;;  %v10299_v33 = vpop.f32.mrb[22].mxu0  ;;  %v7160_v49 = vadd.f32 %v8199_v38, %v4949_v55 }
 0xa2f   :  { %v10304_v6 = vadd.f32 %v8198_v35, %v4992_v14  ;;  %v4994_v7 = vpop.f32.mrb[22].mxu1  ;;  %v10306_v23 = vpop.f32.mrb[23].mxu0  ;;  %v5072_v36 = vadd.f32 %v7159_v27, %v5066_v30 }
 0xa30   :  { %8103 = vtanh.f32 %v10297_v22  ;;  %v4996_v8 = vpop.f32.mrb[23].mxu1  ;;  %v5073_v32 = vadd.f32 %v7160_v49, %v5061_v5  ;;  %v10337_v3 = vadd.f32 %v8202_v0, %v4994_v7  ;;  %v5104_v41 = vadd.f32 %v7160_v49, %v5100_v10 }
 0xa31   :  { %8105 = vtanh.f32 %v10304_v6  ;;  %v6964_v12 = vmul.f32 -1.442695, %v5072_v36  ;;  %v10332_v61 = vadd.f32 %v8201_v52, %v4996_v8  ;;  %v5105_v55 = vadd.f32 %v10297_v22, %v5101_v60 }
 0xa32   :  { %v6965_v37 = vmul.f32 -1.442695, %v5073_v32  ;;  %v6968_v35 = vmul.f32 -1.442695, %v5104_v41  ;;  %v10360_v21 = vadd.f32 %v8204_v18, %v10306_v23 }
 0xa33   :  { %v6969_v7 = vmul.f32 -1.442695, %v5105_v55 }
 0xa34   :  { %8107 = vpow2.f32 %v6965_v37 }
 0xa35   :  { %8109 = vpow2.f32 %v6964_v12 }
 0xa3a   :  { %v8104_v13 = vpop.eup %8103 }
 0xa3b   :  { %v8106_v11 = vpop.eup %8105  ;;  %5144 = vrot.lane.b32.xlu0 %v8104_v13, %s8229_s28  ;;  %v8203_v13 = vld [vmem:[%s10679_s0 + $0x28] sm:$0xf] }
 0xa3c   :  { %5146 = vrot.lane.b32.xlu1 %v8106_v11, %s8229_s28  ;;  %v7161_v11 = vadd.f32 %v8203_v13, %v10299_v33 }
 0xa3e   :  { %v8108_v53 = vpop.eup %8107 }
 0xa3f   :  { %5062 = vrot.lane.b32.xlu0 %v5052_v43, %s8233_s22  ;;  %v8110_v40 = vpop.eup %8109  ;;  %v5089_v45 = vadd.f32 1.0, %v8108_v53 }
 0xa40   :  { %5064 = vrot.lane.b32.xlu1 %v5053_v44, %s8233_s22  ;;  %v5088_v50 = vadd.f32 1.0, %v8110_v40 }
 0xa41   :  { %8111 = vrcp.f32 %v5089_v45 }
 0xa42   :  { %8113 = vrcp.f32 %v5088_v50 }
 0xa43   :  { %8115 = vtanh.f32 %v10332_v61 }
 0xa44   :  { %8117 = vtanh.f32 %v10337_v3 }
 0xa45   :  { %8119 = vpow2.f32 %v6968_v35 }
 0xa46   :  { %8121 = vpow2.f32 %v6969_v7 }
 0xa4b   :  { %v8112_v56 = vpop.eup %8111 }
 0xa4c   :  { %v8114_v34 = vpop.eup %8113 }
 0xa4d   :  { %v8116_v1 = vpop.eup %8115 }
 0xa54   :  { %v5033_v15 = vpop.f32.mrb[28].mxu0 }
 0xa55   :  { %v10318_v4 = vadd.f32 %v5033_v15, %v4573_v63  ;;  %v5035_v17 = vpop.f32.mrb[29].mxu0 }
 0xa56   :  { %v5036_v16 = vpop.f32.mrb[30].mxu0 }
 0xa57   :  { %v10320_v19 = vadd.f32 %v5036_v16, %v4578_v9  ;;  %v5038_v25 = vpop.f32.mrb[31].mxu0  ;;  %v8118_v9 = vpop.eup %8117 }
 0xa58   :  { %v8120_v17 = vpop.eup %8119 }
 0xa59   :  { %v8122_v16 = vpop.eup %8121  ;;  %v5120_v25 = vadd.f32 1.0, %v8120_v17 }
 0xa5a   :  { %v5121_v33 = vadd.f32 1.0, %v8122_v16 }
 0xaad   :  { %v5145_v54 = vpop.permute.xlu0 %5144 }
 0xaae   :  { %v5147_v57 = vpop.permute.xlu1 %5146 }
 0xaaf   :  { %v5152_v2 = vsel %vm149_vm0, %v5145_v54, %v5147_v57  ;;  %v5159_v63 = vmul.f32 %v8112_v56, %v5147_v57 }
 0xab0   :  { %v5158_v20 = vmul.f32 %v8114_v34, %v5152_v2  ;;  %v7853_v34 = vld [vmem:[%s10682_s3] sm:$0xff]   ;;  %v7852_v2 = vld [vmem:[%s10682_s3 + $0x58] sm:$0xff]  }
 0xab1   :  { %5168 = vrot.lane.b32.xlu1 %v5159_v63, %s8230_s10  ;;  %v5063_v47 = vpop.permute.xlu0 %5062  ;;  %5487 = vmatpush1.bf16.msra.mxu0 %v7853_v34  ;;  %v7855_v63 = vld [vmem:[%s10682_s3 + $0x8] sm:$0xff]  }
 0xab2   :  { %5166 = vrot.lane.b32.xlu0 %v5158_v20, %s8230_s10  ;;  %v5065_v14 = vpop.permute.xlu1 %5064  ;;  %5488 = vmatprep.subr.bf16.mxu0 %v8232_v26  ;;  %v7854_v20 = vld [vmem:[%s10682_s3 + $0x60] sm:$0xff]  }
 0xab3   :  { %v5067_v8 = vsel %vm1755_vm5, %v5063_v47, %v5065_v14  ;;  %v5075_v43 = vadd.f32 %v10360_v21, %v5065_v14 }
 0xab4   :  { %v5074_v22 = vadd.f32 %v7161_v11, %v5067_v8 }
 0xab5   :  { %5150 = vrot.lane.b32.xlu1 %v8116_v1, %s8229_s28  ;;  %v6967_v15 = vmul.f32 -1.442695, %v5075_v43  ;;  %5489 = vmatpush1.bf16.msra.mxu0 %v7855_v63  ;;  %v5102_v1 = vmul.f32 %v9737_v59, %v9065_v28 }
 0xab6   :  { %5148 = vrot.lane.b32.xlu0 %v8118_v9, %s8229_s28  ;;  %v6966_v44 = vmul.f32 -1.442695, %v5074_v22  ;;  %5490 = vmatprep.subr.bf16.mxu0 %v8232_v26  ;;  %v5103_v9 = vmul.f32 %v9739_v62, %v9070_v31 }
 0xab7   :  { %v5106_v10 = vadd.f32 %v10360_v21, %v5102_v1  ;;  %v7857_v21 = vld [vmem:[%s10682_s3 + $0x10] sm:$0xff]  }
 0xab8   :  { %8123 = vpow2.f32 %v6966_v44  ;;  %v5107_v60 = vadd.f32 %v10337_v3, %v5103_v9  ;;  %v7856_v3 = vld [vmem:[%s10682_s3 + $0x68] sm:$0xff]  }
 0xab9   :  { %8125 = vpow2.f32 %v6967_v15  ;;  %v6970_v41 = vmul.f32 -1.442695, %v5106_v10  ;;  %5491 = vmatpush1.bf16.msra.mxu0 %v7857_v21  ;;  %v7872_v21 = vld [vmem:[%s10682_s3 + $0xa8] sm:$0xff]  }
 0xaba   :  { %8127 = vrcp.f32 %v5120_v25  ;;  %v6971_v55 = vmul.f32 -1.442695, %v5107_v60  ;;  %5492 = vmatprep.subr.bf16.mxu0 %v8232_v26 }
 0xabb   :  { %8129 = vrcp.f32 %v5121_v33 }
 0xac2   :  { %v8124_v38 = vpop.eup %8123 }
 0xac3   :  { %v8126_v49 = vpop.eup %8125  ;;  %v5090_v5 = vadd.f32 1.0, %v8124_v38 }
 0xac4   :  { %v5091_v58 = vadd.f32 1.0, %v8126_v49  ;;  %v8128_v23 = vpop.eup %8127 }
 0xac5   :  { %8131 = vrcp.f32 %v5090_v5  ;;  %v8130_v27 = vpop.eup %8129  ;;  %v5132_v30 = vmul.f32 %v8128_v23, %v9722_v51  ;;  %v7860_v5 = vld [vmem:[%s10682_s3 + $0x78] sm:$0xff]  }
 0xac6   :  { %8133 = vrcp.f32 %v5091_v58  ;;  %v5133_v32 = vmul.f32 %v8130_v27, %v9724_v42  ;;  %v7861_v58 = vld [vmem:[%s10682_s3 + $0x20] sm:$0xff]  }
 0xacf   :  { %v8132_v0 = vpop.eup %8131 }
 0xad0   :  { %v8134_v42 = vpop.eup %8133 }
 0xb23   :  { %v5169_v29 = vpop.permute.xlu1 %5168 }
 0xb24   :  { %v5167_v36 = vpop.permute.xlu0 %5166 }
 0xb25   :  { %v5174_v37 = vsel %vm94_vm1, %v5167_v36, %v5169_v29  ;;  %v5180_v12 = vadd.f32 %v5167_v36, %v5132_v30  ;;  %v7864_v29 = vld [vmem:[%s10682_s3 + $0x88] sm:$0xff]   ;;  %v7865_v30 = vld [vmem:[%s10682_s3 + $0x30] sm:$0xff]  }
 0xb26   :  { %v5181_v53 = vadd.f32 %v5174_v37, %v5133_v32  ;;  %v7866_v37 = vld [vmem:[%s10682_s3 + $0x90] sm:$0xff]  }
 0xb27   :  { %v5184_v40 = vmul.f32 %v5180_v12, %v8355_v24  ;;  %8135 = vtanh.f32 %v5180_v12  ;;  %v5151_v45 = vpop.permute.xlu1 %5150  ;;  %v7867_v12 = vld [vmem:[%s10682_s3 + $0x38] sm:$0xff]  }
 0xb28   :  { %8137 = vtanh.f32 %v5181_v53  ;;  %v5149_v50 = vpop.permute.xlu0 %5148  ;;  %v5185_v52 = vmul.f32 %v5181_v53, %v8367_v39  ;;  %v5161_v56 = vmul.f32 %v8134_v42, %v5151_v45  ;;  %v7851_v39 = vld [vmem:[%s10682_s3 + $0x50] sm:$0xff]   ;;  %v7868_v53 = vld [vmem:[%s10682_s3 + $0x98] sm:$0xff]  }
 0xb29   :  { %v5153_v54 = vsel %vm149_vm0, %v5149_v50, %v5151_v45  ;;  %5192 = vrot.lane.b32.xlu0 %v5184_v40, %s8229_s28  ;;  %5378 = vmatpush1.bf16.msra.mxu1 %v7851_v39  ;;  %8139 = vpow2.f32 %v6970_v41  ;;  %v7869_v40 = vld [vmem:[%s10682_s3 + $0x40] sm:$0xff]  }
 0xb2a   :  { %v5160_v51 = vmul.f32 %v8132_v0, %v5153_v54  ;;  %5194 = vrot.lane.b32.xlu1 %v5185_v52, %s8229_s28  ;;  %5379 = vmatprep.subr.bf16.mxu1 %v8232_v26  ;;  %8141 = vpow2.f32 %v6971_v55  ;;  %v7870_v0 = vld [vmem:[%s10682_s3 + $0x48] sm:$0xff]  }
 0xb2d   :  { %5170 = vrot.lane.b32.xlu0 %v5160_v51, %s8230_s10  ;;  %5380 = vmatpush1.bf16.msra.mxu1 %v7852_v2 }
 0xb2e   :  { %5172 = vrot.lane.b32.xlu1 %v5161_v56, %s8230_s10  ;;  %5381 = vmatprep.subr.bf16.mxu1 %v8232_v26 }
 0xb31   :  { %v8136_v24 = vpop.eup %8135  ;;  %5382 = vmatpush1.bf16.msra.mxu1 %v7854_v20 }
 0xb32   :  { %v8138_v57 = vpop.eup %8137  ;;  %5242 = vrot.lane.b32.xlu0 %v8136_v24, %s8229_s28  ;;  %5383 = vmatprep.subr.bf16.mxu1 %v8232_v26 }
 0xb33   :  { %5244 = vrot.lane.b32.xlu1 %v8138_v57, %s8229_s28  ;;  %v8140_v47 = vpop.eup %8139 }
 0xb34   :  { %v8142_v14 = vpop.eup %8141  ;;  %v5122_v35 = vadd.f32 1.0, %v8140_v47 }
 0xb35   :  { %v5123_v7 = vadd.f32 1.0, %v8142_v14  ;;  %5384 = vmatpush1.bf16.msra.mxu1 %v7856_v3 }
 0xb36   :  { %8143 = vrcp.f32 %v5122_v35  ;;  %5385 = vmatprep.subr.bf16.mxu1 %v8232_v26 }
 0xb37   :  { %8145 = vrcp.f32 %v5123_v7 }
 0xb40   :  { %v8144_v8 = vpop.eup %8143 }
 0xb41   :  { %v8146_v31 = vpop.eup %8145  ;;  %v5134_v44 = vmul.f32 %v8144_v8, %v9737_v59  ;;  %v7858_v59 = vld [vmem:[%s10682_s3 + $0x70] sm:$0xff]  }
 0xb42   :  { %v5135_v16 = vmul.f32 %v8146_v31, %v9739_v62  ;;  %5386 = vmatpush1.bf16.msra.mxu1 %v7858_v59 }
 0xb43   :  { %5387 = vmatprep.subr.bf16.mxu1 %v8232_v26 }
 0xb46   :  { %5388 = vmatpush1.bf16.msra.mxu1 %v7860_v5  ;;  %v7877_v5 = vld [vmem:[%s10682_s3 + $0x100] sm:$0xff]  }
 0xb47   :  { %5389 = vmatprep.subr.bf16.mxu1 %v8232_v26 }
 0xb9b   :  { %v5193_v13 = vpop.permute.xlu0 %5192 }
 0xb9c   :  { %v5206_v28 = vadd.f32 %v10304_v6, %v5193_v13  ;;  %v5195_v11 = vpop.permute.xlu1 %5194 }
 0xb9d   :  { %v5200_v18 = vsel %vm149_vm0, %v5193_v13, %v5195_v11 }
 0xb9e   :  { %v6972_v22 = vmul.f32 -1.442695, %v5206_v28  ;;  %v5207_v43 = vadd.f32 %v5200_v18, %v10318_v4  ;;  %v7859_v4 = vld [vmem:[%s10682_s3 + $0x18] sm:$0xff]  }
 0xb9f   :  { %v5171_v15 = vpop.permute.xlu0 %5170  ;;  %5493 = vmatpush1.bf16.msra.mxu0 %v7859_v4 }
 0xba0   :  { %8147 = vpow2.f32 %v6972_v22  ;;  %v6973_v6 = vmul.f32 -1.442695, %v5207_v43  ;;  %v10411_v17 = vadd.f32 %v5171_v15, %v5134_v44  ;;  %v5173_v25 = vpop.permute.xlu1 %5172  ;;  %5494 = vmatprep.subr.bf16.mxu0 %v8232_v26  ;;  %v7873_v22 = vld [vmem:[%s10682_s3 + $0xf0] sm:$0xff]  }
 0xba1   :  { %v5175_v33 = vsel %vm94_vm1, %v5171_v15, %v5173_v25  ;;  %v7875_v25 = vld [vmem:[%s10682_s3 + $0xf8] sm:$0xff]  }
 0xba2   :  { %8149 = vpow2.f32 %v6973_v6  ;;  %v5186_v38 = vmul.f32 %v10411_v17, %v8381_v46  ;;  %v5183_v62 = vadd.f32 %v5175_v33, %v5135_v16  ;;  %v7862_v46 = vld [vmem:[%s10682_s3 + $0x80] sm:$0xff]   ;;  %v7874_v16 = vld [vmem:[%s10682_s3 + $0xb0] sm:$0xff]  }
 0xba3   :  { %5495 = vmatpush1.bf16.msra.mxu0 %v7861_v58  ;;  %5390 = vmatpush1.bf16.msra.mxu1 %v7862_v46 }
 0xba4   :  { %v5187_v49 = vmul.f32 %v5183_v62, %v8387_v48  ;;  %5196 = vrot.lane.b32.xlu0 %v5186_v38, %s8229_s28  ;;  %5496 = vmatprep.subr.bf16.mxu0 %v8232_v26  ;;  %v7863_v48 = vld [vmem:[%s10682_s3 + $0x28] sm:$0xff]   ;;  %v5243_v45 = vpop.permute.xlu0 %5242 }
 0xba5   :  { %5391 = vmatprep.subr.bf16.mxu1 %v8232_v26  ;;  %v5245_v50 = vpop.permute.xlu1 %5244 }
 0xba6   :  { %5198 = vrot.lane.b32.xlu1 %v5187_v49, %s8229_s28  ;;  %v5250_v42 = vsel %vm149_vm0, %v5243_v45, %v5245_v50  ;;  %v7876_v49 = vld [vmem:[%s10682_s3 + $0xb8] sm:$0xff]   ;;  %v7887_v50 = vld [vmem:[%s10682_s3 + $0x128] sm:$0xff]  }
 0xba7   :  { %5497 = vmatpush1.bf16.msra.mxu0 %v7863_v48  ;;  %5392 = vmatpush1.bf16.msra.mxu1 %v7864_v29 }
 0xba8   :  { %5498 = vmatprep.subr.bf16.mxu0 %v8232_v26  ;;  %5393 = vmatprep.subr.bf16.mxu1 %v8232_v26 }
 0xbaa   :  { %v8148_v23 = vpop.eup %8147 }
 0xbab   :  { %v5222_v27 = vadd.f32 1.0, %v8148_v23  ;;  %5499 = vmatpush1.bf16.msra.mxu0 %v7865_v30  ;;  %5394 = vmatpush1.bf16.msra.mxu1 %v7866_v37  ;;  %v7878_v23 = vld [vmem:[%s10682_s3 + $0xc0] sm:$0xff]   ;;  %v7882_v37 = vld [vmem:[%s10682_s3 + $0xd0] sm:$0xff]  }
 0xbac   :  { %v8150_v32 = vpop.eup %8149  ;;  %5500 = vmatprep.subr.bf16.mxu0 %v8232_v26  ;;  %5395 = vmatprep.subr.bf16.mxu1 %v8232_v26 }
 0xbad   :  { %8151 = vrcp.f32 %v5222_v27  ;;  %v5223_v36 = vadd.f32 1.0, %v8150_v32  ;;  %v7879_v27 = vld [vmem:[%s10682_s3 + $0x108] sm:$0xff]  }
 0xbae   :  { %v7880_v32 = vld [vmem:[%s10682_s3 + $0xc8] sm:$0xff]  }
 0xbaf   :  { %8153 = vrcp.f32 %v5223_v36  ;;  %5501 = vmatpush1.bf16.msra.mxu0 %v7867_v12  ;;  %5396 = vmatpush1.bf16.msra.mxu1 %v7868_v53  ;;  %v7881_v36 = vld [vmem:[%s10682_s3 + $0x110] sm:$0xff]   ;;  %v7883_v12 = vld [vmem:[%s10682_s3 + $0x118] sm:$0xff]  }
 0xbb0   :  { %5502 = vmatprep.subr.bf16.mxu0 %v8232_v26  ;;  %5618 = vmatprep.subr.bf16.mxu1 %v8232_v26  ;;  %8155 = vtanh.f32 %v10411_v17  ;;  %v7884_v53 = vld [vmem:[%s10682_s3 + $0xd8] sm:$0xff]  }
 0xbb1   :  { %8157 = vtanh.f32 %v5183_v62 }
 0xbb3   :  { %5503 = vmatpush1.bf16.msra.mxu0 %v7869_v40  ;;  %v7885_v40 = vld [vmem:[%s10682_s3 + $0x120] sm:$0xff]  }
 0xbb4   :  { %5504 = vmatprep.subr.bf16.mxu0 %v8232_v26 }
 0xbb7   :  { %v8152_v52 = vpop.eup %8151  ;;  %5505 = vmatpush1.bf16.msra.mxu0 %v7870_v0  ;;  %v7889_v0 = vld [vmem:[%s10682_s3 + $0x130] sm:$0xff]  }
 0xbb8   :  { %v5256_v54 = vmul.f32 %v8152_v52, %v5243_v45  ;;  %5751 = vmatprep.subr.bf16.mxu0 %v8232_v26  ;;  %v7886_v45 = vld [vmem:[%s10682_s3 + $0xe0] sm:$0xff]   ;;  %v7888_v52 = vld [vmem:[%s10682_s3 + $0xe8] sm:$0xff]  }
 0xbb9   :  { %v8154_v51 = vpop.eup %8153 }
 0xbba   :  { %v5260_v56 = vpack.c.bf16 %v5256_v54, %v5256_v54  ;;  %v5257_v24 = vmul.f32 %v8154_v51, %v5250_v42  ;;  %v8156_v2 = vpop.eup %8155  ;;  %v7890_v51 = vld [vmem:[%s10682_s3 + $0x138] sm:$0xff]   ;;  %v7891_v42 = vld [vmem:[%s10682_s3 + $0x140] sm:$0xff]  }
 0xbbb   :  { %v8158_v63 = vpop.eup %8157 }
 0xbbc   :  { %v5261_v57 = vpack.c.bf16 %v5257_v24, %v5257_v24  ;;  %v5305_v39 = vrot.slane %v5260_v56, 1  ;;  %v5547_v20 = vrot.slane %v5260_v56, 2  ;;  %v5680_v9 = vrot.slane %v5260_v56, 3  ;;  %v7892_v24 = vld [vmem:[%s10682_s3 + $0x148] sm:$0xff]  }
 0xbbe   :  { %5307 = vrot.lane.b32.xlu0 %v5305_v39, %s8230_s10  ;;  %v5306_v34 = vrot.slane %v5261_v57, 1  ;;  %v5548_v1 = vrot.slane %v5261_v57, 2  ;;  %v5681_v10 = vrot.slane %v5261_v57, 3 }
 0xbc0   :  { %5309 = vrot.lane.b32.xlu1 %v5306_v34, %s8230_s10 }
 0xbc2   :  { %5417 = vrot.lane.b32.xlu0 %v5260_v56, %s8230_s10 }
 0xbc4   :  { %5419 = vrot.lane.b32.xlu1 %v5261_v57, %s8230_s10  ;;  %v7893_v57 = vld [vmem:[%s10682_s3 + $0x190] sm:$0xff]  }
 0xbc6   :  { %5246 = vrot.lane.b32.xlu0 %v8156_v2, %s8229_s28  ;;  %v7894_v2 = vld [vmem:[%s10682_s3 + $0x150] sm:$0xff]  }
 0xbc8   :  { %5248 = vrot.lane.b32.xlu1 %v8158_v63, %s8229_s28  ;;  %v7895_v63 = vld [vmem:[%s10682_s3 + $0x198] sm:$0xff]  }
 0xbca   :  { %5549 = vrot.lane.b32.xlu0 %v5547_v20, %s8230_s10  ;;  %v7896_v20 = vld [vmem:[%s10682_s3 + $0x158] sm:$0xff]  }
 0xbcc   :  { %5551 = vrot.lane.b32.xlu1 %v5548_v1, %s8230_s10  ;;  %v7897_v1 = vld [vmem:[%s10682_s3 + $0x1a0] sm:$0xff]  }
 0xbce   :  { %5682 = vrot.lane.b32.xlu0 %v5680_v9, %s8230_s10  ;;  %v7898_v9 = vld [vmem:[%s10682_s3 + $0x160] sm:$0xff]  }
 0xbd0   :  { %5684 = vrot.lane.b32.xlu1 %v5681_v10, %s8230_s10  ;;  %v7899_v10 = vld [vmem:[%s10682_s3 + $0x1a8] sm:$0xff]  }
 0xc16   :  { %v5197_v60 = vpop.permute.xlu0 %5196 }
 0xc17   :  { %v5208_v41 = vadd.f32 %v10332_v61, %v5197_v60  ;;  %v7871_v61 = vld [vmem:[%s10682_s3 + $0xa0] sm:$0xff]  }
 0xc18   :  { %v5199_v55 = vpop.permute.xlu1 %5198 }
 0xc19   :  { %v6974_v47 = vmul.f32 -1.442695, %v5208_v41  ;;  %v5201_v14 = vsel %vm149_vm0, %v5197_v60, %v5199_v55  ;;  %v7900_v60 = vld [vmem:[%s10682_s3 + $0x168] sm:$0xff]   ;;  %v7901_v41 = vld [vmem:[%s10682_s3 + $0x1b0] sm:$0xff]  }
 0xc1a   :  { %v5209_v35 = vadd.f32 %v5201_v14, %v10320_v19  ;;  %v7902_v55 = vld [vmem:[%s10682_s3 + $0x170] sm:$0xff]   ;;  %v7904_v14 = vld [vmem:[%s10682_s3 + $0x178] sm:$0xff]  }
 0xc1b   :  { %8159 = vpow2.f32 %v6974_v47  ;;  %v7903_v47 = vld [vmem:[%s10682_s3 + $0x1b8] sm:$0xff]  }
 0xc1c   :  { %v6975_v7 = vmul.f32 -1.442695, %v5209_v35  ;;  %v7905_v35 = vld [vmem:[%s10682_s3 + $0x1c0] sm:$0xff]  }
 0xc1e   :  { %8161 = vpow2.f32 %v6975_v7  ;;  %v7906_v7 = vld [vmem:[%s10682_s3 + $0x180] sm:$0xff]  }
 0xc25   :  { %v8160_v8 = vpop.eup %8159 }
 0xc26   :  { %v5224_v28 = vadd.f32 1.0, %v8160_v8  ;;  %v7907_v8 = vld [vmem:[%s10682_s3 + $0x1c8] sm:$0xff]  }
 0xc28   :  { %v8162_v13 = vpop.eup %8161  ;;  %8163 = vrcp.f32 %v5224_v28  ;;  %v7909_v28 = vld [vmem:[%s10682_s3 + $0x1d0] sm:$0xff]  }
 0xc29   :  { %v5225_v11 = vadd.f32 1.0, %v8162_v13  ;;  %v7908_v13 = vld [vmem:[%s10682_s3 + $0x188] sm:$0xff]  }
 0xc2b   :  { %8165 = vrcp.f32 %v5225_v11  ;;  %v7910_v11 = vld [vmem:[%s10682_s3 + $0x1d8] sm:$0xff]  }
 0xc30   :  { %v5308_v31 = vpop.permute.xlu0 %5307 }
 0xc32   :  { %v5310_v18 = vpop.permute.xlu1 %5309  ;;  %v8164_v15 = vpop.eup %8163 }
 0xc33   :  { %v5312_v3 = vsel %vm94_vm1, %v5308_v31, %v5310_v18  ;;  %7006 = vmatprep.mubr.msk.bf16.mxu1 %vm94_vm1, %v5310_v18 }
 0xc34   :  { %5410 = vmatmul.mubr.bf16.vlgmr.msra.gmra.mrb[28].mxu1 %v5312_v3  ;;  %v5418_v19 = vpop.permute.xlu0 %5417 }
 0xc35   :  { %5619 = vmatpush1.bf16.msra.mxu1 %v7871_v61  ;;  %v8166_v59 = vpop.eup %8165 }
 0xc36   :  { %v5420_v43 = vpop.permute.xlu1 %5419  ;;  %5620 = vmatprep.subr.bf16.mxu1 %v8232_v26 }
 0xc37   :  { %v5421_v44 = vsel %vm94_vm1, %v5418_v19, %v5420_v43  ;;  %7017 = vmatprep.mubr.msk.bf16.mxu0 %vm94_vm1, %v5420_v43 }
 0xc38   :  { %5519 = vmatmul.mubr.bf16.vlgmr.msra.gmra.mrb[32].mxu0 %v5421_v44  ;;  %v5247_v6 = vpop.permute.xlu0 %5246 }
 0xc39   :  { %5621 = vmatpush1.bf16.msra.mxu1 %v7872_v21  ;;  %5752 = vmatpush1.bf16.msra.mxu0 %v7873_v22  ;;  %v5258_v17 = vmul.f32 %v8164_v15, %v5247_v6 }
 0xc3a   :  { %v5249_v33 = vpop.permute.xlu1 %5248  ;;  %5622 = vmatprep.subr.bf16.mxu1 %v8232_v26  ;;  %5753 = vmatprep.subr.bf16.mxu0 %v8232_v26 }
 0xc3b   :  { %v5792_v4 = vpack.c.bf16 %v5258_v17, %v5258_v17  ;;  %v5251_v38 = vsel %vm149_vm0, %v5247_v6, %v5249_v33 }
 0xc3c   :  { %v5259_v62 = vmul.f32 %v8166_v59, %v5251_v38  ;;  %v5550_v54 = vpop.permute.xlu0 %5549 }
 0xc3d   :  { %5623 = vmatpush1.bf16.msra.mxu1 %v7874_v16  ;;  %5754 = vmatpush1.bf16.msra.mxu0 %v7875_v25  ;;  %v5948_v48 = vrot.slane %v5792_v4, 1 }
 0xc3e   :  { %v5793_v58 = vpack.c.bf16 %v5259_v62, %v5259_v62  ;;  %5817 = vrot.lane.b32.xlu0 %v5792_v4, %s8230_s10  ;;  %v5552_v46 = vpop.permute.xlu1 %5551  ;;  %5624 = vmatprep.subr.bf16.mxu1 %v8232_v26 }
 0xc3f   :  { %7048 = vmatprep.mubr.msk.bf16.mxu1 %vm94_vm1, %v5552_v46  ;;  %5755 = vmatprep.subr.bf16.mxu0 %v8232_v26  ;;  %v5553_v56 = vsel %vm94_vm1, %v5550_v54, %v5552_v46 }
 0xc40   :  { %5819 = vrot.lane.b32.xlu1 %v5793_v58, %s8230_s10  ;;  %v5949_v29 = vrot.slane %v5793_v58, 1  ;;  %v5683_v39 = vpop.permute.xlu0 %5682 }
 0xc41   :  { %5625 = vmatpush1.bf16.msra.mxu1 %v7876_v49  ;;  %5756 = vmatpush1.bf16.msra.mxu0 %v7877_v5 }
 0xc42   :  { %5950 = vrot.lane.b32.xlu0 %v5948_v48, %s8230_s10  ;;  %v5685_v30 = vpop.permute.xlu1 %5684  ;;  %5626 = vmatprep.subr.bf16.mxu1 %v8232_v26 }
 0xc43   :  { %5757 = vmatprep.subr.bf16.mxu0 %v8232_v26  ;;  %7079 = vmatprep.mubr.msk.bf16.mxu0 %vm94_vm1, %v5685_v30  ;;  %v5686_v34 = vsel %vm94_vm1, %v5683_v39, %v5685_v30 }
 0xc44   :  { %5952 = vrot.lane.b32.xlu1 %v5949_v29, %s8230_s10 }
 0xc45   :  { %5627 = vmatpush1.bf16.msra.mxu1 %v7878_v23  ;;  %5758 = vmatpush1.bf16.msra.mxu0 %v7879_v27 }
 0xc46   :  { %5628 = vmatprep.subr.bf16.mxu1 %v8232_v26  ;;  %5759 = vmatprep.subr.bf16.mxu0 %v8232_v26 }
 0xc49   :  { %5629 = vmatpush1.bf16.msra.mxu1 %v7880_v32  ;;  %5760 = vmatpush1.bf16.msra.mxu0 %v7881_v36 }
 0xc4a   :  { %5630 = vmatprep.subr.bf16.mxu1 %v8232_v26  ;;  %5761 = vmatprep.subr.bf16.mxu0 %v8232_v26 }
 0xc4d   :  { %5631 = vmatpush1.bf16.msra.mxu1 %v7882_v37  ;;  %5762 = vmatpush1.bf16.msra.mxu0 %v7883_v12  ;;  %v7142_v37 = vld [vmem:[%s10683_s4] ss:$0 sm:$0xff] }
 0xc4e   :  { %5632 = vmatprep.subr.bf16.mxu1 %v8232_v26  ;;  %5763 = vmatprep.subr.bf16.mxu0 %v8232_v26 }
 0xc51   :  { %5633 = vmatpush1.bf16.msra.mxu1 %v7884_v53  ;;  %5764 = vmatpush1.bf16.msra.mxu0 %v7885_v40 }
 0xc52   :  { %5634 = vmatprep.subr.bf16.mxu1 %v8232_v26  ;;  %5765 = vmatprep.subr.bf16.mxu0 %v8232_v26 }
 0xc55   :  { %5635 = vmatpush1.bf16.msra.mxu1 %v7886_v45  ;;  %5766 = vmatpush1.bf16.msra.mxu0 %v7887_v50 }
 0xc56   :  { %5636 = vmatprep.subr.bf16.mxu1 %v8232_v26  ;;  %5767 = vmatprep.subr.bf16.mxu0 %v8232_v26 }
 0xc59   :  { %5637 = vmatpush1.bf16.msra.mxu1 %v7888_v52  ;;  %5768 = vmatpush1.bf16.msra.mxu0 %v7889_v0 }
 0xc5a   :  { %5769 = vmatprep.subr.bf16.mxu0 %v8232_v26  ;;  %5886 = vmatprep.subr.bf16.mxu1 %v8232_v26 }
 0xc5c   :  { %5651 = vmatmul.mubr.bf16.vlgmr.msra.gmra.mrb[32].mxu1 %v5553_v56 }
 0xc5d   :  { %5770 = vmatpush1.bf16.msra.mxu0 %v7890_v51  ;;  %5887 = vmatpush1.bf16.msra.mxu1 %v7891_v42 }
 0xc5e   :  { %5888 = vmatprep.subr.bf16.mxu1 %v8232_v26  ;;  %6019 = vmatprep.subr.bf16.mxu0 %v8232_v26 }
 0xc60   :  { %5784 = vmatmul.mubr.bf16.vlgmr.msra.gmra.mrb[36].mxu0 %v5686_v34 }
 0xc61   :  { %5889 = vmatpush1.bf16.msra.mxu1 %v7892_v24  ;;  %6020 = vmatpush1.bf16.msra.mxu0 %v7893_v57 }
 0xc62   :  { %5890 = vmatprep.subr.bf16.mxu1 %v8232_v26  ;;  %6021 = vmatprep.subr.bf16.mxu0 %v8232_v26 }
 0xc65   :  { %5891 = vmatpush1.bf16.msra.mxu1 %v7894_v2  ;;  %6022 = vmatpush1.bf16.msra.mxu0 %v7895_v63 }
 0xc66   :  { %5892 = vmatprep.subr.bf16.mxu1 %v8232_v26  ;;  %6023 = vmatprep.subr.bf16.mxu0 %v8232_v26 }
 0xc69   :  { %5893 = vmatpush1.bf16.msra.mxu1 %v7896_v20  ;;  %6024 = vmatpush1.bf16.msra.mxu0 %v7897_v1 }
 0xc6a   :  { %5894 = vmatprep.subr.bf16.mxu1 %v8232_v26  ;;  %6025 = vmatprep.subr.bf16.mxu0 %v8232_v26 }
 0xc6d   :  { %5895 = vmatpush1.bf16.msra.mxu1 %v7898_v9  ;;  %6026 = vmatpush1.bf16.msra.mxu0 %v7899_v10 }
 0xc6e   :  { %5896 = vmatprep.subr.bf16.mxu1 %v8232_v26  ;;  %6027 = vmatprep.subr.bf16.mxu0 %v8232_v26 }
 0xc71   :  { %5897 = vmatpush1.bf16.msra.mxu1 %v7900_v60  ;;  %6028 = vmatpush1.bf16.msra.mxu0 %v7901_v41 }
 0xc72   :  { %5898 = vmatprep.subr.bf16.mxu1 %v8232_v26  ;;  %6029 = vmatprep.subr.bf16.mxu0 %v8232_v26 }
 0xc75   :  { %5899 = vmatpush1.bf16.msra.mxu1 %v7902_v55  ;;  %6030 = vmatpush1.bf16.msra.mxu0 %v7903_v47 }
 0xc76   :  { %5900 = vmatprep.subr.bf16.mxu1 %v8232_v26  ;;  %6031 = vmatprep.subr.bf16.mxu0 %v8232_v26 }
 0xc79   :  { %5901 = vmatpush1.bf16.msra.mxu1 %v7904_v14  ;;  %6032 = vmatpush1.bf16.msra.mxu0 %v7905_v35 }
 0xc7a   :  { %5902 = vmatprep.subr.bf16.mxu1 %v8232_v26  ;;  %6033 = vmatprep.subr.bf16.mxu0 %v8232_v26 }
 0xc7d   :  { %5903 = vmatpush1.bf16.msra.mxu1 %v7906_v7  ;;  %6034 = vmatpush1.bf16.msra.mxu0 %v7907_v8 }
 0xc7e   :  { %5904 = vmatprep.subr.bf16.mxu1 %v8232_v26  ;;  %6035 = vmatprep.subr.bf16.mxu0 %v8232_v26 }
 0xc81   :  { %5905 = vmatpush1.bf16.msra.mxu1 %v7908_v13  ;;  %6036 = vmatpush1.bf16.msra.mxu0 %v7909_v28 }
 0xc82   :  { %6037 = vmatprep.subr.bf16.mxu0 %v8232_v26 }
 0xc85   :  { %6038 = vmatpush1.bf16.msra.mxu0 %v7910_v11 }
 0xcb0   :  { %v5818_v31 = vpop.permute.xlu0 %5817 }
 0xcb2   :  { %v5820_v61 = vpop.permute.xlu1 %5819 }
 0xcb3   :  { %v5821_v18 = vsel %vm94_vm1, %v5818_v31, %v5820_v61  ;;  %7110 = vmatprep.mubr.msk.bf16.mxu1 %vm94_vm1, %v5820_v61 }
 0xcb4   :  { %5919 = vmatmul.mubr.bf16.vlgmr.msra.gmra.mrb[36].mxu1 %v5821_v18  ;;  %v5951_v3 = vpop.permute.xlu0 %5950 }
 0xcb6   :  { %v5953_v19 = vpop.permute.xlu1 %5952 }
 0xcb7   :  { %v5954_v21 = vsel %vm94_vm1, %v5951_v3, %v5953_v19  ;;  %7141 = vmatprep.mubr.msk.bf16.mxu0 %vm94_vm1, %v5953_v19 }
 0xcb8   :  { %6052 = vmatmul.mubr.bf16.vlgmr.msra.gmra.mrb[40].mxu0 %v5954_v21 }
 0xd07   :  { %v5411_v22 = vpop.f32.mrb[28].mxu1 }
 0xd08   :  { %v5413_v43 = vpop.f32.mrb[29].mxu1 }
 0xd09   :  { %v5414_v44 = vpop.f32.mrb[30].mxu1 }
 0xd0a   :  { %v5415_v15 = vpop.f32.mrb[31].mxu1 }
 0xd0b   :  { %v5520_v26 = vpop.f32.mrb[32].mxu0 }
 0xd0c   :  { %v5521_v6 = vadd.f32 %v5520_v26, %v5411_v22  ;;  %v5522_v17 = vpop.f32.mrb[33].mxu0 }
 0xd0d   :  { %v5523_v16 = vpop.f32.mrb[34].mxu0 }
 0xd0e   :  { %v5524_v25 = vpop.f32.mrb[35].mxu0 }
 0xd2f   :  { %v5652_v33 = vpop.f32.mrb[32].mxu1 }
 0xd30   :  { %v5658_v59 = vadd.f32 %v5652_v33, %v5521_v6  ;;  %v5654_v4 = vpop.f32.mrb[33].mxu1 }
 0xd31   :  { %v5655_v38 = vpop.f32.mrb[34].mxu1 }
 0xd32   :  { %v5656_v62 = vpop.f32.mrb[35].mxu1 }
 0xd33   :  { %v5785_v49 = vpop.f32.mrb[36].mxu0 }
 0xd34   :  { %v5791_v5 = vadd.f32 %v5785_v49, %v5658_v59  ;;  %v5787_v58 = vpop.f32.mrb[37].mxu0 }
 0xd35   :  { %v5788_v46 = vpop.f32.mrb[38].mxu0 }
 0xd36   :  { %v5789_v48 = vpop.f32.mrb[39].mxu0 }
 0xd87   :  { %v5920_v23 = vpop.f32.mrb[36].mxu1 }
 0xd88   :  { %v5926_v27 = vadd.f32 %v5920_v23, %v5791_v5  ;;  %v5922_v29 = vpop.f32.mrb[37].mxu1 }
 0xd89   :  { %v5923_v30 = vpop.f32.mrb[38].mxu1 }
 0xd8a   :  { %v5924_v32 = vpop.f32.mrb[39].mxu1 }
 0xd8b   :  { %v6053_v36 = vpop.f32.mrb[40].mxu0 }
 0xd8c   :  { %v6059_v12 = vadd.f32 %v6053_v36, %v5926_v27  ;;  %v6055_v53 = vpop.f32.mrb[41].mxu0 }
 0xd8d   :  { %v6056_v40 = vpop.f32.mrb[42].mxu0 }
 0xd8e   :  { %v6057_v45 = vpop.f32.mrb[43].mxu0  ;;  %v6067_v50 = vadd.f32 %v7142_v37, %v6059_v12 }
 0xd90   :  { %6068 = vst [vmem:[#allocation3] sm:$0x3] %v6067_v50 }
 0xd91   :  { %8216 = shalt.err (!%p8213_p4)
}
 0xd92   :  { %s8217_s4 = scalar_lea.hbm %s10684_s5, 32 }
 0xd93   :  { %p8218_p5 = scmp.ne.s32.totalorder %s10684_s5, %s8217_s4  ;;  %p8221_p6 = scmp.lt.u32.totalorder %s8217_s4, %s10684_s5 }
 0xd95   :  { %p8223_p7 = pnand %p8221_p6, %p8218_p5 }
 0xd97   :  { %8226 = shalt.err (!%p8223_p7)
}
 0xd98   :  { %6078 = dma.vmem_to_hbm [thread:$0]  %s6076_s21, 32, %s10684_s5, [#allocation4]  }
 0xd99   :  { %8227 = dma.done.wait [#allocation4], 32  }
 0xd9a   :  { %8228 = vsyncadd [#allocation4], 4294967264 }
 0xd9b   :  { %6082 = vsyncpa [#allocation4], 1 }

</bundles_post_ra>
